<compile_context>
chip_gen: v7x
topology: tpu7x:2x2x1
jax: 0.10.0
libtpu: 0.0.40
codegen_flags: <defaults>
</compile_context>

<pallas_src>
import math

import jax
import jax.numpy as jnp
from jax.experimental import pallas as pl
from jax.experimental.pallas import tpu as pltpu

# ---- small synthetic config (mirrors a tiny BERT-style sequence classifier) ----
BATCH = 2
SEQ = 8
HIDDEN = 32
NUM_HEADS = 2
HEAD_DIM = HIDDEN // NUM_HEADS
FFN = 64
NUM_LAYERS = 2
VOCAB = 64
NUM_ADDITIONAL_TOKENS = 2      # mirrors resize_token_embeddings(vocab + additional)
NUM_LABELS = 2
LN_EPS = 1e-12

# lane-dense padded sizes (fill the 128-lane vregs / MXU passes)
LANE = 128
HP = LANE          # HIDDEN padded to 128 lanes
FP = LANE          # FFN padded to 128 lanes
DP = LANE          # per-head head_dim padded to 128 lanes
LP = LANE          # num_labels padded to 128 lanes

PER_LAYER = 16     # per-encoder-layer parameter count passed to the fused kernel


# ------------------------------ fused kernel -------------------------------
def fused_forward_kernel(*refs):
    # Inputs: emb, attn_bias, emb_ln_g, emb_ln_b,
    #         NUM_LAYERS * 16 layer params, wp, bp, wc, bc.  Output: logits.
    emb_ref, bias_ref, emb_g_ref, emb_b_ref = refs[0:4]
    layer_refs = refs[4:4 + NUM_LAYERS * PER_LAYER]
    wp_ref, bp_ref, wc_ref, bc_ref, logits_ref = refs[4 + NUM_LAYERS * PER_LAYER:]

    # lane mask marking the HIDDEN real channels inside the 128-lane padding
    lane = jax.lax.broadcasted_iota(jnp.int32, (1, HP), 1)
    lane_mask = (lane < HIDDEN).astype(jnp.float32)              # (1, HP)

    def layer_norm(v, g, b):
        # masked LayerNorm over the HIDDEN real lanes (padding lanes stay 0)
        mu = jnp.sum(v, axis=-1, keepdims=True) * (1.0 / HIDDEN)
        c = (v - mu) * lane_mask
        var = jnp.sum(c * c, axis=-1, keepdims=True) * (1.0 / HIDDEN)
        return c * jax.lax.rsqrt(var + LN_EPS) * g + b

    def mxu(a, w_bf16):
        # bf16 operands, f32 accumulation
        return jnp.dot(a.astype(jnp.bfloat16), w_bf16,
                       preferred_element_type=jnp.float32)

    x = layer_norm(emb_ref[...], emb_g_ref[...], emb_b_ref[...])  # (B*S, HP) f32
    attn_bias = bias_ref[...]                                     # (B, 1, S) f32
    scale = 1.0 / math.sqrt(HEAD_DIM)

    for l in range(NUM_LAYERS):                 # static unroll over layers
        (wqh, bqh, wkh, bkh, wvh, bvh, woh, bo,
         ln1g, ln1b, w1, b1, w2, b2, ln2g, ln2b) = layer_refs[
            l * PER_LAYER:(l + 1) * PER_LAYER]

        # ---- multi-head self-attention ----
        # Per-head weights are pre-split & lane-padded (HP x 128), so there is
        # no sub-tile lane slicing and no concatenate; head outputs are summed
        # through their zero-padded output projections.
        attn_out = bo[...]                                   # (1, HP) f32
        for h in range(NUM_HEADS):                           # static unroll
            q = (mxu(x, wqh[h]) + bqh[h]).reshape(BATCH, SEQ, DP)
            k = (mxu(x, wkh[h]) + bkh[h]).reshape(BATCH, SEQ, DP)
            v = (mxu(x, wvh[h]) + bvh[h]).reshape(BATCH, SEQ, DP)

            s = jnp.einsum("bqd,bkd->bqk",
                           q.astype(jnp.bfloat16), k.astype(jnp.bfloat16),
                           preferred_element_type=jnp.float32)
            s = s * scale + attn_bias                        # (B, S, S) f32
            s = s - jnp.max(s, axis=-1, keepdims=True)
            p = jnp.exp(s)
            p = p * pl.reciprocal(jnp.sum(p, axis=-1, keepdims=True), approx=True)

            ctx = jnp.einsum("bqk,bkd->bqd",
                             p.astype(jnp.bfloat16), v.astype(jnp.bfloat16),
                             preferred_element_type=jnp.float32)
            attn_out = attn_out + mxu(ctx.reshape(BATCH * SEQ, DP), woh[h])

        h1 = layer_norm(x + attn_out, ln1g[...], ln1b[...])

        # ---- feed-forward ----
        ff = mxu(h1, w1[...]) + b1[...]
        # TODO(synk): HF BERT default is exact (erf) GELU; tanh approx used here.
        ff = jax.nn.gelu(ff, approximate=True)
        ff = mxu(ff, w2[...]) + b2[...]
        x = layer_norm(h1 + ff, ln2g[...], ln2b[...])

    # ---- CLS pooler + classifier, fused (row 0 of each sequence) ----
    cls = x.reshape(BATCH, SEQ, HP)[:, 0:1, :].reshape(BATCH, HP)
    pooled = jnp.tanh(mxu(cls, wp_ref[...]) + bp_ref[...])
    logits_ref[...] = mxu(pooled, wc_ref[...]) + bc_ref[...]      # (B, LP)


# ------------------------------ parameter init -----------------------------
def init_params(key):
    std = 0.02
    ks = iter(jax.random.split(key, 5 + 6 * NUM_LAYERS))

    def pad2(w, rows, cols):
        return jnp.pad(w, ((0, rows - w.shape[0]), (0, cols - w.shape[1])))

    def dense_bf16(k, rows, cols, pr, pc):
        w = jax.random.normal(k, (rows, cols), jnp.float32) * std
        return pad2(w, pr, pc).astype(jnp.bfloat16)

    def ln_pair():
        g = pad2(jnp.ones((1, HIDDEN), jnp.float32), 1, HP)
        b = jnp.zeros((1, HP), jnp.float32)
        return g, b

    def split_heads_cols(k):
        # (HIDDEN, HIDDEN) -> per-head (NH, HP, DP), output columns per head
        w = jax.random.normal(k, (HIDDEN, HIDDEN), jnp.float32) * std
        return jnp.stack([pad2(w[:, h * HEAD_DIM:(h + 1) * HEAD_DIM], HP, DP)
                          for h in range(NUM_HEADS)]).astype(jnp.bfloat16)

    def split_heads_rows(k):
        # (HIDDEN, HIDDEN) -> per-head (NH, DP, HP), input rows per head
        w = jax.random.normal(k, (HIDDEN, HIDDEN), jnp.float32) * std
        return jnp.stack([pad2(w[h * HEAD_DIM:(h + 1) * HEAD_DIM, :], DP, HP)
                          for h in range(NUM_HEADS)]).astype(jnp.bfloat16)

    vocab_total = VOCAB + NUM_ADDITIONAL_TOKENS
    emb_g, emb_b = ln_pair()
    params = {
        "word_emb": pad2(jax.random.normal(next(ks), (vocab_total, HIDDEN),
                                           jnp.float32) * std, vocab_total, HP),
        "pos_emb": pad2(jax.random.normal(next(ks), (SEQ, HIDDEN),
                                          jnp.float32) * std, SEQ, HP),
        "type_emb": pad2(jax.random.normal(next(ks), (2, HIDDEN),
                                           jnp.float32) * std, 2, HP),
        "emb_ln_g": emb_g,
        "emb_ln_b": emb_b,
        "wp": dense_bf16(next(ks), HIDDEN, HIDDEN, HP, HP),
        "bp": jnp.zeros((1, HP), jnp.float32),
        "wc": dense_bf16(next(ks), HIDDEN, NUM_LABELS, HP, LP),
        "bc": jnp.zeros((1, LP), jnp.float32),
        "layers": [],
    }
    for _ in range(NUM_LAYERS):
        ln1g, ln1b = ln_pair()
        ln2g, ln2b = ln_pair()
        layer = [
            split_heads_cols(next(ks)), jnp.zeros((NUM_HEADS, 1, DP), jnp.float32),  # wq, bq
            split_heads_cols(next(ks)), jnp.zeros((NUM_HEADS, 1, DP), jnp.float32),  # wk, bk
            split_heads_cols(next(ks)), jnp.zeros((NUM_HEADS, 1, DP), jnp.float32),  # wv, bv
            split_heads_rows(next(ks)), jnp.zeros((1, HP), jnp.float32),             # wo, bo
            ln1g, ln1b,                                                              # ln1
            dense_bf16(next(ks), HIDDEN, FFN, HP, FP), jnp.zeros((1, FP), jnp.float32),  # w1, b1
            dense_bf16(next(ks), FFN, HIDDEN, FP, HP), jnp.zeros((1, HP), jnp.float32),  # w2, b2
            ln2g, ln2b,                                                              # ln2
        ]
        params["layers"].append(layer)
    return params


# ------------------------------ full forward -------------------------------
@jax.jit
def model_forward(params, input_ids, attention_mask):
    B, S = input_ids.shape
    # TODO(synk): data-dependent token-embedding gather stays in plain JAX (glue, not the hot path).
    emb = (params["word_emb"][input_ids]
           + params["pos_emb"][None, :, :]
           + params["type_emb"][0][None, None, :])            # (B, S, HP), lane-padded
    emb = emb.reshape(B * S, HP).astype(jnp.float32)

    # additive attention bias: 0 where attended, -1e9 where padded
    attn_bias = ((attention_mask.astype(jnp.float32) - 1.0) * 1e9).reshape(B, 1, S)

    flat_args = [emb, attn_bias, params["emb_ln_g"], params["emb_ln_b"]]
    for layer in params["layers"]:
        flat_args.extend(layer)
    flat_args.extend([params["wp"], params["bp"], params["wc"], params["bc"]])

    logits_padded = pl.pallas_call(
        fused_forward_kernel,
        out_shape=jax.ShapeDtypeStruct((B, LP), jnp.float32),
        compiler_params=pltpu.CompilerParams(vmem_limit_bytes=32 * 1024 * 1024),
    )(*flat_args)
    return logits_padded[:, :NUM_LABELS]


if __name__ == "__main__":
    key = jax.random.PRNGKey(0)
    k_params, k_ids = jax.random.split(key)
    params = init_params(k_params)

    input_ids = jax.random.randint(
        k_ids, (BATCH, SEQ), 0, VOCAB + NUM_ADDITIONAL_TOKENS, dtype=jnp.int32)
    attention_mask = jnp.ones((BATCH, SEQ), jnp.int32)

    logits = model_forward(params, input_ids, attention_mask)
    logits = jax.block_until_ready(logits)
    assert logits.shape == (BATCH, NUM_LABELS)
    assert bool(jnp.all(jnp.isfinite(logits)))
    print("KERNEL_OK")
</pallas_src>

<mosaic_0001>
module attributes {stable_mosaic.version = 11 : i64} {
  func.func @fused_forward_kernel(%arg0: memref<16x128xf32, #tpu.memory_space<vmem>>, %arg1: memref<2x1x8xf32, #tpu.memory_space<vmem>>, %arg2: memref<1x128xf32, #tpu.memory_space<vmem>>, %arg3: memref<1x128xf32, #tpu.memory_space<vmem>>, %arg4: memref<2x128x128xbf16, #tpu.memory_space<vmem>>, %arg5: memref<2x1x128xf32, #tpu.memory_space<vmem>>, %arg6: memref<2x128x128xbf16, #tpu.memory_space<vmem>>, %arg7: memref<2x1x128xf32, #tpu.memory_space<vmem>>, %arg8: memref<2x128x128xbf16, #tpu.memory_space<vmem>>, %arg9: memref<2x1x128xf32, #tpu.memory_space<vmem>>, %arg10: memref<2x128x128xbf16, #tpu.memory_space<vmem>>, %arg11: memref<1x128xf32, #tpu.memory_space<vmem>>, %arg12: memref<1x128xf32, #tpu.memory_space<vmem>>, %arg13: memref<1x128xf32, #tpu.memory_space<vmem>>, %arg14: memref<128x128xbf16, #tpu.memory_space<vmem>>, %arg15: memref<1x128xf32, #tpu.memory_space<vmem>>, %arg16: memref<128x128xbf16, #tpu.memory_space<vmem>>, %arg17: memref<1x128xf32, #tpu.memory_space<vmem>>, %arg18: memref<1x128xf32, #tpu.memory_space<vmem>>, %arg19: memref<1x128xf32, #tpu.memory_space<vmem>>, %arg20: memref<2x128x128xbf16, #tpu.memory_space<vmem>>, %arg21: memref<2x1x128xf32, #tpu.memory_space<vmem>>, %arg22: memref<2x128x128xbf16, #tpu.memory_space<vmem>>, %arg23: memref<2x1x128xf32, #tpu.memory_space<vmem>>, %arg24: memref<2x128x128xbf16, #tpu.memory_space<vmem>>, %arg25: memref<2x1x128xf32, #tpu.memory_space<vmem>>, %arg26: memref<2x128x128xbf16, #tpu.memory_space<vmem>>, %arg27: memref<1x128xf32, #tpu.memory_space<vmem>>, %arg28: memref<1x128xf32, #tpu.memory_space<vmem>>, %arg29: memref<1x128xf32, #tpu.memory_space<vmem>>, %arg30: memref<128x128xbf16, #tpu.memory_space<vmem>>, %arg31: memref<1x128xf32, #tpu.memory_space<vmem>>, %arg32: memref<128x128xbf16, #tpu.memory_space<vmem>>, %arg33: memref<1x128xf32, #tpu.memory_space<vmem>>, %arg34: memref<1x128xf32, #tpu.memory_space<vmem>>, %arg35: memref<1x128xf32, #tpu.memory_space<vmem>>, %arg36: memref<128x128xbf16, #tpu.memory_space<vmem>>, %arg37: memref<1x128xf32, #tpu.memory_space<vmem>>, %arg38: memref<128x128xbf16, #tpu.memory_space<vmem>>, %arg39: memref<1x128xf32, #tpu.memory_space<vmem>>, %arg40: memref<2x128xf32, #tpu.memory_space<vmem>>) attributes {dimension_semantics = [], scalar_prefetch = 0 : i64, scratch_operands = 0 : i64, tpu.core_type = #tpu.core_type<tc>} {
    %0 = tpu.iota {dimensions = array<i32: 1>} : vector<1x128xi32>
    %c32_i32 = arith.constant 32 : i32
    %1 = vector.broadcast %c32_i32 : i32 to vector<1x128xi32>
    %2 = arith.cmpi slt, %0, %1 : vector<1x128xi32>
    %3 = arith.extui %2 : vector<1x128xi1> to vector<1x128xi32>
    %4 = arith.sitofp %3 : vector<1x128xi32> to vector<1x128xf32>
    %c0 = arith.constant 0 : index
    %c0_0 = arith.constant 0 : index
    %5 = vector.load %arg0[%c0, %c0_0] : memref<16x128xf32, #tpu.memory_space<vmem>>, vector<16x128xf32>
    %c0_1 = arith.constant 0 : index
    %c0_2 = arith.constant 0 : index
    %6 = vector.load %arg2[%c0_1, %c0_2] : memref<1x128xf32, #tpu.memory_space<vmem>>, vector<1x128xf32>
    %c0_3 = arith.constant 0 : index
    %c0_4 = arith.constant 0 : index
    %7 = vector.load %arg3[%c0_3, %c0_4] : memref<1x128xf32, #tpu.memory_space<vmem>>, vector<1x128xf32>
    %cst = arith.constant dense<0.000000e+00> : vector<16xf32>
    %8 = vector.multi_reduction <add>, %5, %cst [1] : vector<16x128xf32> to vector<16xf32>
    %9 = vector.shape_cast %8 : vector<16xf32> to vector<16x1xf32>
    %cst_5 = arith.constant 3.125000e-02 : f32
    %10 = vector.broadcast %cst_5 : f32 to vector<16x1xf32>
    %11 = arith.mulf %9, %10 : vector<16x1xf32>
    %12 = vector.broadcast %11 : vector<16x1xf32> to vector<16x128xf32>
    %13 = arith.subf %5, %12 : vector<16x128xf32>
    %14 = vector.broadcast %4 : vector<1x128xf32> to vector<16x128xf32>
    %15 = arith.mulf %13, %14 : vector<16x128xf32>
    %16 = arith.mulf %15, %15 : vector<16x128xf32>
    %cst_6 = arith.constant dense<0.000000e+00> : vector<16xf32>
    %17 = vector.multi_reduction <add>, %16, %cst_6 [1] : vector<16x128xf32> to vector<16xf32>
    %18 = vector.shape_cast %17 : vector<16xf32> to vector<16x1xf32>
    %cst_7 = arith.constant 3.125000e-02 : f32
    %19 = vector.broadcast %cst_7 : f32 to vector<16x1xf32>
    %20 = arith.mulf %18, %19 : vector<16x1xf32>
    %cst_8 = arith.constant 9.99999996E-13 : f32
    %21 = vector.broadcast %cst_8 : f32 to vector<16x1xf32>
    %22 = arith.addf %20, %21 : vector<16x1xf32>
    %23 = math.rsqrt %22 : vector<16x1xf32>
    %24 = vector.broadcast %23 : vector<16x1xf32> to vector<16x128xf32>
    %25 = arith.mulf %15, %24 : vector<16x128xf32>
    %26 = vector.broadcast %6 : vector<1x128xf32> to vector<16x128xf32>
    %27 = arith.mulf %25, %26 : vector<16x128xf32>
    %28 = vector.broadcast %7 : vector<1x128xf32> to vector<16x128xf32>
    %29 = arith.addf %27, %28 : vector<16x128xf32>
    %c0_9 = arith.constant 0 : index
    %c0_10 = arith.constant 0 : index
    %c0_11 = arith.constant 0 : index
    %30 = vector.load %arg1[%c0_9, %c0_10, %c0_11] : memref<2x1x8xf32, #tpu.memory_space<vmem>>, vector<2x1x8xf32>
    %c0_12 = arith.constant 0 : index
    %c0_13 = arith.constant 0 : index
    %31 = vector.load %arg11[%c0_12, %c0_13] : memref<1x128xf32, #tpu.memory_space<vmem>>, vector<1x128xf32>
    %c0_14 = arith.constant 0 : index
    %c0_15 = arith.constant 0 : index
    %c0_16 = arith.constant 0 : index
    %32 = vector.load %arg4[%c0_14, %c0_15, %c0_16] : memref<2x128x128xbf16, #tpu.memory_space<vmem>>, vector<1x128x128xbf16>
    %33 = vector.shape_cast %32 : vector<1x128x128xbf16> to vector<128x128xbf16>
    %34 = arith.truncf %29 : vector<16x128xf32> to vector<16x128xbf16>
    %cst_17 = arith.constant dense<0.000000e+00> : vector<16x128xf32>
    %35 = tpu.matmul %34, %33, %cst_17 {dimension_numbers = #tpu.dot_dimension_numbers<[1], [0], [0], [1], [0, 0, 1, 1], [], []>} : vector<16x128xbf16>, vector<128x128xbf16>, vector<16x128xf32> -> vector<16x128xf32>
    %c0_18 = arith.constant 0 : index
    %c0_19 = arith.constant 0 : index
    %c0_20 = arith.constant 0 : index
    %36 = vector.load %arg5[%c0_18, %c0_19, %c0_20] : memref<2x1x128xf32, #tpu.memory_space<vmem>>, vector<1x1x128xf32>
    %37 = vector.shape_cast %36 : vector<1x1x128xf32> to vector<1x128xf32>
    %38 = vector.broadcast %37 : vector<1x128xf32> to vector<16x128xf32>
    %39 = arith.addf %35, %38 : vector<16x128xf32>
    %40 = vector.shape_cast %39 : vector<16x128xf32> to vector<2x8x128xf32>
    %c0_21 = arith.constant 0 : index
    %c0_22 = arith.constant 0 : index
    %c0_23 = arith.constant 0 : index
    %41 = vector.load %arg6[%c0_21, %c0_22, %c0_23] : memref<2x128x128xbf16, #tpu.memory_space<vmem>>, vector<1x128x128xbf16>
    %42 = vector.shape_cast %41 : vector<1x128x128xbf16> to vector<128x128xbf16>
    %43 = arith.truncf %29 : vector<16x128xf32> to vector<16x128xbf16>
    %cst_24 = arith.constant dense<0.000000e+00> : vector<16x128xf32>
    %44 = tpu.matmul %43, %42, %cst_24 {dimension_numbers = #tpu.dot_dimension_numbers<[1], [0], [0], [1], [0, 0, 1, 1], [], []>} : vector<16x128xbf16>, vector<128x128xbf16>, vector<16x128xf32> -> vector<16x128xf32>
    %c0_25 = arith.constant 0 : index
    %c0_26 = arith.constant 0 : index
    %c0_27 = arith.constant 0 : index
    %45 = vector.load %arg7[%c0_25, %c0_26, %c0_27] : memref<2x1x128xf32, #tpu.memory_space<vmem>>, vector<1x1x128xf32>
    %46 = vector.shape_cast %45 : vector<1x1x128xf32> to vector<1x128xf32>
    %47 = vector.broadcast %46 : vector<1x128xf32> to vector<16x128xf32>
    %48 = arith.addf %44, %47 : vector<16x128xf32>
    %49 = vector.shape_cast %48 : vector<16x128xf32> to vector<2x8x128xf32>
    %c0_28 = arith.constant 0 : index
    %c0_29 = arith.constant 0 : index
    %c0_30 = arith.constant 0 : index
    %50 = vector.load %arg8[%c0_28, %c0_29, %c0_30] : memref<2x128x128xbf16, #tpu.memory_space<vmem>>, vector<1x128x128xbf16>
    %51 = vector.shape_cast %50 : vector<1x128x128xbf16> to vector<128x128xbf16>
    %52 = arith.truncf %29 : vector<16x128xf32> to vector<16x128xbf16>
    %cst_31 = arith.constant dense<0.000000e+00> : vector<16x128xf32>
    %53 = tpu.matmul %52, %51, %cst_31 {dimension_numbers = #tpu.dot_dimension_numbers<[1], [0], [0], [1], [0, 0, 1, 1], [], []>} : vector<16x128xbf16>, vector<128x128xbf16>, vector<16x128xf32> -> vector<16x128xf32>
    %c0_32 = arith.constant 0 : index
    %c0_33 = arith.constant 0 : index
    %c0_34 = arith.constant 0 : index
    %54 = vector.load %arg9[%c0_32, %c0_33, %c0_34] : memref<2x1x128xf32, #tpu.memory_space<vmem>>, vector<1x1x128xf32>
    %55 = vector.shape_cast %54 : vector<1x1x128xf32> to vector<1x128xf32>
    %56 = vector.broadcast %55 : vector<1x128xf32> to vector<16x128xf32>
    %57 = arith.addf %53, %56 : vector<16x128xf32>
    %58 = vector.shape_cast %57 : vector<16x128xf32> to vector<2x8x128xf32>
    %59 = arith.truncf %40 : vector<2x8x128xf32> to vector<2x8x128xbf16>
    %60 = arith.truncf %49 : vector<2x8x128xf32> to vector<2x8x128xbf16>
    "tpu.trace_start"() <{level = 10 : i32, message = "bqd,bkd->bqk"}> : () -> ()
    %cst_35 = arith.constant dense<0.000000e+00> : vector<2x8x8xf32>
    %61 = tpu.matmul %59, %60, %cst_35 {dimension_numbers = #tpu.dot_dimension_numbers<[2], [2], [1], [1], [0, 0, 0, 1, 1, 1], [0], [0]>} : vector<2x8x128xbf16>, vector<2x8x128xbf16>, vector<2x8x8xf32> -> vector<2x8x8xf32>
    "tpu.trace_stop"() : () -> ()
    %cst_36 = arith.constant 2.500000e-01 : f32
    %62 = vector.broadcast %cst_36 : f32 to vector<2x8x8xf32>
    %63 = arith.mulf %61, %62 : vector<2x8x8xf32>
    %64 = vector.broadcast %30 : vector<2x1x8xf32> to vector<2x8x8xf32>
    %65 = arith.addf %63, %64 : vector<2x8x8xf32>
    %cst_37 = arith.constant dense<0xFF800000> : vector<2x8xf32>
    %66 = vector.multi_reduction <maximumf>, %65, %cst_37 [2] : vector<2x8x8xf32> to vector<2x8xf32>
    %67 = vector.shape_cast %66 : vector<2x8xf32> to vector<2x8x1xf32>
    %68 = vector.broadcast %67 : vector<2x8x1xf32> to vector<2x8x8xf32>
    %69 = arith.subf %65, %68 : vector<2x8x8xf32>
    %70 = math.exp %69 : vector<2x8x8xf32>
    %cst_38 = arith.constant dense<0.000000e+00> : vector<2x8xf32>
    %71 = vector.multi_reduction <add>, %70, %cst_38 [2] : vector<2x8x8xf32> to vector<2x8xf32>
    %72 = vector.shape_cast %71 : vector<2x8xf32> to vector<2x8x1xf32>
    %73 = tpu.reciprocal %72 {approx = true} : vector<2x8x1xf32> -> vector<2x8x1xf32>
    %74 = vector.broadcast %73 : vector<2x8x1xf32> to vector<2x8x8xf32>
    %75 = arith.mulf %70, %74 : vector<2x8x8xf32>
    %76 = arith.truncf %75 : vector<2x8x8xf32> to vector<2x8x8xbf16>
    %77 = arith.truncf %58 : vector<2x8x128xf32> to vector<2x8x128xbf16>
    "tpu.trace_start"() <{level = 10 : i32, message = "bqk,bkd->bqd"}> : () -> ()
    %cst_39 = arith.constant dense<0.000000e+00> : vector<2x8x128xf32>
    %78 = tpu.matmul %76, %77, %cst_39 {dimension_numbers = #tpu.dot_dimension_numbers<[2], [1], [1], [2], [0, 0, 0, 1, 1, 2], [0], [0]>} : vector<2x8x8xbf16>, vector<2x8x128xbf16>, vector<2x8x128xf32> -> vector<2x8x128xf32>
    "tpu.trace_stop"() : () -> ()
    %79 = vector.shape_cast %78 : vector<2x8x128xf32> to vector<16x128xf32>
    %c0_40 = arith.constant 0 : index
    %c0_41 = arith.constant 0 : index
    %c0_42 = arith.constant 0 : index
    %80 = vector.load %arg10[%c0_40, %c0_41, %c0_42] : memref<2x128x128xbf16, #tpu.memory_space<vmem>>, vector<1x128x128xbf16>
    %81 = vector.shape_cast %80 : vector<1x128x128xbf16> to vector<128x128xbf16>
    %82 = arith.truncf %79 : vector<16x128xf32> to vector<16x128xbf16>
    %cst_43 = arith.constant dense<0.000000e+00> : vector<16x128xf32>
    %83 = tpu.matmul %82, %81, %cst_43 {dimension_numbers = #tpu.dot_dimension_numbers<[1], [0], [0], [1], [0, 0, 1, 1], [], []>} : vector<16x128xbf16>, vector<128x128xbf16>, vector<16x128xf32> -> vector<16x128xf32>
    %84 = vector.broadcast %31 : vector<1x128xf32> to vector<16x128xf32>
    %85 = arith.addf %84, %83 : vector<16x128xf32>
    %c1 = arith.constant 1 : index
    %c0_44 = arith.constant 0 : index
    %c0_45 = arith.constant 0 : index
    %86 = vector.load %arg4[%c1, %c0_44, %c0_45] : memref<2x128x128xbf16, #tpu.memory_space<vmem>>, vector<1x128x128xbf16>
    %87 = vector.shape_cast %86 : vector<1x128x128xbf16> to vector<128x128xbf16>
    %88 = arith.truncf %29 : vector<16x128xf32> to vector<16x128xbf16>
    %cst_46 = arith.constant dense<0.000000e+00> : vector<16x128xf32>
    %89 = tpu.matmul %88, %87, %cst_46 {dimension_numbers = #tpu.dot_dimension_numbers<[1], [0], [0], [1], [0, 0, 1, 1], [], []>} : vector<16x128xbf16>, vector<128x128xbf16>, vector<16x128xf32> -> vector<16x128xf32>
    %c1_47 = arith.constant 1 : index
    %c0_48 = arith.constant 0 : index
    %c0_49 = arith.constant 0 : index
    %90 = vector.load %arg5[%c1_47, %c0_48, %c0_49] : memref<2x1x128xf32, #tpu.memory_space<vmem>>, vector<1x1x128xf32>
    %91 = vector.shape_cast %90 : vector<1x1x128xf32> to vector<1x128xf32>
    %92 = vector.broadcast %91 : vector<1x128xf32> to vector<16x128xf32>
    %93 = arith.addf %89, %92 : vector<16x128xf32>
    %94 = vector.shape_cast %93 : vector<16x128xf32> to vector<2x8x128xf32>
    %c1_50 = arith.constant 1 : index
    %c0_51 = arith.constant 0 : index
    %c0_52 = arith.constant 0 : index
    %95 = vector.load %arg6[%c1_50, %c0_51, %c0_52] : memref<2x128x128xbf16, #tpu.memory_space<vmem>>, vector<1x128x128xbf16>
    %96 = vector.shape_cast %95 : vector<1x128x128xbf16> to vector<128x128xbf16>
    %97 = arith.truncf %29 : vector<16x128xf32> to vector<16x128xbf16>
    %cst_53 = arith.constant dense<0.000000e+00> : vector<16x128xf32>
    %98 = tpu.matmul %97, %96, %cst_53 {dimension_numbers = #tpu.dot_dimension_numbers<[1], [0], [0], [1], [0, 0, 1, 1], [], []>} : vector<16x128xbf16>, vector<128x128xbf16>, vector<16x128xf32> -> vector<16x128xf32>
    %c1_54 = arith.constant 1 : index
    %c0_55 = arith.constant 0 : index
    %c0_56 = arith.constant 0 : index
    %99 = vector.load %arg7[%c1_54, %c0_55, %c0_56] : memref<2x1x128xf32, #tpu.memory_space<vmem>>, vector<1x1x128xf32>
    %100 = vector.shape_cast %99 : vector<1x1x128xf32> to vector<1x128xf32>
    %101 = vector.broadcast %100 : vector<1x128xf32> to vector<16x128xf32>
    %102 = arith.addf %98, %101 : vector<16x128xf32>
    %103 = vector.shape_cast %102 : vector<16x128xf32> to vector<2x8x128xf32>
    %c1_57 = arith.constant 1 : index
    %c0_58 = arith.constant 0 : index
    %c0_59 = arith.constant 0 : index
    %104 = vector.load %arg8[%c1_57, %c0_58, %c0_59] : memref<2x128x128xbf16, #tpu.memory_space<vmem>>, vector<1x128x128xbf16>
    %105 = vector.shape_cast %104 : vector<1x128x128xbf16> to vector<128x128xbf16>
    %106 = arith.truncf %29 : vector<16x128xf32> to vector<16x128xbf16>
    %cst_60 = arith.constant dense<0.000000e+00> : vector<16x128xf32>
    %107 = tpu.matmul %106, %105, %cst_60 {dimension_numbers = #tpu.dot_dimension_numbers<[1], [0], [0], [1], [0, 0, 1, 1], [], []>} : vector<16x128xbf16>, vector<128x128xbf16>, vector<16x128xf32> -> vector<16x128xf32>
    %c1_61 = arith.constant 1 : index
    %c0_62 = arith.constant 0 : index
    %c0_63 = arith.constant 0 : index
    %108 = vector.load %arg9[%c1_61, %c0_62, %c0_63] : memref<2x1x128xf32, #tpu.memory_space<vmem>>, vector<1x1x128xf32>
    %109 = vector.shape_cast %108 : vector<1x1x128xf32> to vector<1x128xf32>
    %110 = vector.broadcast %109 : vector<1x128xf32> to vector<16x128xf32>
    %111 = arith.addf %107, %110 : vector<16x128xf32>
    %112 = vector.shape_cast %111 : vector<16x128xf32> to vector<2x8x128xf32>
    %113 = arith.truncf %94 : vector<2x8x128xf32> to vector<2x8x128xbf16>
    %114 = arith.truncf %103 : vector<2x8x128xf32> to vector<2x8x128xbf16>
    "tpu.trace_start"() <{level = 10 : i32, message = "bqd,bkd->bqk"}> : () -> ()
    %cst_64 = arith.constant dense<0.000000e+00> : vector<2x8x8xf32>
    %115 = tpu.matmul %113, %114, %cst_64 {dimension_numbers = #tpu.dot_dimension_numbers<[2], [2], [1], [1], [0, 0, 0, 1, 1, 1], [0], [0]>} : vector<2x8x128xbf16>, vector<2x8x128xbf16>, vector<2x8x8xf32> -> vector<2x8x8xf32>
    "tpu.trace_stop"() : () -> ()
    %cst_65 = arith.constant 2.500000e-01 : f32
    %116 = vector.broadcast %cst_65 : f32 to vector<2x8x8xf32>
    %117 = arith.mulf %115, %116 : vector<2x8x8xf32>
    %118 = vector.broadcast %30 : vector<2x1x8xf32> to vector<2x8x8xf32>
    %119 = arith.addf %117, %118 : vector<2x8x8xf32>
    %cst_66 = arith.constant dense<0xFF800000> : vector<2x8xf32>
    %120 = vector.multi_reduction <maximumf>, %119, %cst_66 [2] : vector<2x8x8xf32> to vector<2x8xf32>
    %121 = vector.shape_cast %120 : vector<2x8xf32> to vector<2x8x1xf32>
    %122 = vector.broadcast %121 : vector<2x8x1xf32> to vector<2x8x8xf32>
    %123 = arith.subf %119, %122 : vector<2x8x8xf32>
    %124 = math.exp %123 : vector<2x8x8xf32>
    %cst_67 = arith.constant dense<0.000000e+00> : vector<2x8xf32>
    %125 = vector.multi_reduction <add>, %124, %cst_67 [2] : vector<2x8x8xf32> to vector<2x8xf32>
    %126 = vector.shape_cast %125 : vector<2x8xf32> to vector<2x8x1xf32>
    %127 = tpu.reciprocal %126 {approx = true} : vector<2x8x1xf32> -> vector<2x8x1xf32>
    %128 = vector.broadcast %127 : vector<2x8x1xf32> to vector<2x8x8xf32>
    %129 = arith.mulf %124, %128 : vector<2x8x8xf32>
    %130 = arith.truncf %129 : vector<2x8x8xf32> to vector<2x8x8xbf16>
    %131 = arith.truncf %112 : vector<2x8x128xf32> to vector<2x8x128xbf16>
    "tpu.trace_start"() <{level = 10 : i32, message = "bqk,bkd->bqd"}> : () -> ()
    %cst_68 = arith.constant dense<0.000000e+00> : vector<2x8x128xf32>
    %132 = tpu.matmul %130, %131, %cst_68 {dimension_numbers = #tpu.dot_dimension_numbers<[2], [1], [1], [2], [0, 0, 0, 1, 1, 2], [0], [0]>} : vector<2x8x8xbf16>, vector<2x8x128xbf16>, vector<2x8x128xf32> -> vector<2x8x128xf32>
    "tpu.trace_stop"() : () -> ()
    %133 = vector.shape_cast %132 : vector<2x8x128xf32> to vector<16x128xf32>
    %c1_69 = arith.constant 1 : index
    %c0_70 = arith.constant 0 : index
    %c0_71 = arith.constant 0 : index
    %134 = vector.load %arg10[%c1_69, %c0_70, %c0_71] : memref<2x128x128xbf16, #tpu.memory_space<vmem>>, vector<1x128x128xbf16>
    %135 = vector.shape_cast %134 : vector<1x128x128xbf16> to vector<128x128xbf16>
    %136 = arith.truncf %133 : vector<16x128xf32> to vector<16x128xbf16>
    %cst_72 = arith.constant dense<0.000000e+00> : vector<16x128xf32>
    %137 = tpu.matmul %136, %135, %cst_72 {dimension_numbers = #tpu.dot_dimension_numbers<[1], [0], [0], [1], [0, 0, 1, 1], [], []>} : vector<16x128xbf16>, vector<128x128xbf16>, vector<16x128xf32> -> vector<16x128xf32>
    %138 = arith.addf %85, %137 : vector<16x128xf32>
    %139 = arith.addf %29, %138 : vector<16x128xf32>
    %c0_73 = arith.constant 0 : index
    %c0_74 = arith.constant 0 : index
    %140 = vector.load %arg12[%c0_73, %c0_74] : memref<1x128xf32, #tpu.memory_space<vmem>>, vector<1x128xf32>
    %c0_75 = arith.constant 0 : index
    %c0_76 = arith.constant 0 : index
    %141 = vector.load %arg13[%c0_75, %c0_76] : memref<1x128xf32, #tpu.memory_space<vmem>>, vector<1x128xf32>
    %cst_77 = arith.constant dense<0.000000e+00> : vector<16xf32>
    %142 = vector.multi_reduction <add>, %139, %cst_77 [1] : vector<16x128xf32> to vector<16xf32>
    %143 = vector.shape_cast %142 : vector<16xf32> to vector<16x1xf32>
    %cst_78 = arith.constant 3.125000e-02 : f32
    %144 = vector.broadcast %cst_78 : f32 to vector<16x1xf32>
    %145 = arith.mulf %143, %144 : vector<16x1xf32>
    %146 = vector.broadcast %145 : vector<16x1xf32> to vector<16x128xf32>
    %147 = arith.subf %139, %146 : vector<16x128xf32>
    %148 = vector.broadcast %4 : vector<1x128xf32> to vector<16x128xf32>
    %149 = arith.mulf %147, %148 : vector<16x128xf32>
    %150 = arith.mulf %149, %149 : vector<16x128xf32>
    %cst_79 = arith.constant dense<0.000000e+00> : vector<16xf32>
    %151 = vector.multi_reduction <add>, %150, %cst_79 [1] : vector<16x128xf32> to vector<16xf32>
    %152 = vector.shape_cast %151 : vector<16xf32> to vector<16x1xf32>
    %cst_80 = arith.constant 3.125000e-02 : f32
    %153 = vector.broadcast %cst_80 : f32 to vector<16x1xf32>
    %154 = arith.mulf %152, %153 : vector<16x1xf32>
    %cst_81 = arith.constant 9.99999996E-13 : f32
    %155 = vector.broadcast %cst_81 : f32 to vector<16x1xf32>
    %156 = arith.addf %154, %155 : vector<16x1xf32>
    %157 = math.rsqrt %156 : vector<16x1xf32>
    %158 = vector.broadcast %157 : vector<16x1xf32> to vector<16x128xf32>
    %159 = arith.mulf %149, %158 : vector<16x128xf32>
    %160 = vector.broadcast %140 : vector<1x128xf32> to vector<16x128xf32>
    %161 = arith.mulf %159, %160 : vector<16x128xf32>
    %162 = vector.broadcast %141 : vector<1x128xf32> to vector<16x128xf32>
    %163 = arith.addf %161, %162 : vector<16x128xf32>
    %c0_82 = arith.constant 0 : index
    %c0_83 = arith.constant 0 : index
    %164 = vector.load %arg14[%c0_82, %c0_83] : memref<128x128xbf16, #tpu.memory_space<vmem>>, vector<128x128xbf16>
    %165 = arith.truncf %163 : vector<16x128xf32> to vector<16x128xbf16>
    %cst_84 = arith.constant dense<0.000000e+00> : vector<16x128xf32>
    %166 = tpu.matmul %165, %164, %cst_84 {dimension_numbers = #tpu.dot_dimension_numbers<[1], [0], [0], [1], [0, 0, 1, 1], [], []>} : vector<16x128xbf16>, vector<128x128xbf16>, vector<16x128xf32> -> vector<16x128xf32>
    %c0_85 = arith.constant 0 : index
    %c0_86 = arith.constant 0 : index
    %167 = vector.load %arg15[%c0_85, %c0_86] : memref<1x128xf32, #tpu.memory_space<vmem>>, vector<1x128xf32>
    %168 = vector.broadcast %167 : vector<1x128xf32> to vector<16x128xf32>
    %169 = arith.addf %166, %168 : vector<16x128xf32>
    %170 = arith.mulf %169, %169 : vector<16x128xf32>
    %171 = arith.mulf %169, %170 : vector<16x128xf32>
    %cst_87 = arith.constant 4.471500e-02 : f32
    %172 = vector.broadcast %cst_87 : f32 to vector<16x128xf32>
    %173 = arith.mulf %172, %171 : vector<16x128xf32>
    %174 = arith.addf %169, %173 : vector<16x128xf32>
    %cst_88 = arith.constant 0.797884583 : f32
    %175 = vector.broadcast %cst_88 : f32 to vector<16x128xf32>
    %176 = arith.mulf %175, %174 : vector<16x128xf32>
    %177 = math.tanh %176 : vector<16x128xf32>
    %cst_89 = arith.constant 1.000000e+00 : f32
    %178 = vector.broadcast %cst_89 : f32 to vector<16x128xf32>
    %179 = arith.addf %178, %177 : vector<16x128xf32>
    %cst_90 = arith.constant 5.000000e-01 : f32
    %180 = vector.broadcast %cst_90 : f32 to vector<16x128xf32>
    %181 = arith.mulf %180, %179 : vector<16x128xf32>
    %182 = arith.mulf %169, %181 : vector<16x128xf32>
    %c0_91 = arith.constant 0 : index
    %c0_92 = arith.constant 0 : index
    %183 = vector.load %arg16[%c0_91, %c0_92] : memref<128x128xbf16, #tpu.memory_space<vmem>>, vector<128x128xbf16>
    %184 = arith.truncf %182 : vector<16x128xf32> to vector<16x128xbf16>
    %cst_93 = arith.constant dense<0.000000e+00> : vector<16x128xf32>
    %185 = tpu.matmul %184, %183, %cst_93 {dimension_numbers = #tpu.dot_dimension_numbers<[1], [0], [0], [1], [0, 0, 1, 1], [], []>} : vector<16x128xbf16>, vector<128x128xbf16>, vector<16x128xf32> -> vector<16x128xf32>
    %c0_94 = arith.constant 0 : index
    %c0_95 = arith.constant 0 : index
    %186 = vector.load %arg17[%c0_94, %c0_95] : memref<1x128xf32, #tpu.memory_space<vmem>>, vector<1x128xf32>
    %187 = vector.broadcast %186 : vector<1x128xf32> to vector<16x128xf32>
    %188 = arith.addf %185, %187 : vector<16x128xf32>
    %189 = arith.addf %163, %188 : vector<16x128xf32>
    %c0_96 = arith.constant 0 : index
    %c0_97 = arith.constant 0 : index
    %190 = vector.load %arg18[%c0_96, %c0_97] : memref<1x128xf32, #tpu.memory_space<vmem>>, vector<1x128xf32>
    %c0_98 = arith.constant 0 : index
    %c0_99 = arith.constant 0 : index
    %191 = vector.load %arg19[%c0_98, %c0_99] : memref<1x128xf32, #tpu.memory_space<vmem>>, vector<1x128xf32>
    %cst_100 = arith.constant dense<0.000000e+00> : vector<16xf32>
    %192 = vector.multi_reduction <add>, %189, %cst_100 [1] : vector<16x128xf32> to vector<16xf32>
    %193 = vector.shape_cast %192 : vector<16xf32> to vector<16x1xf32>
    %cst_101 = arith.constant 3.125000e-02 : f32
    %194 = vector.broadcast %cst_101 : f32 to vector<16x1xf32>
    %195 = arith.mulf %193, %194 : vector<16x1xf32>
    %196 = vector.broadcast %195 : vector<16x1xf32> to vector<16x128xf32>
    %197 = arith.subf %189, %196 : vector<16x128xf32>
    %198 = vector.broadcast %4 : vector<1x128xf32> to vector<16x128xf32>
    %199 = arith.mulf %197, %198 : vector<16x128xf32>
    %200 = arith.mulf %199, %199 : vector<16x128xf32>
    %cst_102 = arith.constant dense<0.000000e+00> : vector<16xf32>
    %201 = vector.multi_reduction <add>, %200, %cst_102 [1] : vector<16x128xf32> to vector<16xf32>
    %202 = vector.shape_cast %201 : vector<16xf32> to vector<16x1xf32>
    %cst_103 = arith.constant 3.125000e-02 : f32
    %203 = vector.broadcast %cst_103 : f32 to vector<16x1xf32>
    %204 = arith.mulf %202, %203 : vector<16x1xf32>
    %cst_104 = arith.constant 9.99999996E-13 : f32
    %205 = vector.broadcast %cst_104 : f32 to vector<16x1xf32>
    %206 = arith.addf %204, %205 : vector<16x1xf32>
    %207 = math.rsqrt %206 : vector<16x1xf32>
    %208 = vector.broadcast %207 : vector<16x1xf32> to vector<16x128xf32>
    %209 = arith.mulf %199, %208 : vector<16x128xf32>
    %210 = vector.broadcast %190 : vector<1x128xf32> to vector<16x128xf32>
    %211 = arith.mulf %209, %210 : vector<16x128xf32>
    %212 = vector.broadcast %191 : vector<1x128xf32> to vector<16x128xf32>
    %213 = arith.addf %211, %212 : vector<16x128xf32>
    %c0_105 = arith.constant 0 : index
    %c0_106 = arith.constant 0 : index
    %214 = vector.load %arg27[%c0_105, %c0_106] : memref<1x128xf32, #tpu.memory_space<vmem>>, vector<1x128xf32>
    %c0_107 = arith.constant 0 : index
    %c0_108 = arith.constant 0 : index
    %c0_109 = arith.constant 0 : index
    %215 = vector.load %arg20[%c0_107, %c0_108, %c0_109] : memref<2x128x128xbf16, #tpu.memory_space<vmem>>, vector<1x128x128xbf16>
    %216 = vector.shape_cast %215 : vector<1x128x128xbf16> to vector<128x128xbf16>
    %217 = arith.truncf %213 : vector<16x128xf32> to vector<16x128xbf16>
    %cst_110 = arith.constant dense<0.000000e+00> : vector<16x128xf32>
    %218 = tpu.matmul %217, %216, %cst_110 {dimension_numbers = #tpu.dot_dimension_numbers<[1], [0], [0], [1], [0, 0, 1, 1], [], []>} : vector<16x128xbf16>, vector<128x128xbf16>, vector<16x128xf32> -> vector<16x128xf32>
    %c0_111 = arith.constant 0 : index
    %c0_112 = arith.constant 0 : index
    %c0_113 = arith.constant 0 : index
    %219 = vector.load %arg21[%c0_111, %c0_112, %c0_113] : memref<2x1x128xf32, #tpu.memory_space<vmem>>, vector<1x1x128xf32>
    %220 = vector.shape_cast %219 : vector<1x1x128xf32> to vector<1x128xf32>
    %221 = vector.broadcast %220 : vector<1x128xf32> to vector<16x128xf32>
    %222 = arith.addf %218, %221 : vector<16x128xf32>
    %223 = vector.shape_cast %222 : vector<16x128xf32> to vector<2x8x128xf32>
    %c0_114 = arith.constant 0 : index
    %c0_115 = arith.constant 0 : index
    %c0_116 = arith.constant 0 : index
    %224 = vector.load %arg22[%c0_114, %c0_115, %c0_116] : memref<2x128x128xbf16, #tpu.memory_space<vmem>>, vector<1x128x128xbf16>
    %225 = vector.shape_cast %224 : vector<1x128x128xbf16> to vector<128x128xbf16>
    %226 = arith.truncf %213 : vector<16x128xf32> to vector<16x128xbf16>
    %cst_117 = arith.constant dense<0.000000e+00> : vector<16x128xf32>
    %227 = tpu.matmul %226, %225, %cst_117 {dimension_numbers = #tpu.dot_dimension_numbers<[1], [0], [0], [1], [0, 0, 1, 1], [], []>} : vector<16x128xbf16>, vector<128x128xbf16>, vector<16x128xf32> -> vector<16x128xf32>
    %c0_118 = arith.constant 0 : index
    %c0_119 = arith.constant 0 : index
    %c0_120 = arith.constant 0 : index
    %228 = vector.load %arg23[%c0_118, %c0_119, %c0_120] : memref<2x1x128xf32, #tpu.memory_space<vmem>>, vector<1x1x128xf32>
    %229 = vector.shape_cast %228 : vector<1x1x128xf32> to vector<1x128xf32>
    %230 = vector.broadcast %229 : vector<1x128xf32> to vector<16x128xf32>
    %231 = arith.addf %227, %230 : vector<16x128xf32>
    %232 = vector.shape_cast %231 : vector<16x128xf32> to vector<2x8x128xf32>
    %c0_121 = arith.constant 0 : index
    %c0_122 = arith.constant 0 : index
    %c0_123 = arith.constant 0 : index
    %233 = vector.load %arg24[%c0_121, %c0_122, %c0_123] : memref<2x128x128xbf16, #tpu.memory_space<vmem>>, vector<1x128x128xbf16>
    %234 = vector.shape_cast %233 : vector<1x128x128xbf16> to vector<128x128xbf16>
    %235 = arith.truncf %213 : vector<16x128xf32> to vector<16x128xbf16>
    %cst_124 = arith.constant dense<0.000000e+00> : vector<16x128xf32>
    %236 = tpu.matmul %235, %234, %cst_124 {dimension_numbers = #tpu.dot_dimension_numbers<[1], [0], [0], [1], [0, 0, 1, 1], [], []>} : vector<16x128xbf16>, vector<128x128xbf16>, vector<16x128xf32> -> vector<16x128xf32>
    %c0_125 = arith.constant 0 : index
    %c0_126 = arith.constant 0 : index
    %c0_127 = arith.constant 0 : index
    %237 = vector.load %arg25[%c0_125, %c0_126, %c0_127] : memref<2x1x128xf32, #tpu.memory_space<vmem>>, vector<1x1x128xf32>
    %238 = vector.shape_cast %237 : vector<1x1x128xf32> to vector<1x128xf32>
    %239 = vector.broadcast %238 : vector<1x128xf32> to vector<16x128xf32>
    %240 = arith.addf %236, %239 : vector<16x128xf32>
    %241 = vector.shape_cast %240 : vector<16x128xf32> to vector<2x8x128xf32>
    %242 = arith.truncf %223 : vector<2x8x128xf32> to vector<2x8x128xbf16>
    %243 = arith.truncf %232 : vector<2x8x128xf32> to vector<2x8x128xbf16>
    "tpu.trace_start"() <{level = 10 : i32, message = "bqd,bkd->bqk"}> : () -> ()
    %cst_128 = arith.constant dense<0.000000e+00> : vector<2x8x8xf32>
    %244 = tpu.matmul %242, %243, %cst_128 {dimension_numbers = #tpu.dot_dimension_numbers<[2], [2], [1], [1], [0, 0, 0, 1, 1, 1], [0], [0]>} : vector<2x8x128xbf16>, vector<2x8x128xbf16>, vector<2x8x8xf32> -> vector<2x8x8xf32>
    "tpu.trace_stop"() : () -> ()
    %cst_129 = arith.constant 2.500000e-01 : f32
    %245 = vector.broadcast %cst_129 : f32 to vector<2x8x8xf32>
    %246 = arith.mulf %244, %245 : vector<2x8x8xf32>
    %247 = vector.broadcast %30 : vector<2x1x8xf32> to vector<2x8x8xf32>
    %248 = arith.addf %246, %247 : vector<2x8x8xf32>
    %cst_130 = arith.constant dense<0xFF800000> : vector<2x8xf32>
    %249 = vector.multi_reduction <maximumf>, %248, %cst_130 [2] : vector<2x8x8xf32> to vector<2x8xf32>
    %250 = vector.shape_cast %249 : vector<2x8xf32> to vector<2x8x1xf32>
    %251 = vector.broadcast %250 : vector<2x8x1xf32> to vector<2x8x8xf32>
    %252 = arith.subf %248, %251 : vector<2x8x8xf32>
    %253 = math.exp %252 : vector<2x8x8xf32>
    %cst_131 = arith.constant dense<0.000000e+00> : vector<2x8xf32>
    %254 = vector.multi_reduction <add>, %253, %cst_131 [2] : vector<2x8x8xf32> to vector<2x8xf32>
    %255 = vector.shape_cast %254 : vector<2x8xf32> to vector<2x8x1xf32>
    %256 = tpu.reciprocal %255 {approx = true} : vector<2x8x1xf32> -> vector<2x8x1xf32>
    %257 = vector.broadcast %256 : vector<2x8x1xf32> to vector<2x8x8xf32>
    %258 = arith.mulf %253, %257 : vector<2x8x8xf32>
    %259 = arith.truncf %258 : vector<2x8x8xf32> to vector<2x8x8xbf16>
    %260 = arith.truncf %241 : vector<2x8x128xf32> to vector<2x8x128xbf16>
    "tpu.trace_start"() <{level = 10 : i32, message = "bqk,bkd->bqd"}> : () -> ()
    %cst_132 = arith.constant dense<0.000000e+00> : vector<2x8x128xf32>
    %261 = tpu.matmul %259, %260, %cst_132 {dimension_numbers = #tpu.dot_dimension_numbers<[2], [1], [1], [2], [0, 0, 0, 1, 1, 2], [0], [0]>} : vector<2x8x8xbf16>, vector<2x8x128xbf16>, vector<2x8x128xf32> -> vector<2x8x128xf32>
    "tpu.trace_stop"() : () -> ()
    %262 = vector.shape_cast %261 : vector<2x8x128xf32> to vector<16x128xf32>
    %c0_133 = arith.constant 0 : index
    %c0_134 = arith.constant 0 : index
    %c0_135 = arith.constant 0 : index
    %263 = vector.load %arg26[%c0_133, %c0_134, %c0_135] : memref<2x128x128xbf16, #tpu.memory_space<vmem>>, vector<1x128x128xbf16>
    %264 = vector.shape_cast %263 : vector<1x128x128xbf16> to vector<128x128xbf16>
    %265 = arith.truncf %262 : vector<16x128xf32> to vector<16x128xbf16>
    %cst_136 = arith.constant dense<0.000000e+00> : vector<16x128xf32>
    %266 = tpu.matmul %265, %264, %cst_136 {dimension_numbers = #tpu.dot_dimension_numbers<[1], [0], [0], [1], [0, 0, 1, 1], [], []>} : vector<16x128xbf16>, vector<128x128xbf16>, vector<16x128xf32> -> vector<16x128xf32>
    %267 = vector.broadcast %214 : vector<1x128xf32> to vector<16x128xf32>
    %268 = arith.addf %267, %266 : vector<16x128xf32>
    %c1_137 = arith.constant 1 : index
    %c0_138 = arith.constant 0 : index
    %c0_139 = arith.constant 0 : index
    %269 = vector.load %arg20[%c1_137, %c0_138, %c0_139] : memref<2x128x128xbf16, #tpu.memory_space<vmem>>, vector<1x128x128xbf16>
    %270 = vector.shape_cast %269 : vector<1x128x128xbf16> to vector<128x128xbf16>
    %271 = arith.truncf %213 : vector<16x128xf32> to vector<16x128xbf16>
    %cst_140 = arith.constant dense<0.000000e+00> : vector<16x128xf32>
    %272 = tpu.matmul %271, %270, %cst_140 {dimension_numbers = #tpu.dot_dimension_numbers<[1], [0], [0], [1], [0, 0, 1, 1], [], []>} : vector<16x128xbf16>, vector<128x128xbf16>, vector<16x128xf32> -> vector<16x128xf32>
    %c1_141 = arith.constant 1 : index
    %c0_142 = arith.constant 0 : index
    %c0_143 = arith.constant 0 : index
    %273 = vector.load %arg21[%c1_141, %c0_142, %c0_143] : memref<2x1x128xf32, #tpu.memory_space<vmem>>, vector<1x1x128xf32>
    %274 = vector.shape_cast %273 : vector<1x1x128xf32> to vector<1x128xf32>
    %275 = vector.broadcast %274 : vector<1x128xf32> to vector<16x128xf32>
    %276 = arith.addf %272, %275 : vector<16x128xf32>
    %277 = vector.shape_cast %276 : vector<16x128xf32> to vector<2x8x128xf32>
    %c1_144 = arith.constant 1 : index
    %c0_145 = arith.constant 0 : index
    %c0_146 = arith.constant 0 : index
    %278 = vector.load %arg22[%c1_144, %c0_145, %c0_146] : memref<2x128x128xbf16, #tpu.memory_space<vmem>>, vector<1x128x128xbf16>
    %279 = vector.shape_cast %278 : vector<1x128x128xbf16> to vector<128x128xbf16>
    %280 = arith.truncf %213 : vector<16x128xf32> to vector<16x128xbf16>
    %cst_147 = arith.constant dense<0.000000e+00> : vector<16x128xf32>
    %281 = tpu.matmul %280, %279, %cst_147 {dimension_numbers = #tpu.dot_dimension_numbers<[1], [0], [0], [1], [0, 0, 1, 1], [], []>} : vector<16x128xbf16>, vector<128x128xbf16>, vector<16x128xf32> -> vector<16x128xf32>
    %c1_148 = arith.constant 1 : index
    %c0_149 = arith.constant 0 : index
    %c0_150 = arith.constant 0 : index
    %282 = vector.load %arg23[%c1_148, %c0_149, %c0_150] : memref<2x1x128xf32, #tpu.memory_space<vmem>>, vector<1x1x128xf32>
    %283 = vector.shape_cast %282 : vector<1x1x128xf32> to vector<1x128xf32>
    %284 = vector.broadcast %283 : vector<1x128xf32> to vector<16x128xf32>
    %285 = arith.addf %281, %284 : vector<16x128xf32>
    %286 = vector.shape_cast %285 : vector<16x128xf32> to vector<2x8x128xf32>
    %c1_151 = arith.constant 1 : index
    %c0_152 = arith.constant 0 : index
    %c0_153 = arith.constant 0 : index
    %287 = vector.load %arg24[%c1_151, %c0_152, %c0_153] : memref<2x128x128xbf16, #tpu.memory_space<vmem>>, vector<1x128x128xbf16>
    %288 = vector.shape_cast %287 : vector<1x128x128xbf16> to vector<128x128xbf16>
    %289 = arith.truncf %213 : vector<16x128xf32> to vector<16x128xbf16>
    %cst_154 = arith.constant dense<0.000000e+00> : vector<16x128xf32>
    %290 = tpu.matmul %289, %288, %cst_154 {dimension_numbers = #tpu.dot_dimension_numbers<[1], [0], [0], [1], [0, 0, 1, 1], [], []>} : vector<16x128xbf16>, vector<128x128xbf16>, vector<16x128xf32> -> vector<16x128xf32>
    %c1_155 = arith.constant 1 : index
    %c0_156 = arith.constant 0 : index
    %c0_157 = arith.constant 0 : index
    %291 = vector.load %arg25[%c1_155, %c0_156, %c0_157] : memref<2x1x128xf32, #tpu.memory_space<vmem>>, vector<1x1x128xf32>
    %292 = vector.shape_cast %291 : vector<1x1x128xf32> to vector<1x128xf32>
    %293 = vector.broadcast %292 : vector<1x128xf32> to vector<16x128xf32>
    %294 = arith.addf %290, %293 : vector<16x128xf32>
    %295 = vector.shape_cast %294 : vector<16x128xf32> to vector<2x8x128xf32>
    %296 = arith.truncf %277 : vector<2x8x128xf32> to vector<2x8x128xbf16>
    %297 = arith.truncf %286 : vector<2x8x128xf32> to vector<2x8x128xbf16>
    "tpu.trace_start"() <{level = 10 : i32, message = "bqd,bkd->bqk"}> : () -> ()
    %cst_158 = arith.constant dense<0.000000e+00> : vector<2x8x8xf32>
    %298 = tpu.matmul %296, %297, %cst_158 {dimension_numbers = #tpu.dot_dimension_numbers<[2], [2], [1], [1], [0, 0, 0, 1, 1, 1], [0], [0]>} : vector<2x8x128xbf16>, vector<2x8x128xbf16>, vector<2x8x8xf32> -> vector<2x8x8xf32>
    "tpu.trace_stop"() : () -> ()
    %cst_159 = arith.constant 2.500000e-01 : f32
    %299 = vector.broadcast %cst_159 : f32 to vector<2x8x8xf32>
    %300 = arith.mulf %298, %299 : vector<2x8x8xf32>
    %301 = vector.broadcast %30 : vector<2x1x8xf32> to vector<2x8x8xf32>
    %302 = arith.addf %300, %301 : vector<2x8x8xf32>
    %cst_160 = arith.constant dense<0xFF800000> : vector<2x8xf32>
    %303 = vector.multi_reduction <maximumf>, %302, %cst_160 [2] : vector<2x8x8xf32> to vector<2x8xf32>
    %304 = vector.shape_cast %303 : vector<2x8xf32> to vector<2x8x1xf32>
    %305 = vector.broadcast %304 : vector<2x8x1xf32> to vector<2x8x8xf32>
    %306 = arith.subf %302, %305 : vector<2x8x8xf32>
    %307 = math.exp %306 : vector<2x8x8xf32>
    %cst_161 = arith.constant dense<0.000000e+00> : vector<2x8xf32>
    %308 = vector.multi_reduction <add>, %307, %cst_161 [2] : vector<2x8x8xf32> to vector<2x8xf32>
    %309 = vector.shape_cast %308 : vector<2x8xf32> to vector<2x8x1xf32>
    %310 = tpu.reciprocal %309 {approx = true} : vector<2x8x1xf32> -> vector<2x8x1xf32>
    %311 = vector.broadcast %310 : vector<2x8x1xf32> to vector<2x8x8xf32>
    %312 = arith.mulf %307, %311 : vector<2x8x8xf32>
    %313 = arith.truncf %312 : vector<2x8x8xf32> to vector<2x8x8xbf16>
    %314 = arith.truncf %295 : vector<2x8x128xf32> to vector<2x8x128xbf16>
    "tpu.trace_start"() <{level = 10 : i32, message = "bqk,bkd->bqd"}> : () -> ()
    %cst_162 = arith.constant dense<0.000000e+00> : vector<2x8x128xf32>
    %315 = tpu.matmul %313, %314, %cst_162 {dimension_numbers = #tpu.dot_dimension_numbers<[2], [1], [1], [2], [0, 0, 0, 1, 1, 2], [0], [0]>} : vector<2x8x8xbf16>, vector<2x8x128xbf16>, vector<2x8x128xf32> -> vector<2x8x128xf32>
    "tpu.trace_stop"() : () -> ()
    %316 = vector.shape_cast %315 : vector<2x8x128xf32> to vector<16x128xf32>
    %c1_163 = arith.constant 1 : index
    %c0_164 = arith.constant 0 : index
    %c0_165 = arith.constant 0 : index
    %317 = vector.load %arg26[%c1_163, %c0_164, %c0_165] : memref<2x128x128xbf16, #tpu.memory_space<vmem>>, vector<1x128x128xbf16>
    %318 = vector.shape_cast %317 : vector<1x128x128xbf16> to vector<128x128xbf16>
    %319 = arith.truncf %316 : vector<16x128xf32> to vector<16x128xbf16>
    %cst_166 = arith.constant dense<0.000000e+00> : vector<16x128xf32>
    %320 = tpu.matmul %319, %318, %cst_166 {dimension_numbers = #tpu.dot_dimension_numbers<[1], [0], [0], [1], [0, 0, 1, 1], [], []>} : vector<16x128xbf16>, vector<128x128xbf16>, vector<16x128xf32> -> vector<16x128xf32>
    %321 = arith.addf %268, %320 : vector<16x128xf32>
    %322 = arith.addf %213, %321 : vector<16x128xf32>
    %c0_167 = arith.constant 0 : index
    %c0_168 = arith.constant 0 : index
    %323 = vector.load %arg28[%c0_167, %c0_168] : memref<1x128xf32, #tpu.memory_space<vmem>>, vector<1x128xf32>
    %c0_169 = arith.constant 0 : index
    %c0_170 = arith.constant 0 : index
    %324 = vector.load %arg29[%c0_169, %c0_170] : memref<1x128xf32, #tpu.memory_space<vmem>>, vector<1x128xf32>
    %cst_171 = arith.constant dense<0.000000e+00> : vector<16xf32>
    %325 = vector.multi_reduction <add>, %322, %cst_171 [1] : vector<16x128xf32> to vector<16xf32>
    %326 = vector.shape_cast %325 : vector<16xf32> to vector<16x1xf32>
    %cst_172 = arith.constant 3.125000e-02 : f32
    %327 = vector.broadcast %cst_172 : f32 to vector<16x1xf32>
    %328 = arith.mulf %326, %327 : vector<16x1xf32>
    %329 = vector.broadcast %328 : vector<16x1xf32> to vector<16x128xf32>
    %330 = arith.subf %322, %329 : vector<16x128xf32>
    %331 = vector.broadcast %4 : vector<1x128xf32> to vector<16x128xf32>
    %332 = arith.mulf %330, %331 : vector<16x128xf32>
    %333 = arith.mulf %332, %332 : vector<16x128xf32>
    %cst_173 = arith.constant dense<0.000000e+00> : vector<16xf32>
    %334 = vector.multi_reduction <add>, %333, %cst_173 [1] : vector<16x128xf32> to vector<16xf32>
    %335 = vector.shape_cast %334 : vector<16xf32> to vector<16x1xf32>
    %cst_174 = arith.constant 3.125000e-02 : f32
    %336 = vector.broadcast %cst_174 : f32 to vector<16x1xf32>
    %337 = arith.mulf %335, %336 : vector<16x1xf32>
    %cst_175 = arith.constant 9.99999996E-13 : f32
    %338 = vector.broadcast %cst_175 : f32 to vector<16x1xf32>
    %339 = arith.addf %337, %338 : vector<16x1xf32>
    %340 = math.rsqrt %339 : vector<16x1xf32>
    %341 = vector.broadcast %340 : vector<16x1xf32> to vector<16x128xf32>
    %342 = arith.mulf %332, %341 : vector<16x128xf32>
    %343 = vector.broadcast %323 : vector<1x128xf32> to vector<16x128xf32>
    %344 = arith.mulf %342, %343 : vector<16x128xf32>
    %345 = vector.broadcast %324 : vector<1x128xf32> to vector<16x128xf32>
    %346 = arith.addf %344, %345 : vector<16x128xf32>
    %c0_176 = arith.constant 0 : index
    %c0_177 = arith.constant 0 : index
    %347 = vector.load %arg30[%c0_176, %c0_177] : memref<128x128xbf16, #tpu.memory_space<vmem>>, vector<128x128xbf16>
    %348 = arith.truncf %346 : vector<16x128xf32> to vector<16x128xbf16>
    %cst_178 = arith.constant dense<0.000000e+00> : vector<16x128xf32>
    %349 = tpu.matmul %348, %347, %cst_178 {dimension_numbers = #tpu.dot_dimension_numbers<[1], [0], [0], [1], [0, 0, 1, 1], [], []>} : vector<16x128xbf16>, vector<128x128xbf16>, vector<16x128xf32> -> vector<16x128xf32>
    %c0_179 = arith.constant 0 : index
    %c0_180 = arith.constant 0 : index
    %350 = vector.load %arg31[%c0_179, %c0_180] : memref<1x128xf32, #tpu.memory_space<vmem>>, vector<1x128xf32>
    %351 = vector.broadcast %350 : vector<1x128xf32> to vector<16x128xf32>
    %352 = arith.addf %349, %351 : vector<16x128xf32>
    %353 = arith.mulf %352, %352 : vector<16x128xf32>
    %354 = arith.mulf %352, %353 : vector<16x128xf32>
    %cst_181 = arith.constant 4.471500e-02 : f32
    %355 = vector.broadcast %cst_181 : f32 to vector<16x128xf32>
    %356 = arith.mulf %355, %354 : vector<16x128xf32>
    %357 = arith.addf %352, %356 : vector<16x128xf32>
    %cst_182 = arith.constant 0.797884583 : f32
    %358 = vector.broadcast %cst_182 : f32 to vector<16x128xf32>
    %359 = arith.mulf %358, %357 : vector<16x128xf32>
    %360 = math.tanh %359 : vector<16x128xf32>
    %cst_183 = arith.constant 1.000000e+00 : f32
    %361 = vector.broadcast %cst_183 : f32 to vector<16x128xf32>
    %362 = arith.addf %361, %360 : vector<16x128xf32>
    %cst_184 = arith.constant 5.000000e-01 : f32
    %363 = vector.broadcast %cst_184 : f32 to vector<16x128xf32>
    %364 = arith.mulf %363, %362 : vector<16x128xf32>
    %365 = arith.mulf %352, %364 : vector<16x128xf32>
    %c0_185 = arith.constant 0 : index
    %c0_186 = arith.constant 0 : index
    %366 = vector.load %arg32[%c0_185, %c0_186] : memref<128x128xbf16, #tpu.memory_space<vmem>>, vector<128x128xbf16>
    %367 = arith.truncf %365 : vector<16x128xf32> to vector<16x128xbf16>
    %cst_187 = arith.constant dense<0.000000e+00> : vector<16x128xf32>
    %368 = tpu.matmul %367, %366, %cst_187 {dimension_numbers = #tpu.dot_dimension_numbers<[1], [0], [0], [1], [0, 0, 1, 1], [], []>} : vector<16x128xbf16>, vector<128x128xbf16>, vector<16x128xf32> -> vector<16x128xf32>
    %c0_188 = arith.constant 0 : index
    %c0_189 = arith.constant 0 : index
    %369 = vector.load %arg33[%c0_188, %c0_189] : memref<1x128xf32, #tpu.memory_space<vmem>>, vector<1x128xf32>
    %370 = vector.broadcast %369 : vector<1x128xf32> to vector<16x128xf32>
    %371 = arith.addf %368, %370 : vector<16x128xf32>
    %372 = arith.addf %346, %371 : vector<16x128xf32>
    %c0_190 = arith.constant 0 : index
    %c0_191 = arith.constant 0 : index
    %373 = vector.load %arg34[%c0_190, %c0_191] : memref<1x128xf32, #tpu.memory_space<vmem>>, vector<1x128xf32>
    %c0_192 = arith.constant 0 : index
    %c0_193 = arith.constant 0 : index
    %374 = vector.load %arg35[%c0_192, %c0_193] : memref<1x128xf32, #tpu.memory_space<vmem>>, vector<1x128xf32>
    %cst_194 = arith.constant dense<0.000000e+00> : vector<16xf32>
    %375 = vector.multi_reduction <add>, %372, %cst_194 [1] : vector<16x128xf32> to vector<16xf32>
    %376 = vector.shape_cast %375 : vector<16xf32> to vector<16x1xf32>
    %cst_195 = arith.constant 3.125000e-02 : f32
    %377 = vector.broadcast %cst_195 : f32 to vector<16x1xf32>
    %378 = arith.mulf %376, %377 : vector<16x1xf32>
    %379 = vector.broadcast %378 : vector<16x1xf32> to vector<16x128xf32>
    %380 = arith.subf %372, %379 : vector<16x128xf32>
    %381 = vector.broadcast %4 : vector<1x128xf32> to vector<16x128xf32>
    %382 = arith.mulf %380, %381 : vector<16x128xf32>
    %383 = arith.mulf %382, %382 : vector<16x128xf32>
    %cst_196 = arith.constant dense<0.000000e+00> : vector<16xf32>
    %384 = vector.multi_reduction <add>, %383, %cst_196 [1] : vector<16x128xf32> to vector<16xf32>
    %385 = vector.shape_cast %384 : vector<16xf32> to vector<16x1xf32>
    %cst_197 = arith.constant 3.125000e-02 : f32
    %386 = vector.broadcast %cst_197 : f32 to vector<16x1xf32>
    %387 = arith.mulf %385, %386 : vector<16x1xf32>
    %cst_198 = arith.constant 9.99999996E-13 : f32
    %388 = vector.broadcast %cst_198 : f32 to vector<16x1xf32>
    %389 = arith.addf %387, %388 : vector<16x1xf32>
    %390 = math.rsqrt %389 : vector<16x1xf32>
    %391 = vector.broadcast %390 : vector<16x1xf32> to vector<16x128xf32>
    %392 = arith.mulf %382, %391 : vector<16x128xf32>
    %393 = vector.broadcast %373 : vector<1x128xf32> to vector<16x128xf32>
    %394 = arith.mulf %392, %393 : vector<16x128xf32>
    %395 = vector.broadcast %374 : vector<1x128xf32> to vector<16x128xf32>
    %396 = arith.addf %394, %395 : vector<16x128xf32>
    %397 = vector.shape_cast %396 : vector<16x128xf32> to vector<2x8x128xf32>
    %398 = vector.extract_strided_slice %397 {offsets = [0, 0, 0], sizes = [2, 1, 128], strides = [1, 1, 1]} : vector<2x8x128xf32> to vector<2x1x128xf32>
    %399 = vector.shape_cast %398 : vector<2x1x128xf32> to vector<2x128xf32>
    %c0_199 = arith.constant 0 : index
    %c0_200 = arith.constant 0 : index
    %400 = vector.load %arg36[%c0_199, %c0_200] : memref<128x128xbf16, #tpu.memory_space<vmem>>, vector<128x128xbf16>
    %401 = arith.truncf %399 : vector<2x128xf32> to vector<2x128xbf16>
    %cst_201 = arith.constant dense<0.000000e+00> : vector<2x128xf32>
    %402 = tpu.matmul %401, %400, %cst_201 {dimension_numbers = #tpu.dot_dimension_numbers<[1], [0], [0], [1], [0, 0, 1, 1], [], []>} : vector<2x128xbf16>, vector<128x128xbf16>, vector<2x128xf32> -> vector<2x128xf32>
    %c0_202 = arith.constant 0 : index
    %c0_203 = arith.constant 0 : index
    %403 = vector.load %arg37[%c0_202, %c0_203] : memref<1x128xf32, #tpu.memory_space<vmem>>, vector<1x128xf32>
    %404 = vector.broadcast %403 : vector<1x128xf32> to vector<2x128xf32>
    %405 = arith.addf %402, %404 : vector<2x128xf32>
    %406 = math.tanh %405 : vector<2x128xf32>
    %c0_204 = arith.constant 0 : index
    %c0_205 = arith.constant 0 : index
    %407 = vector.load %arg38[%c0_204, %c0_205] : memref<128x128xbf16, #tpu.memory_space<vmem>>, vector<128x128xbf16>
    %408 = arith.truncf %406 : vector<2x128xf32> to vector<2x128xbf16>
    %cst_206 = arith.constant dense<0.000000e+00> : vector<2x128xf32>
    %409 = tpu.matmul %408, %407, %cst_206 {dimension_numbers = #tpu.dot_dimension_numbers<[1], [0], [0], [1], [0, 0, 1, 1], [], []>} : vector<2x128xbf16>, vector<128x128xbf16>, vector<2x128xf32> -> vector<2x128xf32>
    %c0_207 = arith.constant 0 : index
    %c0_208 = arith.constant 0 : index
    %410 = vector.load %arg39[%c0_207, %c0_208] : memref<1x128xf32, #tpu.memory_space<vmem>>, vector<1x128xf32>
    %411 = vector.broadcast %410 : vector<1x128xf32> to vector<2x128xf32>
    %412 = arith.addf %409, %411 : vector<2x128xf32>
    %c0_209 = arith.constant 0 : index
    %c0_210 = arith.constant 0 : index
    %413 = vector.load %arg40[%c0_209, %c0_210] : memref<2x128xf32, #tpu.memory_space<vmem>>, vector<2x128xf32>
    tpu.vector_store %arg40[%c0_209, %c0_210], %412 {strides = array<i32>} : memref<2x128xf32, #tpu.memory_space<vmem>>, vector<2x128xf32>,
    return
  }
}

</mosaic_0001>

<bundles_post_ra>
// kernel: model_forward.1
= control target key start
LH: loop header
LB: loop body
LE: loop exit
PB: predicated region body
PF: predicated region fallthrough
CT: control target
= control target key end

     0   :  { %s6295_s6 = smov 1   ;;  %s6296_s10 = smov 2   ;;  %s7266_s0 = inlined_call_operand.smem [shape: u32[41], index: -1, kind: input, shape index: {}] }
   0x1   :  { %s6381_s5 = sld [smem:[%s7266_s0]]   ;;  %s6297_s14 = smov 3  }
   0x2   :  { %s6386_s9 = sld [smem:[%s7266_s0 + %s6295_s6]]   ;;  %s6298_s18 = smov 4  }
   0x3   :  { %s6391_s13 = sld [smem:[%s7266_s0 + %s6296_s10]]   ;;  %s6299_s22 = smov 5  }
   0x4   :  { %s6396_s17 = sld [smem:[%s7266_s0 + %s6297_s14]]   ;;  %s6300_s26 = smov 6  }
   0x5   :  { %s6401_s21 = sld [smem:[%s7266_s0 + %s6298_s18]]   ;;  %s6301_s30 = smov 7  }
   0x6   :  { %s6406_s25 = sld [smem:[%s7266_s0 + %s6299_s22]]   ;;  %s6302_s4 = smov 8  }
   0x7   :  { %7288 = sst [smem:[#allocation68_spill]] %s6381_s5  ;;  %s6303_s10 = smov 9  }
   0x8   :  { %7289 = sst [smem:[#allocation69_spill]] %s6386_s9  ;;  %s6304_s15 = smov 10  }
   0x9   :  { %7290 = sst [smem:[#allocation70_spill]] %s6391_s13  ;;  %s6305_s20 = smov 11  }
   0xa   :  { %7291 = sst [smem:[#allocation71_spill]] %s6396_s17  ;;  %s6307_s1 = smov 13  }
   0xb   :  { %7292 = sst [smem:[#allocation72_spill]] %s6401_s21  ;;  %s6308_s7 = smov 14  }
   0xc   :  { %7293 = sst [smem:[#allocation73_spill]] %s6406_s25  ;;  %s6310_s22 = smov 16  }
   0xd   :  { %s6411_s29 = sld [smem:[%s7266_s0 + %s6300_s26]]   ;;  %s6306_s26 = smov 12  }
   0xe   :  { %s6416_s3 = sld [smem:[%s7266_s0 + %s6301_s30]]   ;;  %s6311_s28 = smov 17  }
   0xf   :  { %s6421_s8 = sld [smem:[%s7266_s0 + %s6302_s4]]  }
  0x10   :  { %s6426_s14 = sld [smem:[%s7266_s0 + %s6303_s10]]  }
  0x11   :  { %s6431_s19 = sld [smem:[%s7266_s0 + %s6304_s15]]   ;;  %s6309_s15 = smov 15  }
  0x12   :  { %s6436_s24 = sld [smem:[%s7266_s0 + %s6305_s20]]  }
  0x13   :  { %7294 = sst [smem:[#allocation74_spill]] %s6411_s29 }
  0x14   :  { %s6441_s30 = sld [smem:[%s7266_s0 + %s6306_s26]]  }
  0x15   :  { %7295 = sst [smem:[#allocation75_spill]] %s6421_s8 }
  0x16   :  { %s6446_s6 = sld [smem:[%s7266_s0 + %s6307_s1]]  }
  0x17   :  { %7296 = sst [smem:[#allocation76_spill]] %s6431_s19 }
  0x18   :  { %s6451_s12 = sld [smem:[%s7266_s0 + %s6308_s7]]   ;;  %s6312_s7 = smov 18  }
  0x19   :  { %s6456_s20 = sld [smem:[%s7266_s0 + %s6309_s15]]   ;;  %s6313_s15 = smov 19  }
  0x1a   :  { %7297 = sst [smem:[#allocation77_spill]] %s6441_s30 }
  0x1b   :  { %s6461_s27 = sld [smem:[%s7266_s0 + %s6310_s22]]   ;;  %s6314_s22 = smov 20  }
  0x1c   :  { %s6466_s4 = sld [smem:[%s7266_s0 + %s6311_s28]]   ;;  %s6315_s28 = smov 21  }
  0x1d   :  { %s6476_s9 = sld [smem:[%s7266_s0 + %s6313_s15]]   ;;  %s6317_s15 = smov 23  }
  0x1e   :  { %7298 = sst [smem:[#allocation78_spill]] %s6451_s12 }
  0x1f   :  { %7299 = sst [smem:[#allocation79_spill]] %s6456_s20 }
  0x20   :  { %s6471_s12 = sld [smem:[%s7266_s0 + %s6312_s7]]   ;;  %s6316_s7 = smov 22  }
  0x21   :  { %s6481_s17 = sld [smem:[%s7266_s0 + %s6314_s22]]   ;;  %s6318_s22 = smov 24  }
  0x22   :  { %7300 = sst [smem:[#allocation80_spill]] %s6466_s4 }
  0x23   :  { %7301 = sst [smem:[#allocation81_spill]] %s6476_s9 }
  0x24   :  { %s6486_s13 = sld [smem:[%s7266_s0 + %s6315_s28]]   ;;  %s6319_s28 = smov 25  }
  0x25   :  { %s6491_s29 = sld [smem:[%s7266_s0 + %s6316_s7]]   ;;  %s6320_s7 = smov 26  }
  0x26   :  { %s6496_s21 = sld [smem:[%s7266_s0 + %s6317_s15]]   ;;  %s6321_s15 = smov 27  }
  0x27   :  { %s6501_s5 = sld [smem:[%s7266_s0 + %s6318_s22]]   ;;  %s6322_s22 = smov 28  }
  0x28   :  { %s6511_s9 = sld [smem:[%s7266_s0 + %s6320_s7]]   ;;  %s6324_s7 = smov 30  }
  0x29   :  { %s6521_s4 = sld [smem:[%s7266_s0 + %s6322_s22]]   ;;  %s6326_s22 = smov 32  }
  0x2a   :  { %7302 = sst [smem:[#allocation82_spill]] %s6486_s13 }
  0x2b   :  { %s6506_s13 = sld [smem:[%s7266_s0 + %s6319_s28]]   ;;  %s6323_s28 = smov 29  }
  0x2c   :  { %7303 = sst [smem:[#allocation83_spill]] %s6496_s21 }
  0x2d   :  { %s6516_s21 = sld [smem:[%s7266_s0 + %s6321_s15]]   ;;  %s6325_s15 = smov 31  }
  0x2e   :  { %s6531_s20 = sld [smem:[%s7266_s0 + %s6324_s7]]   ;;  %s6328_s7 = smov 34  }
  0x2f   :  { %s6541_s30 = sld [smem:[%s7266_s0 + %s6326_s22]]   ;;  %s6330_s22 = smov 36  }
  0x30   :  { %s6551_s19 = sld [smem:[%s7266_s0 + %s6328_s7]]   ;;  %s6332_s7 = smov 38  }
  0x31   :  { %7304 = sst [smem:[#allocation84_spill]] %s6506_s13 }
  0x32   :  { %s6526_s13 = sld [smem:[%s7266_s0 + %s6323_s28]]   ;;  %s6327_s28 = smov 33  }
  0x33   :  { %7305 = sst [smem:[#allocation85_spill]] %s6516_s21 }
  0x34   :  { %s6536_s21 = sld [smem:[%s7266_s0 + %s6325_s15]]   ;;  %s6329_s15 = smov 35  }
  0x35   :  { %s6561_s8 = sld [smem:[%s7266_s0 + %s6330_s22]]   ;;  %s6334_s22 = smov 40  }
  0x36   :  { %s6571_s25 = sld [smem:[%s7266_s0 + %s6332_s7]]  }
  0x38   :  { %7306 = sst [smem:[#allocation86_spill]] %s6526_s13 }
  0x39   :  { %s6546_s13 = sld [smem:[%s7266_s0 + %s6327_s28]]   ;;  %s6331_s28 = smov 37  }
  0x3a   :  { %7307 = sst [smem:[#allocation87_spill]] %s6536_s21 }
  0x3b   :  { %s6556_s21 = sld [smem:[%s7266_s0 + %s6329_s15]]   ;;  %s6333_s15 = smov 39  }
  0x3c   :  { %7310 = sst [smem:[#allocation90_spill]] %s6561_s8 }
  0x3d   :  { %s6581_s8 = sld [smem:[%s7266_s0 + %s6334_s22]]  }
  0x3f   :  { %7308 = sst [smem:[#allocation88_spill]] %s6546_s13 }
  0x40   :  { %s6566_s13 = sld [smem:[%s7266_s0 + %s6331_s28]]  }
  0x41   :  { %7309 = sst [smem:[#allocation89_spill]] %s6556_s21 }
  0x42   :  { %s6576_s21 = sld [smem:[%s7266_s0 + %s6333_s15]]  }
  0x43   :  { %86 = vsyncpa [#allocation3], 0 }
  0x44   :  { %87 = vsyncpa [#allocation6], 0 }
  0x45   :  { %88 = vsyncpa [#allocation9], 0 }
  0x46   :  { %89 = vsyncpa [#allocation12], 0 }
  0x47   :  { %90 = vsyncpa [#allocation15], 0 }
  0x48   :  { %91 = vsyncpa [#allocation18], 0 }
  0x49   :  { %92 = vsyncpa [#allocation21], 0 }
  0x4a   :  { %93 = vsyncpa [#allocation24], 0 }
  0x4b   :  { %94 = vsyncpa [#allocation27], 0 }
  0x4c   :  { %95 = vsyncpa [#allocation30], 0 }
  0x4d   :  { %96 = vsyncpa [#allocation33], 0 }
  0x4e   :  { %97 = vsyncpa [#allocation36], 0 }
  0x4f   :  { %98 = vsyncpa [#allocation39], 0 }
  0x50   :  { %99 = vsyncpa [#allocation42], 0 }
  0x51   :  { %100 = vsyncpa [#allocation45], 0 }
  0x52   :  { %101 = vsyncpa [#allocation48], 0 }
  0x53   :  { %102 = vsyncpa [#allocation4], 0  ;;  %s6335_s0 = smov [#allocation5]   ;;  %s6336_s1 = smov [#allocation8]  }
  0x54   :  { %s132_s28 = sshll.u32 %s6335_s0, 4  ;;  %s156_s2 = sshll.u32 %s6336_s1, 4  ;;  %s133_s28 = int_to_ptr.vmem [resolvable:$true] %s132_s28  ;;  %s6583_s2 = int_to_ptr.vmem [resolvable:$true] %s156_s2 }
  0x55   :  { %s5557_s7 = scalar_lea.hbm %s6416_s3, 32 }
  0x56   :  { %p5558_p0 = scmp.ne.s32.totalorder %s6416_s3, %s5557_s7  ;;  %p5561_p1 = scmp.lt.u32.totalorder %s5557_s7, %s6416_s3 }
  0x58   :  { %p5563_p2 = pnand %p5561_p1, %p5558_p0 }
  0x5a   :  { %5566 = shalt.err (!%p5563_p2)
}
  0x5b   :  { %s5567_s10 = scalar_lea.vmem %s133_s28, 32  ;;  %p5572_p4 = scmp.lt.s32.totalorder %s133_s28, %s133_s28 }
  0x5c   :  { %p5568_p3 = scmp.ne.s32.totalorder %s133_s28, %s5567_s10  ;;  %p5573_p5 = scmp.lt.s32.totalorder %s5567_s10, %s5567_s10 }
  0x5e   :  { %p5574_p6 = por %p5573_p5, %p5572_p4 }
  0x60   :  { %p5575_p7 = pnand %p5574_p6, %p5568_p3 }
  0x62   :  { %5578 = shalt.err (!%p5575_p7)
}
  0x63   :  { %s6337_s11 = smov 16   ;;  %s6338_s15 = smov 1  }
  0x64   :  { %138 = dma.hbm_to_vmem [thread:$0]  %s6416_s3, 32, %s133_s28, [#allocation6], %s6337_s11, %s6337_s11, %s6338_s15  }
  0x65   :  { %s5579_s16 = scalar_lea.hbm %s6426_s14, 32 }
  0x66   :  { %p5580_p8 = scmp.ne.s32.totalorder %s6426_s14, %s5579_s16  ;;  %p5583_p9 = scmp.lt.u32.totalorder %s5579_s16, %s6426_s14 }
  0x68   :  { %p5585_p10 = pnand %p5583_p9, %p5580_p8 }
  0x6a   :  { %5588 = shalt.err (!%p5585_p10)
}
  0x6b   :  { %s5589_s18 = scalar_lea.vmem %s6583_s2, 32  ;;  %p5594_p12 = scmp.lt.s32.totalorder %s6583_s2, %s6583_s2 }
  0x6c   :  { %p5590_p11 = scmp.ne.s32.totalorder %s6583_s2, %s5589_s18  ;;  %p5595_p13 = scmp.lt.s32.totalorder %s5589_s18, %s5589_s18 }
  0x6e   :  { %p5596_p0 = por %p5595_p13, %p5594_p12 }
  0x70   :  { %p5597_p1 = pnand %p5596_p0, %p5590_p11 }
  0x72   :  { %5600 = shalt.err (!%p5597_p1)
}
  0x73   :  { %162 = dma.hbm_to_vmem [thread:$0]  %s6426_s14, 32, %s6583_s2, [#allocation9], %s6337_s11, %s6337_s11, %s6338_s15  }
  0x74   :  { %s6339_s3 = smov [#allocation11]   ;;  %s6340_s23 = smov [#allocation14]  }
  0x75   :  { %s181_s22 = sshll.u32 %s6339_s3, 4  ;;  %s201_s26 = sshll.u32 %s6340_s23, 4  ;;  %s182_s22 = int_to_ptr.vmem [resolvable:$true] %s181_s22  ;;  %s202_s26 = int_to_ptr.vmem [resolvable:$true] %s201_s26 }
  0x76   :  { %s5601_s0 = scalar_lea.hbm %s6436_s24, 16 }
  0x77   :  { %p5602_p2 = scmp.ne.s32.totalorder %s6436_s24, %s5601_s0  ;;  %p5605_p3 = scmp.lt.u32.totalorder %s5601_s0, %s6436_s24 }
  0x79   :  { %p5607_p4 = pnand %p5605_p3, %p5602_p2 }
  0x7b   :  { %5610 = shalt.err (!%p5607_p4)
}
  0x7c   :  { %s5611_s28 = scalar_lea.vmem %s182_s22, 16  ;;  %s5615_s1 = scalar_lea.vmem %s182_s22, 32 }
  0x7d   :  { %p5612_p5 = scmp.ne.s32.totalorder %s182_s22, %s5611_s28  ;;  %p5616_p6 = scmp.lt.s32.totalorder %s182_s22, %s182_s22 }
  0x7e   :  { %p5617_p7 = scmp.lt.s32.totalorder %s5615_s1, %s5611_s28 }
  0x80   :  { %p5618_p8 = por %p5617_p7, %p5616_p6 }
  0x82   :  { %p5619_p9 = pnand %p5618_p8, %p5612_p5 }
  0x84   :  { %5622 = shalt.err (!%p5619_p9)
}
  0x85   :  { %184 = dma.hbm_to_vmem [thread:$0]  %s6436_s24, 16, %s182_s22, [#allocation12]  }
  0x86   :  { %s5623_s14 = scalar_lea.hbm %s6446_s6, 16 }
  0x87   :  { %p5624_p10 = scmp.ne.s32.totalorder %s6446_s6, %s5623_s14  ;;  %p5627_p11 = scmp.lt.u32.totalorder %s5623_s14, %s6446_s6 }
  0x89   :  { %p5629_p12 = pnand %p5627_p11, %p5624_p10 }
  0x8b   :  { %5632 = shalt.err (!%p5629_p12)
}
  0x8c   :  { %s5633_s2 = scalar_lea.vmem %s202_s26, 16  ;;  %s5637_s7 = scalar_lea.vmem %s202_s26, 32 }
  0x8d   :  { %p5634_p13 = scmp.ne.s32.totalorder %s202_s26, %s5633_s2  ;;  %p5638_p0 = scmp.lt.s32.totalorder %s202_s26, %s202_s26 }
  0x8e   :  { %p5639_p1 = scmp.lt.s32.totalorder %s5637_s7, %s5633_s2 }
  0x90   :  { %p5640_p2 = por %p5639_p1, %p5638_p0 }
  0x92   :  { %p5641_p3 = pnand %p5640_p2, %p5634_p13 }
  0x94   :  { %5644 = shalt.err (!%p5641_p3)
}
  0x95   :  { %204 = dma.hbm_to_vmem [thread:$0]  %s6446_s6, 16, %s202_s26, [#allocation15]  }
  0x96   :  { %s6341_s10 = smov [#allocation17]   ;;  %s6342_s16 = smov [#allocation20]  }
  0x97   :  { %s222_s24 = sshll.u32 %s6341_s10, 4  ;;  %s245_s18 = sshll.u32 %s6342_s16, 4  ;;  %s223_s24 = int_to_ptr.vmem [resolvable:$true] %s222_s24  ;;  %s6612_s18 = int_to_ptr.vmem [resolvable:$true] %s245_s18 }
  0x98   :  { %s5645_s3 = scalar_lea.hbm %s6461_s27, 1024 }
  0x99   :  { %p5646_p4 = scmp.ne.s32.totalorder %s6461_s27, %s5645_s3  ;;  %p5649_p5 = scmp.lt.u32.totalorder %s5645_s3, %s6461_s27 }
  0x9b   :  { %p5651_p6 = pnand %p5649_p5, %p5646_p4 }
  0x9d   :  { %5654 = shalt.err (!%p5651_p6)
}
  0x9e   :  { %s5655_s22 = scalar_lea.vmem %s223_s24, 1024  ;;  %p5660_p8 = scmp.lt.s32.totalorder %s223_s24, %s223_s24 }
  0x9f   :  { %p5656_p7 = scmp.ne.s32.totalorder %s223_s24, %s5655_s22  ;;  %p5661_p9 = scmp.lt.s32.totalorder %s5655_s22, %s5655_s22 }
  0xa1   :  { %p5662_p10 = por %p5661_p9, %p5660_p8 }
  0xa3   :  { %p5663_p11 = pnand %p5662_p10, %p5656_p7 }
  0xa5   :  { %5666 = shalt.err (!%p5663_p11)
}
  0xa6   :  { %s6343_s6 = smov 64   ;;  %s6344_s23 = smov 4  }
  0xa7   :  { %228 = dma.hbm_to_vmem [thread:$0]  %s6461_s27, 1024, %s223_s24, [#allocation18], %s6343_s6, %s6343_s6, %s6344_s23  }
  0xa8   :  { %s5667_s26 = scalar_lea.hbm %s6471_s12, 16 }
  0xa9   :  { %p5668_p12 = scmp.ne.s32.totalorder %s6471_s12, %s5667_s26  ;;  %p5671_p13 = scmp.lt.u32.totalorder %s5667_s26, %s6471_s12 }
  0xab   :  { %p5673_p0 = pnand %p5671_p13, %p5668_p12 }
  0xad   :  { %5676 = shalt.err (!%p5673_p0)
}
  0xae   :  { %s5677_s0 = scalar_lea.vmem %s6612_s18, 16  ;;  %s5681_s28 = scalar_lea.vmem %s6612_s18, 32 }
  0xaf   :  { %p5678_p1 = scmp.ne.s32.totalorder %s6612_s18, %s5677_s0  ;;  %p5682_p2 = scmp.lt.s32.totalorder %s6612_s18, %s6612_s18 }
  0xb0   :  { %p5683_p3 = scmp.lt.s32.totalorder %s5681_s28, %s5677_s0 }
  0xb2   :  { %p5684_p4 = por %p5683_p3, %p5682_p2 }
  0xb4   :  { %p5685_p5 = pnand %p5684_p4, %p5678_p1 }
  0xb6   :  { %5688 = shalt.err (!%p5685_p5)
}
  0xb7   :  { %248 = dma.hbm_to_vmem [thread:$0]  %s6471_s12, 16, %s6612_s18, [#allocation21]  }
  0xb8   :  { %s6345_s27 = smov [#allocation23]   ;;  %s6346_s14 = smov [#allocation26]  }
  0xb9   :  { %s264_s1 = sshll.u32 %s6345_s27, 4  ;;  %s288_s2 = sshll.u32 %s6346_s14, 4  ;;  %s265_s1 = int_to_ptr.vmem [resolvable:$true] %s264_s1  ;;  %s6631_s2 = int_to_ptr.vmem [resolvable:$true] %s288_s2 }
  0xba   :  { %s5689_s7 = scalar_lea.hbm %s6481_s17, 2048 }
  0xbb   :  { %p5690_p6 = scmp.ne.s32.totalorder %s6481_s17, %s5689_s7  ;;  %p5693_p7 = scmp.lt.u32.totalorder %s5689_s7, %s6481_s17 }
  0xbd   :  { %p5695_p8 = pnand %p5693_p7, %p5690_p6 }
  0xbf   :  { %5698 = shalt.err (!%p5695_p8)
}
  0xc0   :  { %s5699_s10 = scalar_lea.vmem %s265_s1, 2048  ;;  %p5704_p10 = scmp.lt.s32.totalorder %s265_s1, %s265_s1 }
  0xc1   :  { %p5700_p9 = scmp.ne.s32.totalorder %s265_s1, %s5699_s10  ;;  %p5705_p11 = scmp.lt.s32.totalorder %s5699_s10, %s5699_s10 }
  0xc3   :  { %p5706_p12 = por %p5705_p11, %p5704_p10 }
  0xc5   :  { %p5707_p13 = pnand %p5706_p12, %p5700_p9 }
  0xc7   :  { %5710 = shalt.err (!%p5707_p13)
}
  0xc8   :  { %270 = dma.hbm_to_vmem [thread:$0]  %s6481_s17, 2048, %s265_s1, [#allocation24], %s6343_s6, %s6343_s6, %s6344_s23  }
  0xc9   :  { %s5711_s12 = scalar_lea.hbm %s6491_s29, 2048 }
  0xca   :  { %p5712_p0 = scmp.ne.s32.totalorder %s6491_s29, %s5711_s12  ;;  %p5715_p1 = scmp.lt.u32.totalorder %s5711_s12, %s6491_s29 }
  0xcc   :  { %p5717_p2 = pnand %p5715_p1, %p5712_p0 }
  0xce   :  { %5720 = shalt.err (!%p5717_p2)
}
  0xcf   :  { %s5721_s24 = scalar_lea.vmem %s6631_s2, 2048  ;;  %p5726_p4 = scmp.lt.s32.totalorder %s6631_s2, %s6631_s2 }
  0xd0   :  { %p5722_p3 = scmp.ne.s32.totalorder %s6631_s2, %s5721_s24  ;;  %p5727_p5 = scmp.lt.s32.totalorder %s5721_s24, %s5721_s24 }
  0xd2   :  { %p5728_p6 = por %p5727_p5, %p5726_p4 }
  0xd4   :  { %p5729_p7 = pnand %p5728_p6, %p5722_p3 }
  0xd6   :  { %5732 = shalt.err (!%p5729_p7)
}
  0xd7   :  { %294 = dma.hbm_to_vmem [thread:$0]  %s6491_s29, 2048, %s6631_s2, [#allocation27], %s6343_s6, %s6343_s6, %s6344_s23  }
  0xd8   :  { %s6347_s17 = smov [#allocation29]   ;;  %s6348_s18 = smov [#allocation32]  }
  0xd9   :  { %s312_s16 = sshll.u32 %s6347_s17, 4  ;;  %s336_s3 = sshll.u32 %s6348_s18, 4  ;;  %s313_s16 = int_to_ptr.vmem [resolvable:$true] %s312_s16  ;;  %s6652_s3 = int_to_ptr.vmem [resolvable:$true] %s336_s3 }
  0xda   :  { %s5733_s22 = scalar_lea.hbm %s6501_s5, 2048 }
  0xdb   :  { %p5734_p8 = scmp.ne.s32.totalorder %s6501_s5, %s5733_s22  ;;  %p5737_p9 = scmp.lt.u32.totalorder %s5733_s22, %s6501_s5 }
  0xdd   :  { %p5739_p10 = pnand %p5737_p9, %p5734_p8 }
  0xdf   :  { %5742 = shalt.err (!%p5739_p10)
}
  0xe0   :  { %s5743_s26 = scalar_lea.vmem %s313_s16, 2048  ;;  %p5748_p12 = scmp.lt.s32.totalorder %s313_s16, %s313_s16 }
  0xe1   :  { %p5744_p11 = scmp.ne.s32.totalorder %s313_s16, %s5743_s26  ;;  %p5749_p13 = scmp.lt.s32.totalorder %s5743_s26, %s5743_s26 }
  0xe3   :  { %p5750_p0 = por %p5749_p13, %p5748_p12 }
  0xe5   :  { %p5751_p1 = pnand %p5750_p0, %p5744_p11 }
  0xe7   :  { %5754 = shalt.err (!%p5751_p1)
}
  0xe8   :  { %318 = dma.hbm_to_vmem [thread:$0]  %s6501_s5, 2048, %s313_s16, [#allocation30], %s6343_s6, %s6343_s6, %s6344_s23  }
  0xe9   :  { %s5755_s29 = scalar_lea.hbm %s6511_s9, 2048 }
  0xea   :  { %p5756_p2 = scmp.ne.s32.totalorder %s6511_s9, %s5755_s29  ;;  %p5759_p3 = scmp.lt.u32.totalorder %s5755_s29, %s6511_s9 }
  0xec   :  { %p5761_p4 = pnand %p5759_p3, %p5756_p2 }
  0xee   :  { %5764 = shalt.err (!%p5761_p4)
}
  0xef   :  { %s5765_s0 = scalar_lea.vmem %s6652_s3, 2048  ;;  %p5770_p6 = scmp.lt.s32.totalorder %s6652_s3, %s6652_s3 }
  0xf0   :  { %p5766_p5 = scmp.ne.s32.totalorder %s6652_s3, %s5765_s0  ;;  %p5771_p7 = scmp.lt.s32.totalorder %s5765_s0, %s5765_s0 }
  0xf2   :  { %p5772_p8 = por %p5771_p7, %p5770_p6 }
  0xf4   :  { %p5773_p9 = pnand %p5772_p8, %p5766_p5 }
  0xf6   :  { %5776 = shalt.err (!%p5773_p9)
}
  0xf7   :  { %342 = dma.hbm_to_vmem [thread:$0]  %s6511_s9, 2048, %s6652_s3, [#allocation33], %s6343_s6, %s6343_s6, %s6344_s23  }
  0xf8   :  { %s6349_s5 = smov [#allocation35]   ;;  %s6350_s27 = smov [#allocation38]  }
  0xf9   :  { %s359_s28 = sshll.u32 %s6349_s5, 4  ;;  %s378_s1 = sshll.u32 %s6350_s27, 4  ;;  %s360_s28 = int_to_ptr.vmem [resolvable:$true] %s359_s28  ;;  %s6673_s1 = int_to_ptr.vmem [resolvable:$true] %s378_s1 }
  0xfa   :  { %s5777_s14 = scalar_lea.hbm %s6521_s4, 16 }
  0xfb   :  { %p5778_p10 = scmp.ne.s32.totalorder %s6521_s4, %s5777_s14  ;;  %p5781_p11 = scmp.lt.u32.totalorder %s5777_s14, %s6521_s4 }
  0xfd   :  { %p5783_p12 = pnand %p5781_p11, %p5778_p10 }
  0xff   :  { %5786 = shalt.err (!%p5783_p12)
}
 0x100   :  { %s5787_s2 = scalar_lea.vmem %s360_s28, 16  ;;  %s5791_s7 = scalar_lea.vmem %s360_s28, 32 }
 0x101   :  { %p5788_p13 = scmp.ne.s32.totalorder %s360_s28, %s5787_s2  ;;  %p5792_p0 = scmp.lt.s32.totalorder %s360_s28, %s360_s28 }
 0x102   :  { %p5793_p1 = scmp.lt.s32.totalorder %s5791_s7, %s5787_s2 }
 0x104   :  { %p5794_p2 = por %p5793_p1, %p5792_p0 }
 0x106   :  { %p5795_p3 = pnand %p5794_p2, %p5788_p13 }
 0x108   :  { %5798 = shalt.err (!%p5795_p3)
}
 0x109   :  { %362 = dma.hbm_to_vmem [thread:$0]  %s6521_s4, 16, %s360_s28, [#allocation36]  }
 0x10a   :  { %s5799_s9 = scalar_lea.hbm %s6531_s20, 1024 }
 0x10b   :  { %p5800_p4 = scmp.ne.s32.totalorder %s6531_s20, %s5799_s9  ;;  %p5803_p5 = scmp.lt.u32.totalorder %s5799_s9, %s6531_s20 }
 0x10d   :  { %p5805_p6 = pnand %p5803_p5, %p5800_p4 }
 0x10f   :  { %5808 = shalt.err (!%p5805_p6)
}
 0x110   :  { %s5809_s10 = scalar_lea.vmem %s6673_s1, 1024  ;;  %p5814_p8 = scmp.lt.s32.totalorder %s6673_s1, %s6673_s1 }
 0x111   :  { %p5810_p7 = scmp.ne.s32.totalorder %s6673_s1, %s5809_s10  ;;  %p5815_p9 = scmp.lt.s32.totalorder %s5809_s10, %s5809_s10 }
 0x113   :  { %p5816_p10 = por %p5815_p9, %p5814_p8 }
 0x115   :  { %p5817_p11 = pnand %p5816_p10, %p5810_p7 }
 0x117   :  { %5820 = shalt.err (!%p5817_p11)
}
 0x118   :  { %384 = dma.hbm_to_vmem [thread:$0]  %s6531_s20, 1024, %s6673_s1, [#allocation39], %s6343_s6, %s6343_s6, %s6344_s23  }
 0x119   :  { %s6351_s4 = smov [#allocation41]   ;;  %s6352_s24 = smov [#allocation44]  }
 0x11a   :  { %s400_s12 = sshll.u32 %s6351_s4, 4  ;;  %s423_s17 = sshll.u32 %s6352_s24, 4  ;;  %s401_s12 = int_to_ptr.vmem [resolvable:$true] %s400_s12  ;;  %s424_s17 = int_to_ptr.vmem [resolvable:$true] %s423_s17 }
 0x11b   :  { %s5821_s16 = scalar_lea.hbm %s6541_s30, 1024 }
 0x11c   :  { %p5822_p12 = scmp.ne.s32.totalorder %s6541_s30, %s5821_s16  ;;  %p5825_p13 = scmp.lt.u32.totalorder %s5821_s16, %s6541_s30 }
 0x11e   :  { %p5827_p0 = pnand %p5825_p13, %p5822_p12 }
 0x120   :  { %5830 = shalt.err (!%p5827_p0)
}
 0x121   :  { %s5831_s18 = scalar_lea.vmem %s401_s12, 1024  ;;  %p5836_p2 = scmp.lt.s32.totalorder %s401_s12, %s401_s12 }
 0x122   :  { %p5832_p1 = scmp.ne.s32.totalorder %s401_s12, %s5831_s18  ;;  %p5837_p3 = scmp.lt.s32.totalorder %s5831_s18, %s5831_s18 }
 0x124   :  { %p5838_p4 = por %p5837_p3, %p5836_p2 }
 0x126   :  { %p5839_p5 = pnand %p5838_p4, %p5832_p1 }
 0x128   :  { %5842 = shalt.err (!%p5839_p5)
}
 0x129   :  { %406 = dma.hbm_to_vmem [thread:$0]  %s6541_s30, 1024, %s401_s12, [#allocation42], %s6343_s6, %s6343_s6, %s6344_s23  }
 0x12a   :  { %s5843_s20 = scalar_lea.hbm %s6551_s19, 16 }
 0x12b   :  { %p5844_p6 = scmp.ne.s32.totalorder %s6551_s19, %s5843_s20  ;;  %p5847_p7 = scmp.lt.u32.totalorder %s5843_s20, %s6551_s19 }
 0x12d   :  { %p5849_p8 = pnand %p5847_p7, %p5844_p6 }
 0x12f   :  { %5852 = shalt.err (!%p5849_p8)
}
 0x130   :  { %s5853_s3 = scalar_lea.vmem %s424_s17, 16  ;;  %s5857_s22 = scalar_lea.vmem %s424_s17, 32 }
 0x131   :  { %p5854_p9 = scmp.ne.s32.totalorder %s424_s17, %s5853_s3  ;;  %p5858_p10 = scmp.lt.s32.totalorder %s424_s17, %s424_s17 }
 0x132   :  { %p5859_p11 = scmp.lt.s32.totalorder %s5857_s22, %s5853_s3 }
 0x134   :  { %p5860_p12 = por %p5859_p11, %p5858_p10 }
 0x136   :  { %p5861_p13 = pnand %p5860_p12, %p5854_p9 }
 0x138   :  { %5864 = shalt.err (!%p5861_p13)
}
 0x139   :  { %s7311_s26 = sld [smem:[#allocation90_spill]]  ;;  %s6353_s29 = smov [#allocation47]  }
 0x13a   :  { %426 = dma.hbm_to_vmem [thread:$0]  %s6551_s19, 16, %s424_s17, [#allocation45]  }
 0x13b   :  { %s442_s30 = sshll.u32 %s6353_s29, 4  ;;  %s6354_s0 = smov [#allocation2]   ;;  %s443_s30 = int_to_ptr.vmem [resolvable:$true] %s442_s30 }
 0x13c   :  { %s118_s5 = sshll.u32 %s6354_s0, 4  ;;  %s6702_s5 = int_to_ptr.vmem [resolvable:$true] %s118_s5 }
 0x13f   :  { %s5865_s28 = scalar_lea.hbm %s7311_s26, 1024 }
 0x140   :  { %p5866_p0 = scmp.ne.s32.totalorder %s7311_s26, %s5865_s28  ;;  %p5869_p1 = scmp.lt.u32.totalorder %s5865_s28, %s7311_s26 }
 0x142   :  { %p5871_p2 = pnand %p5869_p1, %p5866_p0 }
 0x144   :  { %5874 = shalt.err (!%p5871_p2)
}
 0x145   :  { %s5875_s27 = scalar_lea.vmem %s443_s30, 1024  ;;  %p5880_p4 = scmp.lt.s32.totalorder %s443_s30, %s443_s30 }
 0x146   :  { %p5876_p3 = scmp.ne.s32.totalorder %s443_s30, %s5875_s27  ;;  %p5881_p5 = scmp.lt.s32.totalorder %s5875_s27, %s5875_s27 }
 0x148   :  { %p5882_p6 = por %p5881_p5, %p5880_p4 }
 0x14a   :  { %p5883_p7 = pnand %p5882_p6, %p5876_p3 }
 0x14c   :  { %5886 = shalt.err (!%p5883_p7)
}
 0x14d   :  { %s7312_s19 = sld [smem:[#allocation73_spill]] }
 0x14e   :  { %448 = dma.hbm_to_vmem [thread:$0]  %s7311_s26, 1024, %s443_s30, [#allocation48], %s6343_s6, %s6343_s6, %s6344_s23  }
 0x153   :  { %s5887_s1 = scalar_lea.hbm %s7312_s19, 32 }
 0x154   :  { %p5888_p8 = scmp.ne.s32.totalorder %s7312_s19, %s5887_s1  ;;  %p5891_p9 = scmp.lt.u32.totalorder %s5887_s1, %s7312_s19 }
 0x156   :  { %p5893_p10 = pnand %p5891_p9, %p5888_p8 }
 0x158   :  { %5896 = shalt.err (!%p5893_p10)
}
 0x159   :  { %s5897_s14 = scalar_lea.vmem %s6702_s5, 32  ;;  %p5902_p12 = scmp.lt.s32.totalorder %s6702_s5, %s6702_s5 }
 0x15a   :  { %p5898_p11 = scmp.ne.s32.totalorder %s6702_s5, %s5897_s14  ;;  %p5903_p13 = scmp.lt.s32.totalorder %s5897_s14, %s5897_s14 }
 0x15c   :  { %p5904_p0 = por %p5903_p13, %p5902_p12 }
 0x15e   :  { %p5905_p1 = pnand %p5904_p0, %p5898_p11 }
 0x160   :  { %5908 = shalt.err (!%p5905_p1)
}
 0x161   :  { %s7313_s2 = sld [smem:[#allocation75_spill]]  ;;  %s6355_s7 = smov [#allocation7]  }
 0x162   :  { %124 = dma.hbm_to_vmem [thread:$0]  %s7312_s19, 32, %s6702_s5, [#allocation3], %s6337_s11, %s6337_s11, %s6338_s15  }
 0x163   :  { %s144_s9 = sshll.u32 %s6355_s7, 4  ;;  %s6356_s10 = smov [#allocation10]   ;;  %s145_s9 = int_to_ptr.vmem [resolvable:$true] %s144_s9 }
 0x164   :  { %s168_s4 = sshll.u32 %s6356_s10, 4  ;;  %s6723_s4 = int_to_ptr.vmem [resolvable:$true] %s168_s4 }
 0x167   :  { %s5909_s12 = scalar_lea.hbm %s7313_s2, 2048 }
 0x168   :  { %p5910_p2 = scmp.ne.s32.totalorder %s7313_s2, %s5909_s12  ;;  %p5913_p3 = scmp.lt.u32.totalorder %s5909_s12, %s7313_s2 }
 0x16a   :  { %p5915_p4 = pnand %p5913_p3, %p5910_p2 }
 0x16c   :  { %5918 = shalt.err (!%p5915_p4)
}
 0x16d   :  { %s5919_s24 = scalar_lea.vmem %s145_s9, 2048  ;;  %p5924_p6 = scmp.lt.s32.totalorder %s145_s9, %s145_s9 }
 0x16e   :  { %p5920_p5 = scmp.ne.s32.totalorder %s145_s9, %s5919_s24  ;;  %p5925_p7 = scmp.lt.s32.totalorder %s5919_s24, %s5919_s24 }
 0x170   :  { %p5926_p8 = por %p5925_p7, %p5924_p6 }
 0x172   :  { %p5927_p9 = pnand %p5926_p8, %p5920_p5 }
 0x174   :  { %5930 = shalt.err (!%p5927_p9)
}
 0x175   :  { %s7314_s17 = sld [smem:[#allocation76_spill]] }
 0x176   :  { %150 = dma.hbm_to_vmem [thread:$0]  %s7313_s2, 2048, %s145_s9, [#allocation6], %s6343_s6, %s6343_s6, %s6344_s23  }
 0x17b   :  { %s5931_s16 = scalar_lea.hbm %s7314_s17, 2048 }
 0x17c   :  { %p5932_p10 = scmp.ne.s32.totalorder %s7314_s17, %s5931_s16  ;;  %p5935_p11 = scmp.lt.u32.totalorder %s5931_s16, %s7314_s17 }
 0x17e   :  { %p5937_p12 = pnand %p5935_p11, %p5932_p10 }
 0x180   :  { %5940 = shalt.err (!%p5937_p12)
}
 0x181   :  { %s5941_s18 = scalar_lea.vmem %s6723_s4, 2048  ;;  %p5946_p0 = scmp.lt.s32.totalorder %s6723_s4, %s6723_s4 }
 0x182   :  { %p5942_p13 = scmp.ne.s32.totalorder %s6723_s4, %s5941_s18  ;;  %p5947_p1 = scmp.lt.s32.totalorder %s5941_s18, %s5941_s18 }
 0x184   :  { %p5948_p2 = por %p5947_p1, %p5946_p0 }
 0x186   :  { %p5949_p3 = pnand %p5948_p2, %p5942_p13 }
 0x188   :  { %5952 = shalt.err (!%p5949_p3)
}
 0x189   :  { %s7315_s20 = sld [smem:[#allocation77_spill]]  ;;  %s6357_s3 = smov [#allocation13]  }
 0x18a   :  { %174 = dma.hbm_to_vmem [thread:$0]  %s7314_s17, 2048, %s6723_s4, [#allocation9], %s6343_s6, %s6343_s6, %s6344_s23  }
 0x18b   :  { %s191_s22 = sshll.u32 %s6357_s3, 4  ;;  %s6358_s26 = smov [#allocation16]   ;;  %s192_s22 = int_to_ptr.vmem [resolvable:$true] %s191_s22 }
 0x18c   :  { %s213_s29 = sshll.u32 %s6358_s26, 4  ;;  %s214_s29 = int_to_ptr.vmem [resolvable:$true] %s213_s29 }
 0x18f   :  { %s5953_s30 = scalar_lea.hbm %s7315_s20, 16 }
 0x190   :  { %p5954_p4 = scmp.ne.s32.totalorder %s7315_s20, %s5953_s30  ;;  %p5957_p5 = scmp.lt.u32.totalorder %s5953_s30, %s7315_s20 }
 0x192   :  { %p5959_p6 = pnand %p5957_p5, %p5954_p4 }
 0x194   :  { %5962 = shalt.err (!%p5959_p6)
}
 0x195   :  { %s5963_s0 = scalar_lea.vmem %s192_s22, 16  ;;  %s5967_s5 = scalar_lea.vmem %s192_s22, 32 }
 0x196   :  { %p5964_p7 = scmp.ne.s32.totalorder %s192_s22, %s5963_s0  ;;  %p5968_p8 = scmp.lt.s32.totalorder %s192_s22, %s192_s22 }
 0x197   :  { %p5969_p9 = scmp.lt.s32.totalorder %s5967_s5, %s5963_s0 }
 0x199   :  { %p5970_p10 = por %p5969_p9, %p5968_p8 }
 0x19b   :  { %p5971_p11 = pnand %p5970_p10, %p5964_p7 }
 0x19d   :  { %5974 = shalt.err (!%p5971_p11)
}
 0x19e   :  { %s7316_s28 = sld [smem:[#allocation79_spill]] }
 0x19f   :  { %194 = dma.hbm_to_vmem [thread:$0]  %s7315_s20, 16, %s192_s22, [#allocation12]  }
 0x1a4   :  { %s5975_s27 = scalar_lea.hbm %s7316_s28, 16 }
 0x1a5   :  { %p5976_p12 = scmp.ne.s32.totalorder %s7316_s28, %s5975_s27  ;;  %p5979_p13 = scmp.lt.u32.totalorder %s5975_s27, %s7316_s28 }
 0x1a7   :  { %p5981_p0 = pnand %p5979_p13, %p5976_p12 }
 0x1a9   :  { %5984 = shalt.err (!%p5981_p0)
}
 0x1aa   :  { %s5985_s19 = scalar_lea.vmem %s214_s29, 16  ;;  %s5989_s1 = scalar_lea.vmem %s214_s29, 32 }
 0x1ab   :  { %p5986_p1 = scmp.ne.s32.totalorder %s214_s29, %s5985_s19  ;;  %p5990_p2 = scmp.lt.s32.totalorder %s214_s29, %s214_s29 }
 0x1ac   :  { %p5991_p3 = scmp.lt.s32.totalorder %s5989_s1, %s5985_s19 }
 0x1ae   :  { %p5992_p4 = por %p5991_p3, %p5990_p2 }
 0x1b0   :  { %p5993_p5 = pnand %p5992_p4, %p5986_p1 }
 0x1b2   :  { %5996 = shalt.err (!%p5993_p5)
}
 0x1b3   :  { %s7317_s14 = sld [smem:[#allocation80_spill]]  ;;  %s6359_s2 = smov [#allocation19]  }
 0x1b4   :  { %216 = dma.hbm_to_vmem [thread:$0]  %s7316_s28, 16, %s214_s29, [#allocation15]  }
 0x1b5   :  { %s235_s7 = sshll.u32 %s6359_s2, 4  ;;  %s6360_s9 = smov [#allocation22]   ;;  %s236_s7 = int_to_ptr.vmem [resolvable:$true] %s235_s7 }
 0x1b6   :  { %s255_s10 = sshll.u32 %s6360_s9, 4  ;;  %s256_s10 = int_to_ptr.vmem [resolvable:$true] %s255_s10 }
 0x1b9   :  { %s5997_s4 = scalar_lea.hbm %s7317_s14, 16 }
 0x1ba   :  { %p5998_p6 = scmp.ne.s32.totalorder %s7317_s14, %s5997_s4  ;;  %p6001_p7 = scmp.lt.u32.totalorder %s5997_s4, %s7317_s14 }
 0x1bc   :  { %p6003_p8 = pnand %p6001_p7, %p5998_p6 }
 0x1be   :  { %6006 = shalt.err (!%p6003_p8)
}
 0x1bf   :  { %s6007_s12 = scalar_lea.vmem %s236_s7, 16  ;;  %s6011_s24 = scalar_lea.vmem %s236_s7, 32 }
 0x1c0   :  { %p6008_p9 = scmp.ne.s32.totalorder %s236_s7, %s6007_s12  ;;  %p6012_p10 = scmp.lt.s32.totalorder %s236_s7, %s236_s7 }
 0x1c1   :  { %p6013_p11 = scmp.lt.s32.totalorder %s6011_s24, %s6007_s12 }
 0x1c3   :  { %p6014_p12 = por %p6013_p11, %p6012_p10 }
 0x1c5   :  { %p6015_p13 = pnand %p6014_p12, %p6008_p9 }
 0x1c7   :  { %6018 = shalt.err (!%p6015_p13)
}
 0x1c8   :  { %s7318_s17 = sld [smem:[#allocation81_spill]] }
 0x1c9   :  { %238 = dma.hbm_to_vmem [thread:$0]  %s7317_s14, 16, %s236_s7, [#allocation18]  }
 0x1ce   :  { %s6019_s16 = scalar_lea.hbm %s7318_s17, 16 }
 0x1cf   :  { %p6020_p0 = scmp.ne.s32.totalorder %s7318_s17, %s6019_s16  ;;  %p6023_p1 = scmp.lt.u32.totalorder %s6019_s16, %s7318_s17 }
 0x1d1   :  { %p6025_p2 = pnand %p6023_p1, %p6020_p0 }
 0x1d3   :  { %6028 = shalt.err (!%p6025_p2)
}
 0x1d4   :  { %s6029_s18 = scalar_lea.vmem %s256_s10, 16  ;;  %s6033_s20 = scalar_lea.vmem %s256_s10, 32 }
 0x1d5   :  { %p6030_p3 = scmp.ne.s32.totalorder %s256_s10, %s6029_s18  ;;  %p6034_p4 = scmp.lt.s32.totalorder %s256_s10, %s256_s10 }
 0x1d6   :  { %p6035_p5 = scmp.lt.s32.totalorder %s6033_s20, %s6029_s18 }
 0x1d8   :  { %p6036_p6 = por %p6035_p5, %p6034_p4 }
 0x1da   :  { %p6037_p7 = pnand %p6036_p6, %p6030_p3 }
 0x1dc   :  { %6040 = shalt.err (!%p6037_p7)
}
 0x1dd   :  { %s7319_s3 = sld [smem:[#allocation82_spill]]  ;;  %s6361_s22 = smov [#allocation25]  }
 0x1de   :  { %258 = dma.hbm_to_vmem [thread:$0]  %s7318_s17, 16, %s256_s10, [#allocation21]  }
 0x1df   :  { %s276_s26 = sshll.u32 %s6361_s22, 4  ;;  %s6362_s29 = smov [#allocation28]   ;;  %s277_s26 = int_to_ptr.vmem [resolvable:$true] %s276_s26 }
 0x1e0   :  { %s300_s30 = sshll.u32 %s6362_s29, 4  ;;  %s6760_s30 = int_to_ptr.vmem [resolvable:$true] %s300_s30 }
 0x1e3   :  { %s6041_s0 = scalar_lea.hbm %s7319_s3, 32 }
 0x1e4   :  { %p6042_p8 = scmp.ne.s32.totalorder %s7319_s3, %s6041_s0  ;;  %p6045_p9 = scmp.lt.u32.totalorder %s6041_s0, %s7319_s3 }
 0x1e6   :  { %p6047_p10 = pnand %p6045_p9, %p6042_p8 }
 0x1e8   :  { %6050 = shalt.err (!%p6047_p10)
}
 0x1e9   :  { %s6051_s5 = scalar_lea.vmem %s277_s26, 32  ;;  %p6056_p12 = scmp.lt.s32.totalorder %s277_s26, %s277_s26 }
 0x1ea   :  { %p6052_p11 = scmp.ne.s32.totalorder %s277_s26, %s6051_s5  ;;  %p6057_p13 = scmp.lt.s32.totalorder %s6051_s5, %s6051_s5 }
 0x1ec   :  { %p6058_p0 = por %p6057_p13, %p6056_p12 }
 0x1ee   :  { %p6059_p1 = pnand %p6058_p0, %p6052_p11 }
 0x1f0   :  { %6062 = shalt.err (!%p6059_p1)
}
 0x1f1   :  { %s7320_s28 = sld [smem:[#allocation83_spill]] }
 0x1f2   :  { %282 = dma.hbm_to_vmem [thread:$0]  %s7319_s3, 32, %s277_s26, [#allocation24], %s6337_s11, %s6337_s11, %s6338_s15  }
 0x1f7   :  { %s6063_s27 = scalar_lea.hbm %s7320_s28, 32 }
 0x1f8   :  { %p6064_p2 = scmp.ne.s32.totalorder %s7320_s28, %s6063_s27  ;;  %p6067_p3 = scmp.lt.u32.totalorder %s6063_s27, %s7320_s28 }
 0x1fa   :  { %p6069_p4 = pnand %p6067_p3, %p6064_p2 }
 0x1fc   :  { %6072 = shalt.err (!%p6069_p4)
}
 0x1fd   :  { %s6073_s19 = scalar_lea.vmem %s6760_s30, 32  ;;  %p6078_p6 = scmp.lt.s32.totalorder %s6760_s30, %s6760_s30 }
 0x1fe   :  { %p6074_p5 = scmp.ne.s32.totalorder %s6760_s30, %s6073_s19  ;;  %p6079_p7 = scmp.lt.s32.totalorder %s6073_s19, %s6073_s19 }
 0x200   :  { %p6080_p8 = por %p6079_p7, %p6078_p6 }
 0x202   :  { %p6081_p9 = pnand %p6080_p8, %p6074_p5 }
 0x204   :  { %6084 = shalt.err (!%p6081_p9)
}
 0x205   :  { %s7321_s1 = sld [smem:[#allocation84_spill]]  ;;  %s6363_s14 = smov [#allocation31]  }
 0x206   :  { %306 = dma.hbm_to_vmem [thread:$0]  %s7320_s28, 32, %s6760_s30, [#allocation27], %s6337_s11, %s6337_s11, %s6338_s15  }
 0x207   :  { %s324_s2 = sshll.u32 %s6363_s14, 4  ;;  %s6364_s7 = smov [#allocation34]   ;;  %s325_s2 = int_to_ptr.vmem [resolvable:$true] %s324_s2 }
 0x208   :  { %s349_s9 = sshll.u32 %s6364_s7, 4  ;;  %s350_s9 = int_to_ptr.vmem [resolvable:$true] %s349_s9 }
 0x20b   :  { %s6085_s10 = scalar_lea.hbm %s7321_s1, 32 }
 0x20c   :  { %p6086_p10 = scmp.ne.s32.totalorder %s7321_s1, %s6085_s10  ;;  %p6089_p11 = scmp.lt.u32.totalorder %s6085_s10, %s7321_s1 }
 0x20e   :  { %p6091_p12 = pnand %p6089_p11, %p6086_p10 }
 0x210   :  { %6094 = shalt.err (!%p6091_p12)
}
 0x211   :  { %s6095_s4 = scalar_lea.vmem %s325_s2, 32  ;;  %p6100_p0 = scmp.lt.s32.totalorder %s325_s2, %s325_s2 }
 0x212   :  { %p6096_p13 = scmp.ne.s32.totalorder %s325_s2, %s6095_s4  ;;  %p6101_p1 = scmp.lt.s32.totalorder %s6095_s4, %s6095_s4 }
 0x214   :  { %p6102_p2 = por %p6101_p1, %p6100_p0 }
 0x216   :  { %p6103_p3 = pnand %p6102_p2, %p6096_p13 }
 0x218   :  { %6106 = shalt.err (!%p6103_p3)
}
 0x219   :  { %s7322_s12 = sld [smem:[#allocation85_spill]] }
 0x21a   :  { %330 = dma.hbm_to_vmem [thread:$0]  %s7321_s1, 32, %s325_s2, [#allocation30], %s6337_s11, %s6337_s11, %s6338_s15  }
 0x21f   :  { %s6107_s24 = scalar_lea.hbm %s7322_s12, 16 }
 0x220   :  { %p6108_p4 = scmp.ne.s32.totalorder %s7322_s12, %s6107_s24  ;;  %p6111_p5 = scmp.lt.u32.totalorder %s6107_s24, %s7322_s12 }
 0x222   :  { %p6113_p6 = pnand %p6111_p5, %p6108_p4 }
 0x224   :  { %6116 = shalt.err (!%p6113_p6)
}
 0x225   :  { %s6117_s17 = scalar_lea.vmem %s350_s9, 16  ;;  %s6121_s16 = scalar_lea.vmem %s350_s9, 32 }
 0x226   :  { %p6118_p7 = scmp.ne.s32.totalorder %s350_s9, %s6117_s17  ;;  %p6122_p8 = scmp.lt.s32.totalorder %s350_s9, %s350_s9 }
 0x227   :  { %p6123_p9 = scmp.lt.s32.totalorder %s6121_s16, %s6117_s17 }
 0x229   :  { %p6124_p10 = por %p6123_p9, %p6122_p8 }
 0x22b   :  { %p6125_p11 = pnand %p6124_p10, %p6118_p7 }
 0x22d   :  { %6128 = shalt.err (!%p6125_p11)
}
 0x22e   :  { %s7323_s18 = sld [smem:[#allocation86_spill]]  ;;  %s6365_s20 = smov [#allocation37]  }
 0x22f   :  { %352 = dma.hbm_to_vmem [thread:$0]  %s7322_s12, 16, %s350_s9, [#allocation33]  }
 0x230   :  { %s369_s11 = sshll.u32 %s6365_s20, 4  ;;  %s6366_s15 = smov [#allocation40]   ;;  %s370_s11 = int_to_ptr.vmem [resolvable:$true] %s369_s11 }
 0x231   :  { %s391_s3 = sshll.u32 %s6366_s15, 4  ;;  %s392_s3 = int_to_ptr.vmem [resolvable:$true] %s391_s3 }
 0x234   :  { %s6129_s22 = scalar_lea.hbm %s7323_s18, 16 }
 0x235   :  { %p6130_p12 = scmp.ne.s32.totalorder %s7323_s18, %s6129_s22  ;;  %p6133_p13 = scmp.lt.u32.totalorder %s6129_s22, %s7323_s18 }
 0x237   :  { %p6135_p0 = pnand %p6133_p13, %p6130_p12 }
 0x239   :  { %6138 = shalt.err (!%p6135_p0)
}
 0x23a   :  { %s6139_s26 = scalar_lea.vmem %s370_s11, 16  ;;  %s6143_s29 = scalar_lea.vmem %s370_s11, 32 }
 0x23b   :  { %p6140_p1 = scmp.ne.s32.totalorder %s370_s11, %s6139_s26  ;;  %p6144_p2 = scmp.lt.s32.totalorder %s370_s11, %s370_s11 }
 0x23c   :  { %p6145_p3 = scmp.lt.s32.totalorder %s6143_s29, %s6139_s26 }
 0x23e   :  { %p6146_p4 = por %p6145_p3, %p6144_p2 }
 0x240   :  { %p6147_p5 = pnand %p6146_p4, %p6140_p1 }
 0x242   :  { %6150 = shalt.err (!%p6147_p5)
}
 0x243   :  { %s7324_s30 = sld [smem:[#allocation87_spill]] }
 0x244   :  { %372 = dma.hbm_to_vmem [thread:$0]  %s7323_s18, 16, %s370_s11, [#allocation36]  }
 0x249   :  { %s6151_s0 = scalar_lea.hbm %s7324_s30, 16 }
 0x24a   :  { %p6152_p6 = scmp.ne.s32.totalorder %s7324_s30, %s6151_s0  ;;  %p6155_p7 = scmp.lt.u32.totalorder %s6151_s0, %s7324_s30 }
 0x24c   :  { %p6157_p8 = pnand %p6155_p7, %p6152_p6 }
 0x24e   :  { %6160 = shalt.err (!%p6157_p8)
}
 0x24f   :  { %s6161_s5 = scalar_lea.vmem %s392_s3, 16  ;;  %s6165_s28 = scalar_lea.vmem %s392_s3, 32 }
 0x250   :  { %p6162_p9 = scmp.ne.s32.totalorder %s392_s3, %s6161_s5  ;;  %p6166_p10 = scmp.lt.s32.totalorder %s392_s3, %s392_s3 }
 0x251   :  { %p6167_p11 = scmp.lt.s32.totalorder %s6165_s28, %s6161_s5 }
 0x253   :  { %p6168_p12 = por %p6167_p11, %p6166_p10 }
 0x255   :  { %p6169_p13 = pnand %p6168_p12, %p6162_p9 }
 0x257   :  { %6172 = shalt.err (!%p6169_p13)
}
 0x258   :  { %s7325_s27 = sld [smem:[#allocation88_spill]]  ;;  %s6367_s19 = smov [#allocation43]  }
 0x259   :  { %394 = dma.hbm_to_vmem [thread:$0]  %s7324_s30, 16, %s392_s3, [#allocation39]  }
 0x25a   :  { %s413_s1 = sshll.u32 %s6367_s19, 4  ;;  %s6368_s14 = smov [#allocation46]   ;;  %s414_s1 = int_to_ptr.vmem [resolvable:$true] %s413_s1 }
 0x25b   :  { %s433_s2 = sshll.u32 %s6368_s14, 4  ;;  %s434_s2 = int_to_ptr.vmem [resolvable:$true] %s433_s2 }
 0x25e   :  { %s6173_s7 = scalar_lea.hbm %s7325_s27, 16 }
 0x25f   :  { %p6174_p0 = scmp.ne.s32.totalorder %s7325_s27, %s6173_s7  ;;  %p6177_p1 = scmp.lt.u32.totalorder %s6173_s7, %s7325_s27 }
 0x261   :  { %p6179_p2 = pnand %p6177_p1, %p6174_p0 }
 0x263   :  { %6182 = shalt.err (!%p6179_p2)
}
 0x264   :  { %s6183_s9 = scalar_lea.vmem %s414_s1, 16  ;;  %s6187_s10 = scalar_lea.vmem %s414_s1, 32 }
 0x265   :  { %p6184_p3 = scmp.ne.s32.totalorder %s414_s1, %s6183_s9  ;;  %p6188_p4 = scmp.lt.s32.totalorder %s414_s1, %s414_s1 }
 0x266   :  { %p6189_p5 = scmp.lt.s32.totalorder %s6187_s10, %s6183_s9 }
 0x268   :  { %p6190_p6 = por %p6189_p5, %p6188_p4 }
 0x26a   :  { %p6191_p7 = pnand %p6190_p6, %p6184_p3 }
 0x26c   :  { %6194 = shalt.err (!%p6191_p7)
}
 0x26d   :  { %s7326_s4 = sld [smem:[#allocation89_spill]] }
 0x26e   :  { %416 = dma.hbm_to_vmem [thread:$0]  %s7325_s27, 16, %s414_s1, [#allocation42]  }
 0x273   :  { %s6195_s12 = scalar_lea.hbm %s7326_s4, 16 }
 0x274   :  { %p6196_p8 = scmp.ne.s32.totalorder %s7326_s4, %s6195_s12  ;;  %p6199_p9 = scmp.lt.u32.totalorder %s6195_s12, %s7326_s4 }
 0x276   :  { %p6201_p10 = pnand %p6199_p9, %p6196_p8 }
 0x278   :  { %6204 = shalt.err (!%p6201_p10)
}
 0x279   :  { %s6205_s24 = scalar_lea.vmem %s434_s2, 16  ;;  %s6209_s17 = scalar_lea.vmem %s434_s2, 32 }
 0x27a   :  { %p6206_p11 = scmp.ne.s32.totalorder %s434_s2, %s6205_s24  ;;  %p6210_p12 = scmp.lt.s32.totalorder %s434_s2, %s434_s2 }
 0x27b   :  { %p6211_p13 = scmp.lt.s32.totalorder %s6209_s17, %s6205_s24 }
 0x27d   :  { %p6212_p0 = por %p6211_p13, %p6210_p12 }
 0x27f   :  { %p6213_p1 = pnand %p6212_p0, %p6206_p11 }
 0x281   :  { %6216 = shalt.err (!%p6213_p1)
}
 0x282   :  { %436 = dma.hbm_to_vmem [thread:$0]  %s7326_s4, 16, %s434_s2, [#allocation45]  }
 0x283   :  { %s6369_s16 = smov [#allocation49]   ;;  %s6217_s20 = scalar_lea.hbm %s6571_s25, 1024 }
 0x284   :  { %s456_s18 = sshll.u32 %s6369_s16, 4  ;;  %p6218_p2 = scmp.ne.s32.totalorder %s6571_s25, %s6217_s20  ;;  %s457_s18 = int_to_ptr.vmem [resolvable:$true] %s456_s18 }
 0x285   :  { %p6221_p3 = scmp.lt.u32.totalorder %s6217_s20, %s6571_s25 }
 0x287   :  { %p6223_p4 = pnand %p6221_p3, %p6218_p2 }
 0x289   :  { %6226 = shalt.err (!%p6223_p4)
}
 0x28a   :  { %s6227_s11 = scalar_lea.vmem %s457_s18, 1024  ;;  %p6232_p6 = scmp.lt.s32.totalorder %s457_s18, %s457_s18 }
 0x28b   :  { %p6228_p5 = scmp.ne.s32.totalorder %s457_s18, %s6227_s11  ;;  %p6233_p7 = scmp.lt.s32.totalorder %s6227_s11, %s6227_s11 }
 0x28d   :  { %p6234_p8 = por %p6233_p7, %p6232_p6 }
 0x28f   :  { %p6235_p9 = pnand %p6234_p8, %p6228_p5 }
 0x291   :  { %6238 = shalt.err (!%p6235_p9)
}
 0x292   :  { %462 = dma.hbm_to_vmem [thread:$0]  %s6571_s25, 1024, %s457_s18, [#allocation48], %s6343_s6, %s6343_s6, %s6344_s23  }
 0x293   :  { %6261 = dma.done.wait [#allocation3], 32  }
 0x294   :  { %6262 = vsyncadd [#allocation3], 4294967264 }
 0x295   :  { %6263 = dma.done.wait [#allocation6], 2080  }
 0x296   :  { %6264 = vsyncadd [#allocation6], 4294965216 }
 0x297   :  { %6265 = dma.done.wait [#allocation9], 2080  }
 0x298   :  { %6266 = vsyncadd [#allocation9], 4294965216 }
 0x299   :  { %6267 = dma.done.wait [#allocation12], 32  }
 0x29a   :  { %6268 = vsyncadd [#allocation12], 4294967264 }
 0x29b   :  { %6269 = dma.done.wait [#allocation15], 32  }
 0x29c   :  { %6270 = vsyncadd [#allocation15], 4294967264 }
 0x29d   :  { %6271 = dma.done.wait [#allocation18], 1040  }
 0x29e   :  { %6272 = vsyncadd [#allocation18], 4294966256 }
 0x29f   :  { %6273 = dma.done.wait [#allocation21], 32  }
 0x2a0   :  { %6274 = vsyncadd [#allocation21], 4294967264 }
 0x2a1   :  { %6275 = dma.done.wait [#allocation24], 2080  }
 0x2a2   :  { %6276 = vsyncadd [#allocation24], 4294965216 }
 0x2a3   :  { %6277 = dma.done.wait [#allocation27], 2080  }
 0x2a4   :  { %6278 = vsyncadd [#allocation27], 4294965216 }
 0x2a5   :  { %6279 = dma.done.wait [#allocation30], 2080  }
 0x2a6   :  { %6280 = vsyncadd [#allocation30], 4294965216 }
 0x2a7   :  { %6281 = dma.done.wait [#allocation33], 2064  }
 0x2a8   :  { %6282 = vsyncadd [#allocation33], 4294965232 }
 0x2a9   :  { %6283 = dma.done.wait [#allocation36], 32  }
 0x2aa   :  { %6284 = vsyncadd [#allocation36], 4294967264 }
 0x2ab   :  { %6285 = dma.done.wait [#allocation39], 1040  }
 0x2ac   :  { %6286 = vsyncadd [#allocation39], 4294966256 }
 0x2ad   :  { %6287 = dma.done.wait [#allocation42], 1040  }
 0x2ae   :  { %6288 = vsyncadd [#allocation42], 4294966256 }
 0x2af   :  { %6289 = dma.done.wait [#allocation45], 32  }
 0x2b0   :  { %6290 = vsyncadd [#allocation45], 4294967264 }
 0x2b1   :  { %6291 = dma.done.wait [#allocation48], 2048  }
 0x2b2   :  { %6292 = vsyncadd [#allocation48], 4294965248  ;;  %s7327_s25 = sld [smem:[#allocation68_spill]]  ;;  %s7328_s6 = sld [smem:[#allocation72_spill]]  ;;  %v6370_v2 = vmov 0.0   ;;  %v559_v6 = vlaneseq  ;;  %vm6371_vm1 = vmmov 0  }
 0x2b3   :  { %s7329_s23 = sld [smem:[#allocation74_spill]]  ;;  %4703 = vmatprep.subr.bf16.mxu0 %v6370_v2  ;;  %4723 = vmatprep.subr.bf16.mxu1 %v6370_v2  ;;  %s7330_s15 = sld [smem:[#allocation70_spill]]  ;;  %v5333_v48 = vld [vmem:[#allocation7] sm:$0xff]   ;;  %v5334_v50 = vld [vmem:[#allocation7 + $0x8] sm:$0xff]   ;;  %v5335_v51 = vld [vmem:[#allocation7 + $0x10] sm:$0xff]   ;;  %vm1078_vm2 = vcmask 1043456  }
 0x2b4   :  { %v560_v7 = vand.u32 127, %v559_v6  ;;  %4719 = vmatprep.mubr.msk.bf16.mxu0 %vm6371_vm1, %v6370_v2  ;;  %4739 = vmatprep.mubr.msk.bf16.mxu1 %vm6371_vm1, %v6370_v2  ;;  %s7331_s3 = sld [smem:[#allocation71_spill]]  ;;  %v5336_v52 = vld [vmem:[#allocation7 + $0x18] sm:$0xff]   ;;  %v5337_v53 = vld [vmem:[#allocation7 + $0x20] sm:$0xff]   ;;  %v5338_v54 = vld [vmem:[#allocation7 + $0x28] sm:$0xff]   ;;  %s7332_s22 = sld [smem:[#allocation69_spill]] }
 0x2b5   :  { %v5339_v55 = vld [vmem:[#allocation7 + $0x30] sm:$0xff]   ;;  %v5340_v56 = vld [vmem:[#allocation7 + $0x38] sm:$0xff]   ;;  %vm1048_vm3 = vcmask 64512   ;;  %s7333_s26 = sld [smem:[#allocation78_spill]]  ;;  %vm3948_vm4 = vcmask 1041409   ;;  %s6372_s29 = smov [#allocation50]  }
 0x2b6   :  { %vm561_vm0 = vcmp.lt.s32.totalorder %v560_v7, 32  ;;  %v4236_v57 = vld [vmem:[#allocation5] ss:$0 sm:$0xff]  ;;  %s4160_s30 = sshll.u32 %s6372_s29, 4  ;;  %s4161_s30 = int_to_ptr.vmem [resolvable:$true] %s4160_s30 }
 0x2b7   :  { %v6826_v10 = vsel %vm561_vm0, 1.0, %v6370_v2  ;;  %p6244_p11 = scmp.lt.s32.totalorder %s4161_s30, %s4161_s30 }
 0x2b8   :  { %v564_v0 = vld [vmem:[%s7327_s25] sm:$0xff]  ;;  %v565_v1 = vld [vmem:[%s7327_s25 + $0x8] sm:$0xff]  ;;  %v5321_v20 = vld [vmem:[%s7328_s6 + $0x10] sm:$0xff]  }
 0x2b9   :  { %568 = vadd.xlane.f32.xlu0 %v564_v0  ;;  %v5317_v3 = vld [vmem:[%s7328_s6] sm:$0xff]   ;;  %v5319_v5 = vld [vmem:[%s7328_s6 + $0x8] sm:$0xff]   ;;  %v5322_v21 = vld [vmem:[%s7329_s23 + $0x10] sm:$0xff]  }
 0x2ba   :  { %v5318_v4 = vld [vmem:[%s7329_s23] sm:$0xff]   ;;  %4704 = vmatpush3.bf16.msra.mxu0 %v5317_v3  ;;  %v5320_v19 = vld [vmem:[%s7329_s23 + $0x8] sm:$0xff]   ;;  %v5323_v22 = vld [vmem:[%s7328_s6 + $0x18] sm:$0xff]  }
 0x2bb   :  { %4724 = vmatpush3.bf16.msra.mxu1 %v5318_v4  ;;  %4705 = vmatprep.subr.bf16.mxu0 %v6370_v2  ;;  %v5324_v23 = vld [vmem:[%s7329_s23 + $0x18] sm:$0xff]   ;;  %v5325_v24 = vld [vmem:[%s7328_s6 + $0x20] sm:$0xff]   ;;  %v5327_v26 = vld [vmem:[%s7328_s6 + $0x28] sm:$0xff]  }
 0x2bc   :  { %4725 = vmatprep.subr.bf16.mxu1 %v6370_v2  ;;  %v5326_v25 = vld [vmem:[%s7329_s23 + $0x20] sm:$0xff]   ;;  %v5328_v27 = vld [vmem:[%s7329_s23 + $0x28] sm:$0xff]   ;;  %v5329_v28 = vld [vmem:[%s7328_s6 + $0x30] sm:$0xff]  }
 0x2bd   :  { %570 = vadd.xlane.f32.xlu0 %v565_v1  ;;  %v5330_v29 = vld [vmem:[%s7329_s23 + $0x30] sm:$0xff]   ;;  %v5331_v30 = vld [vmem:[%s7328_s6 + $0x38] sm:$0xff]   ;;  %v4225_v40 = vld [vmem:[%s7330_s15] ss:$0 sm:$0xff] }
 0x2be   :  { %4706 = vmatpush3.bf16.msra.mxu0 %v5319_v5  ;;  %v5332_v31 = vld [vmem:[%s7329_s23 + $0x38] sm:$0xff]   ;;  %v4226_v44 = vld [vmem:[%s7331_s3] ss:$0 sm:$0xff] }
 0x2bf   :  { %4707 = vmatprep.subr.bf16.mxu0 %v6370_v2  ;;  %4726 = vmatpush3.bf16.msra.mxu1 %v5320_v19 }
 0x2c0   :  { %4727 = vmatprep.subr.bf16.mxu1 %v6370_v2 }
 0x2c2   :  { %4708 = vmatpush3.bf16.msra.mxu0 %v5321_v20 }
 0x2c3   :  { %4728 = vmatpush3.bf16.msra.mxu1 %v5322_v21  ;;  %4709 = vmatprep.subr.bf16.mxu0 %v6370_v2 }
 0x2c4   :  { %4729 = vmatprep.subr.bf16.mxu1 %v6370_v2 }
 0x2c6   :  { %4710 = vmatpush3.bf16.msra.mxu0 %v5323_v22 }
 0x2c7   :  { %4730 = vmatpush3.bf16.msra.mxu1 %v5324_v23  ;;  %4711 = vmatprep.subr.bf16.mxu0 %v6370_v2  ;;  %v6898_v23 = vld [vmem:[%s7332_s22] ss:$0 sm:$0xff] }
 0x2c8   :  { %4731 = vmatprep.subr.bf16.mxu1 %v6370_v2 }
 0x2ca   :  { %4712 = vmatpush3.bf16.msra.mxu0 %v5325_v24 }
 0x2cb   :  { %4732 = vmatpush3.bf16.msra.mxu1 %v5326_v25  ;;  %4713 = vmatprep.subr.bf16.mxu0 %v6370_v2 }
 0x2cc   :  { %4733 = vmatprep.subr.bf16.mxu1 %v6370_v2 }
 0x2ce   :  { %4714 = vmatpush3.bf16.msra.mxu0 %v5327_v26 }
 0x2cf   :  { %4734 = vmatpush3.bf16.msra.mxu1 %v5328_v27  ;;  %4715 = vmatprep.subr.bf16.mxu0 %v6370_v2 }
 0x2d0   :  { %4735 = vmatprep.subr.bf16.mxu1 %v6370_v2 }
 0x2d2   :  { %4716 = vmatpush3.bf16.msra.mxu0 %v5329_v28 }
 0x2d3   :  { %4736 = vmatpush3.bf16.msra.mxu1 %v5330_v29  ;;  %4717 = vmatprep.subr.bf16.mxu0 %v6370_v2 }
 0x2d4   :  { %4737 = vmatprep.subr.bf16.mxu1 %v6370_v2 }
 0x2d6   :  { %4718 = vmatpush3.bf16.msra.mxu0 %v5331_v30 }
 0x2d7   :  { %4738 = vmatpush3.bf16.msra.mxu1 %v5332_v31  ;;  %4743 = vmatprep.subr.bf16.mxu0 %v6370_v2  ;;  %v6903_v31 = vld [vmem:[%s7332_s22 + $0x1] ss:$0 sm:$0xff] }
 0x2d8   :  { %4763 = vmatprep.subr.bf16.mxu1 %v6370_v2 }
 0x346   :  { %v569_v8 = vpop.xlane.xlu0 %568 }
 0x347   :  { %v572_v9 = vmul.f32 0.03125, %v569_v8 }
 0x349   :  { %v574_v11 = vsub.f32 %v564_v0, %v572_v9 }
 0x34a   :  { %v571_v12 = vpop.xlane.xlu0 %570 }
 0x34b   :  { %v573_v13 = vmul.f32 0.03125, %v571_v12  ;;  %v576_v14 = vmul.f32 %v6826_v10, %v574_v11 }
 0x34d   :  { %v575_v15 = vsub.f32 %v565_v1, %v573_v13  ;;  %v578_v16 = vmul.f32 %v576_v14, %v576_v14  ;;  %v4227_v1 = vld [vmem:[#allocation2] ss:$0 sm:$0xff]  ;;  %v4245_v13 = vld [vmem:[#allocation8] ss:$0 sm:$0xff] }
 0x34f   :  { %580 = vadd.xlane.f32.xlu1 %v578_v16  ;;  %v577_v17 = vmul.f32 %v6826_v10, %v575_v15 }
 0x351   :  { %v579_v18 = vmul.f32 %v577_v17, %v577_v17 }
 0x353   :  { %582 = vadd.xlane.f32.xlu1 %v579_v18 }
 0x3dc   :  { %v581_v32 = vpop.xlane.xlu1 %580 }
 0x3dd   :  { %v584_v33 = vmul.f32 0.03125, %v581_v32 }
 0x3df   :  { %v586_v34 = vadd.f32 1e-12, %v584_v33 }
 0x3e0   :  { %v583_v35 = vpop.xlane.xlu1 %582 }
 0x3e1   :  { %5493 = vrsqrt.f32 %v586_v34  ;;  %v585_v36 = vmul.f32 0.03125, %v583_v35 }
 0x3e3   :  { %v587_v37 = vadd.f32 1e-12, %v585_v36 }
 0x3e5   :  { %5495 = vrsqrt.f32 %v587_v37 }
 0x3eb   :  { %v5494_v38 = vpop.eup %5493 }
 0x3ec   :  { %v590_v39 = vmul.f32 %v5494_v38, %v576_v14 }
 0x3ee   :  { %v598_v42 = vmul.f32 %v4225_v40, %v590_v39 }
 0x3ef   :  { %v5496_v41 = vpop.eup %5495 }
 0x3f0   :  { %v591_v43 = vmul.f32 %v5496_v41, %v577_v17  ;;  %v6862_v46 = vadd.f32 %v4226_v44, %v598_v42 }
 0x3f2   :  { %v599_v45 = vmul.f32 %v4225_v40, %v591_v43 }
 0x3f4   :  { %v6864_v47 = vadd.f32 %v4226_v44, %v599_v45 }
 0x3f6   :  { %v6868_v49 = vpack.c.bf16 %v6864_v47, %v6862_v46 }
 0x3f8   :  { %4720 = vmatmul.mubr.bf16.vlgmr.msra.gmra.mrb[0].mxu0 %v6868_v49  ;;  %4740 = vmatmul.mubr.bf16.vlgmr.msra.gmra.mrb[0].mxu1 %v6868_v49 }
 0x3f9   :  { %4744 = vmatpush3.bf16.msra.mxu0 %v5333_v48  ;;  %4759 = vmatprep.mubr.msk.bf16.mxu0 %vm6371_vm1, %v6370_v2 }
 0x3fa   :  { %4745 = vmatprep.subr.bf16.mxu0 %v6370_v2  ;;  %4765 = vmatprep.mubr.msk.bf16.mxu1 %vm6371_vm1, %v6370_v2 }
 0x3fd   :  { %4746 = vmatpush3.bf16.msra.mxu0 %v5334_v50 }
 0x3fe   :  { %4747 = vmatprep.subr.bf16.mxu0 %v6370_v2 }
 0x401   :  { %4748 = vmatpush3.bf16.msra.mxu0 %v5335_v51  ;;  %v5357_v51 = vld [vmem:[#allocation10] sm:$0xff]  }
 0x402   :  { %4749 = vmatprep.subr.bf16.mxu0 %v6370_v2 }
 0x405   :  { %4750 = vmatpush3.bf16.msra.mxu0 %v5336_v52  ;;  %v5358_v52 = vld [vmem:[#allocation10 + $0x8] sm:$0xff]  }
 0x406   :  { %4751 = vmatprep.subr.bf16.mxu0 %v6370_v2 }
 0x409   :  { %4752 = vmatpush3.bf16.msra.mxu0 %v5337_v53  ;;  %v5359_v53 = vld [vmem:[#allocation10 + $0x10] sm:$0xff]  }
 0x40a   :  { %4753 = vmatprep.subr.bf16.mxu0 %v6370_v2 }
 0x40d   :  { %4754 = vmatpush3.bf16.msra.mxu0 %v5338_v54  ;;  %v5360_v54 = vld [vmem:[#allocation10 + $0x18] sm:$0xff]  }
 0x40e   :  { %4755 = vmatprep.subr.bf16.mxu0 %v6370_v2 }
 0x411   :  { %4756 = vmatpush3.bf16.msra.mxu0 %v5339_v55  ;;  %v5361_v55 = vld [vmem:[#allocation10 + $0x20] sm:$0xff]  }
 0x412   :  { %4757 = vmatprep.subr.bf16.mxu0 %v6370_v2 }
 0x415   :  { %4758 = vmatpush3.bf16.msra.mxu0 %v5340_v56  ;;  %v5362_v56 = vld [vmem:[#allocation10 + $0x28] sm:$0xff]  }
 0x416   :  { %4787 = vmatprep.subr.bf16.mxu0 %v6370_v2 }
 0x418   :  { %4760 = vmatmul.mubr.bf16.vlgmr.msra.gmra.mrb[4].mxu0 %v6868_v49 }
 0x419   :  { %4803 = vmatprep.mubr.msk.bf16.mxu0 %vm6371_vm1, %v6370_v2  ;;  %4788 = vmatpush3.bf16.msra.mxu0 %v5357_v51  ;;  %v4317_v51 = vld [vmem:[#allocation8 + $0x1] ss:$0 sm:$0xff] }
 0x41a   :  { %4789 = vmatprep.subr.bf16.mxu0 %v6370_v2 }
 0x41d   :  { %4790 = vmatpush3.bf16.msra.mxu0 %v5358_v52 }
 0x41e   :  { %4791 = vmatprep.subr.bf16.mxu0 %v6370_v2 }
 0x421   :  { %4792 = vmatpush3.bf16.msra.mxu0 %v5359_v53 }
 0x422   :  { %4793 = vmatprep.subr.bf16.mxu0 %v6370_v2 }
 0x425   :  { %4794 = vmatpush3.bf16.msra.mxu0 %v5360_v54 }
 0x426   :  { %4795 = vmatprep.subr.bf16.mxu0 %v6370_v2 }
 0x429   :  { %4796 = vmatpush3.bf16.msra.mxu0 %v5361_v55 }
 0x42a   :  { %4797 = vmatprep.subr.bf16.mxu0 %v6370_v2 }
 0x42d   :  { %4798 = vmatpush3.bf16.msra.mxu0 %v5362_v56 }
 0x42e   :  { %4799 = vmatprep.subr.bf16.mxu0 %v6370_v2 }
 0x4cb   :  { %v717_v58 = vpop.f32.mrb[0].mxu0  ;;  %v829_v59 = vpop.f32.mrb[0].mxu1 }
 0x4cc   :  { %v830_v60 = vadd.f32 %v4236_v57, %v829_v59  ;;  %v4721_v61 = vpop.f32.mrb[1].mxu0  ;;  %v4741_v62 = vpop.f32.mrb[1].mxu1  ;;  %v718_v6 = vadd.f32 %v4227_v1, %v717_v58 }
 0x4cd   :  { %v720_v63 = vpop.f32.mrb[2].mxu0  ;;  %v832_v0 = vpop.f32.mrb[2].mxu1 }
 0x4ce   :  { %v950_v3 = vpack.c.bf16 %v830_v60, %v830_v60  ;;  %v4722_v4 = vpop.f32.mrb[3].mxu0  ;;  %v4742_v5 = vpop.f32.mrb[3].mxu1  ;;  %v833_v7 = vadd.f32 %v4236_v57, %v832_v0  ;;  %v948_v8 = vpack.c.bf16 %v718_v6, %v718_v6  ;;  %v721_v11 = vadd.f32 %v4227_v1, %v720_v63  ;;  %v5343_v6 = vld [vmem:[%s7328_s6 + $0x50] sm:$0xff]  }
 0x4cf   :  { %v5342_v5 = vld [vmem:[%s7328_s6 + $0x48] sm:$0xff]  }
 0x4d0   :  { %4764 = vmatpush3.bf16.xpose.msra.mxu1 %v950_v3  ;;  %v951_v9 = vpack.c.bf16 %v833_v7, %v833_v7  ;;  %v949_v12 = vpack.c.bf16 %v721_v11, %v721_v11  ;;  %v5341_v3 = vld [vmem:[%s7328_s6 + $0x40] sm:$0xff]   ;;  %v5344_v7 = vld [vmem:[%s7328_s6 + $0x58] sm:$0xff]   ;;  %v5347_v11 = vld [vmem:[%s7328_s6 + $0x70] sm:$0xff]  }
 0x4d1   :  { %4769 = vmatprep.subr.bf16.mxu1 %v6370_v2 }
 0x4d7   :  { %4766 = vmatmul.mubr.bf16.vlgmr.msra.gmra.mrb[4].mxu1 %v948_v8  ;;  %v5345_v8 = vld [vmem:[%s7328_s6 + $0x60] sm:$0xff]  }
 0x4d8   :  { %4770 = vmatpush3.bf16.xpose.msra.mxu1 %v951_v9  ;;  %4771 = vmatprep.mubr.msk.bf16.mxu1 %vm6371_vm1, %v6370_v2  ;;  %v5346_v9 = vld [vmem:[%s7328_s6 + $0x68] sm:$0xff]  }
 0x4d9   :  { %4775 = vmatprep.subr.bf16.mxu1 %v6370_v2 }
 0x4df   :  { %4772 = vmatmul.mubr.bf16.vlgmr.msra.gmra.mrb[8].mxu1 %v949_v12  ;;  %v5348_v12 = vld [vmem:[%s7328_s6 + $0x78] sm:$0xff]  }
 0x4e0   :  { %4777 = vmatprep.mubr.msk.bf16.mxu1 %vm6371_vm1, %v6370_v2 }
 0x4eb   :  { %v941_v14 = vpop.f32.mrb[4].mxu0 }
 0x4ec   :  { %v942_v15 = vadd.f32 %v4245_v13, %v941_v14  ;;  %v4761_v16 = vpop.f32.mrb[5].mxu0  ;;  %v5350_v14 = vld [vmem:[#allocation7 + $0x48] sm:$0xff]  }
 0x4ed   :  { %v944_v17 = vpop.f32.mrb[6].mxu0  ;;  %v5352_v16 = vld [vmem:[#allocation7 + $0x58] sm:$0xff]  }
 0x4ee   :  { %v1073_v18 = vpack.c.bf16 %v942_v15, %v942_v15  ;;  %v6893_v19 = vadd.f32 %v4245_v13, %v944_v17  ;;  %v4762_v20 = vpop.f32.mrb[7].mxu0  ;;  %v5349_v13 = vld [vmem:[#allocation7 + $0x40] sm:$0xff]   ;;  %v5351_v15 = vld [vmem:[#allocation7 + $0x50] sm:$0xff]  }
 0x4ef   :  { %v5353_v17 = vld [vmem:[#allocation7 + $0x60] sm:$0xff]   ;;  %v5356_v20 = vld [vmem:[#allocation7 + $0x78] sm:$0xff]  }
 0x4f0   :  { %v1080_v21 = vsel %vm1078_vm2, %v1073_v18, 0  ;;  %v1074_v60 = vpack.c.bf16 %v6893_v19, %v6893_v19  ;;  %v5354_v18 = vld [vmem:[#allocation7 + $0x68] sm:$0xff]   ;;  %v5355_v19 = vld [vmem:[#allocation7 + $0x70] sm:$0xff]  }
 0x4f1   :  { %4776 = vmatpush3.bf16.msra.mxu1 %v1080_v21  ;;  %v5363_v21 = vld [vmem:[#allocation10 + $0x30] sm:$0xff]  }
 0x4f2   :  { %4781 = vmatprep.subr.bf16.mxu1 %v6370_v2  ;;  %v1126_v63 = vsel %vm1078_vm2, %v1074_v60, 0  ;;  %4800 = vmatpush3.bf16.msra.mxu0 %v5363_v21 }
 0x4f3   :  { %4801 = vmatprep.subr.bf16.mxu0 %v6370_v2 }
 0x5aa   :  { %v986_v22 = vpop.f32.mrb[4].mxu1 }
 0x5ab   :  { %v1032_v24 = vmul.f32 0.25, %v986_v22  ;;  %v4767_v25 = vpop.f32.mrb[5].mxu1  ;;  %v5364_v22 = vld [vmem:[#allocation10 + $0x38] sm:$0xff]  }
 0x5ac   :  { %v989_v26 = vpop.f32.mrb[6].mxu1  ;;  %4802 = vmatpush3.bf16.msra.mxu0 %v5364_v22 }
 0x5ad   :  { %v4768_v27 = vpop.f32.mrb[7].mxu1  ;;  %v1046_v28 = vadd.f32 %v6898_v23, %v1032_v24  ;;  %4827 = vmatprep.subr.bf16.mxu0 %v6370_v2 }
 0x5af   :  { %v1049_v29 = vsel %vm1048_vm3, %v1046_v28, -inf }
 0x5b0   :  { %1050 = vmax.xlane.f32.xlu0 %v1049_v29  ;;  %v5365_v29 = vld [vmem:[%s7329_s23 + $0x40] sm:$0xff]  }
 0x5b2   :  { %v1026_v30 = vpop.f32.mrb[8].mxu1 }
 0x5b3   :  { %v1033_v32 = vmul.f32 0.25, %v1026_v30  ;;  %v4773_v33 = vpop.f32.mrb[9].mxu1 }
 0x5b4   :  { %v1029_v34 = vpop.f32.mrb[10].mxu1 }
 0x5b5   :  { %v4774_v35 = vpop.f32.mrb[11].mxu1  ;;  %v1047_v36 = vadd.f32 %v6903_v31, %v1033_v32 }
 0x5b6   :  { %v5366_v35 = vld [vmem:[%s7329_s23 + $0x48] sm:$0xff]  }
 0x5b7   :  { %v1052_v37 = vsel %vm1048_vm3, %v1047_v36, -inf }
 0x5b8   :  { %1053 = vmax.xlane.f32.xlu1 %v1052_v37  ;;  %v5368_v37 = vld [vmem:[%s7329_s23 + $0x58] sm:$0xff]  }
 0x63d   :  { %v1051_v38 = vpop.xlane.xlu0 %1050 }
 0x63e   :  { %v1055_v39 = vsub.f32 %v1046_v28, %v1051_v38  ;;  %v5369_v38 = vld [vmem:[%s7329_s23 + $0x60] sm:$0xff]  }
 0x640   :  { %v1057_v40 = vmul.f32 1.442695, %v1055_v39  ;;  %v5370_v39 = vld [vmem:[%s7329_s23 + $0x68] sm:$0xff]  }
 0x642   :  { %5497 = vpow2.f32 %v1057_v40  ;;  %v5371_v40 = vld [vmem:[%s7329_s23 + $0x70] sm:$0xff]  }
 0x645   :  { %v1054_v41 = vpop.xlane.xlu1 %1053 }
 0x646   :  { %v1056_v42 = vsub.f32 %v1047_v36, %v1054_v41  ;;  %v5367_v36 = vld [vmem:[%s7329_s23 + $0x50] sm:$0xff]   ;;  %v5372_v41 = vld [vmem:[%s7329_s23 + $0x78] sm:$0xff]  }
 0x648   :  { %v1059_v43 = vmul.f32 1.442695, %v1056_v42 }
 0x64a   :  { %5499 = vpow2.f32 %v1059_v43 }
 0x64c   :  { %v5498_v44 = vpop.eup %5497 }
 0x64d   :  { %v1061_v45 = vsel %vm1048_vm3, %v5498_v44, 0.0 }
 0x64e   :  { %1062 = vadd.xlane.f32.xlu0 %v1061_v45 }
 0x654   :  { %v5500_v48 = vpop.eup %5499 }
 0x655   :  { %v1064_v50 = vsel %vm1048_vm3, %v5500_v48, 0.0 }
 0x656   :  { %1065 = vadd.xlane.f32.xlu1 %v1064_v50 }
 0x6db   :  { %v1063_v57 = vpop.xlane.xlu0 %1062 }
 0x6dc   :  { %5501 = vrcp.f32 %v1063_v57 }
 0x6e3   :  { %v1066_v58 = vpop.xlane.xlu1 %1065 }
 0x6e4   :  { %5503 = vrcp.f32 %v1066_v58 }
 0x6e6   :  { %v5502_v59 = vpop.eup %5501 }
 0x6e7   :  { %v1069_v61 = vmul.f32 %v5502_v59, %v5498_v44  ;;  %v4308_v59 = vld [vmem:[#allocation5 + $0x1] ss:$0 sm:$0xff] }
 0x6e9   :  { %v1071_v62 = vpack.c.bf16 %v1069_v61, %v1069_v61 }
 0x6eb   :  { %4778 = vmatmul.mubr.msk.bf16.vlgmr.msra.gmra.mrb[12].mxu1 %vm1048_vm3, %v1071_v62 }
 0x6ec   :  { %4782 = vmatpush3.bf16.msra.mxu1 %v1126_v63  ;;  %4783 = vmatprep.mubr.msk.bf16.mxu1 %vm6371_vm1, %v6370_v2  ;;  %v4283_v63 = vld [vmem:[#allocation2 + $0x1] ss:$0 sm:$0xff] }
 0x6ed   :  { %4807 = vmatprep.subr.bf16.mxu1 %v6370_v2 }
 0x6ee   :  { %v5504_v0 = vpop.eup %5503 }
 0x6ef   :  { %v1070_v1 = vmul.f32 %v5504_v0, %v5500_v48 }
 0x6f1   :  { %v1072_v4 = vpack.c.bf16 %v1070_v1, %v1070_v1 }
 0x6f3   :  { %4784 = vmatmul.mubr.msk.bf16.vlgmr.msra.gmra.mrb[16].mxu1 %vm1048_vm3, %v1072_v4 }
 0x6f4   :  { %4808 = vmatpush3.bf16.msra.mxu1 %v5341_v3  ;;  %4823 = vmatprep.mubr.msk.bf16.mxu1 %vm6371_vm1, %v6370_v2 }
 0x6f5   :  { %4809 = vmatprep.subr.bf16.mxu1 %v6370_v2 }
 0x6f8   :  { %4810 = vmatpush3.bf16.msra.mxu1 %v5342_v5 }
 0x6f9   :  { %4811 = vmatprep.subr.bf16.mxu1 %v6370_v2 }
 0x6fc   :  { %4812 = vmatpush3.bf16.msra.mxu1 %v5343_v6 }
 0x6fd   :  { %4813 = vmatprep.subr.bf16.mxu1 %v6370_v2 }
 0x700   :  { %4814 = vmatpush3.bf16.msra.mxu1 %v5344_v7 }
 0x701   :  { %4815 = vmatprep.subr.bf16.mxu1 %v6370_v2 }
 0x704   :  { %4816 = vmatpush3.bf16.msra.mxu1 %v5345_v8 }
 0x705   :  { %4817 = vmatprep.subr.bf16.mxu1 %v6370_v2 }
 0x708   :  { %4818 = vmatpush3.bf16.msra.mxu1 %v5346_v9 }
 0x709   :  { %4819 = vmatprep.subr.bf16.mxu1 %v6370_v2 }
 0x70c   :  { %4820 = vmatpush3.bf16.msra.mxu1 %v5347_v11 }
 0x70d   :  { %4821 = vmatprep.subr.bf16.mxu1 %v6370_v2 }
 0x710   :  { %4822 = vmatpush3.bf16.msra.mxu1 %v5348_v12 }
 0x711   :  { %4847 = vmatprep.subr.bf16.mxu1 %v6370_v2 }
 0x713   :  { %4824 = vmatmul.mubr.bf16.vlgmr.msra.gmra.mrb[20].mxu1 %v6868_v49 }
 0x714   :  { %4848 = vmatpush3.bf16.msra.mxu1 %v5349_v13  ;;  %4863 = vmatprep.mubr.msk.bf16.mxu1 %vm6371_vm1, %v6370_v2 }
 0x715   :  { %4849 = vmatprep.subr.bf16.mxu1 %v6370_v2 }
 0x718   :  { %4850 = vmatpush3.bf16.msra.mxu1 %v5350_v14 }
 0x719   :  { %4851 = vmatprep.subr.bf16.mxu1 %v6370_v2 }
 0x71c   :  { %4852 = vmatpush3.bf16.msra.mxu1 %v5351_v15 }
 0x71d   :  { %4853 = vmatprep.subr.bf16.mxu1 %v6370_v2 }
 0x720   :  { %4854 = vmatpush3.bf16.msra.mxu1 %v5352_v16 }
 0x721   :  { %4855 = vmatprep.subr.bf16.mxu1 %v6370_v2 }
 0x724   :  { %4856 = vmatpush3.bf16.msra.mxu1 %v5353_v17 }
 0x725   :  { %4857 = vmatprep.subr.bf16.mxu1 %v6370_v2 }
 0x728   :  { %4858 = vmatpush3.bf16.msra.mxu1 %v5354_v18 }
 0x729   :  { %4859 = vmatprep.subr.bf16.mxu1 %v6370_v2 }
 0x72c   :  { %4860 = vmatpush3.bf16.msra.mxu1 %v5355_v19 }
 0x72d   :  { %4861 = vmatprep.subr.bf16.mxu1 %v6370_v2 }
 0x730   :  { %4862 = vmatpush3.bf16.msra.mxu1 %v5356_v20 }
 0x731   :  { %4867 = vmatprep.subr.bf16.mxu1 %v6370_v2 }
 0x733   :  { %4864 = vmatmul.mubr.bf16.vlgmr.msra.gmra.mrb[24].mxu1 %v6868_v49 }
 0x734   :  { %4869 = vmatprep.mubr.msk.bf16.mxu1 %vm6371_vm1, %v6370_v2 }
 0x7be   :  { %v1116_v24 = vpop.f32.mrb[12].mxu1 }
 0x7bf   :  { %v4779_v25 = vpop.f32.mrb[13].mxu1 }
 0x7c0   :  { %v1119_v26 = vpop.f32.mrb[14].mxu1 }
 0x7c1   :  { %v4780_v27 = vpop.f32.mrb[15].mxu1 }
 0x7c6   :  { %v1162_v28 = vpop.f32.mrb[16].mxu1 }
 0x7c7   :  { %v1184_v30 = vpack.c.bf16 %v1162_v28, %v1116_v24  ;;  %v4785_v32 = vpop.f32.mrb[17].mxu1 }
 0x7c8   :  { %v1165_v33 = vpop.f32.mrb[18].mxu1 }
 0x7c9   :  { %v4786_v34 = vpop.f32.mrb[19].mxu1  ;;  %4804 = vmatmul.mubr.bf16.vlgmr.msra.gmra.mrb[8].mxu0 %v1184_v30 }
 0x7ca   :  { %4828 = vmatpush3.bf16.msra.mxu0 %v5365_v29  ;;  %4843 = vmatprep.mubr.msk.bf16.mxu0 %vm6371_vm1, %v6370_v2 }
 0x7cb   :  { %4829 = vmatprep.subr.bf16.mxu0 %v6370_v2 }
 0x7ce   :  { %4830 = vmatpush3.bf16.msra.mxu0 %v5366_v35 }
 0x7cf   :  { %4831 = vmatprep.subr.bf16.mxu0 %v6370_v2 }
 0x7d2   :  { %4832 = vmatpush3.bf16.msra.mxu0 %v5367_v36 }
 0x7d3   :  { %4833 = vmatprep.subr.bf16.mxu0 %v6370_v2 }
 0x7d6   :  { %4834 = vmatpush3.bf16.msra.mxu0 %v5368_v37 }
 0x7d7   :  { %4835 = vmatprep.subr.bf16.mxu0 %v6370_v2 }
 0x7da   :  { %4836 = vmatpush3.bf16.msra.mxu0 %v5369_v38  ;;  %v5374_v38 = vld [vmem:[#allocation10 + $0x48] sm:$0xff]  }
 0x7db   :  { %4837 = vmatprep.subr.bf16.mxu0 %v6370_v2 }
 0x7de   :  { %4838 = vmatpush3.bf16.msra.mxu0 %v5370_v39  ;;  %v5375_v39 = vld [vmem:[#allocation10 + $0x50] sm:$0xff]  }
 0x7df   :  { %4839 = vmatprep.subr.bf16.mxu0 %v6370_v2 }
 0x7e2   :  { %4840 = vmatpush3.bf16.msra.mxu0 %v5371_v40  ;;  %v5376_v40 = vld [vmem:[#allocation10 + $0x58] sm:$0xff]  }
 0x7e3   :  { %4841 = vmatprep.subr.bf16.mxu0 %v6370_v2 }
 0x7e6   :  { %v1389_v42 = vpop.f32.mrb[20].mxu1  ;;  %4842 = vmatpush3.bf16.msra.mxu0 %v5372_v41  ;;  %v5377_v41 = vld [vmem:[#allocation10 + $0x60] sm:$0xff]  }
 0x7e7   :  { %v4825_v43 = vpop.f32.mrb[21].mxu1  ;;  %4891 = vmatprep.subr.bf16.mxu0 %v6370_v2  ;;  %v1390_v3 = vadd.f32 %v4283_v63, %v1389_v42 }
 0x7e8   :  { %v1392_v44 = vpop.f32.mrb[22].mxu1 }
 0x7e9   :  { %v4826_v45 = vpop.f32.mrb[23].mxu1  ;;  %4844 = vmatmul.mubr.bf16.vlgmr.msra.gmra.mrb[12].mxu0 %v6868_v49  ;;  %v1624_v5 = vpack.c.bf16 %v1390_v3, %v1390_v3  ;;  %v1393_v8 = vadd.f32 %v4283_v63, %v1392_v44 }
 0x7ea   :  { %4907 = vmatprep.mubr.msk.bf16.mxu0 %vm6371_vm1, %v6370_v2 }
 0x7eb   :  { %v1625_v11 = vpack.c.bf16 %v1393_v8, %v1393_v8 }
 0x806   :  { %v1617_v48 = vpop.f32.mrb[24].mxu1 }
 0x807   :  { %v4865_v50 = vpop.f32.mrb[25].mxu1  ;;  %v1618_v7 = vadd.f32 %v4317_v51, %v1617_v48 }
 0x808   :  { %v1620_v52 = vpop.f32.mrb[26].mxu1 }
 0x809   :  { %v6978_v53 = vadd.f32 %v4317_v51, %v1620_v52  ;;  %v4866_v54 = vpop.f32.mrb[27].mxu1  ;;  %v1736_v9 = vpack.c.bf16 %v1618_v7, %v1618_v7 }
 0x80b   :  { %v1742_v12 = vsel %vm1078_vm2, %v1736_v9, 0  ;;  %v1737_v45 = vpack.c.bf16 %v6978_v53, %v6978_v53  ;;  %v5378_v53 = vld [vmem:[#allocation10 + $0x68] sm:$0xff]  }
 0x80d   :  { %v1788_v51 = vsel %vm1078_vm2, %v1737_v45, 0 }
 0x89c   :  { %v6980_v55 = vpop.f32.mrb[8].mxu0 }
 0x89d   :  { %v4805_v56 = vpop.f32.mrb[9].mxu0 }
 0x89e   :  { %v6982_v57 = vpop.f32.mrb[10].mxu0 }
 0x89f   :  { %v4806_v58 = vpop.f32.mrb[11].mxu0 }
 0x8a0   :  { %v5379_v58 = vld [vmem:[#allocation10 + $0x70] sm:$0xff]  }
 0x8bc   :  { %v1503_v60 = vpop.f32.mrb[12].mxu0 }
 0x8bd   :  { %v1504_v61 = vadd.f32 %v4308_v59, %v1503_v60  ;;  %v4845_v49 = vpop.f32.mrb[13].mxu0 }
 0x8be   :  { %v1506_v62 = vpop.f32.mrb[14].mxu0 }
 0x8bf   :  { %v1626_v0 = vpack.c.bf16 %v1504_v61, %v1504_v61  ;;  %v4846_v1 = vpop.f32.mrb[15].mxu0  ;;  %v1507_v4 = vadd.f32 %v4308_v59, %v1506_v62  ;;  %v5380_v59 = vld [vmem:[#allocation10 + $0x78] sm:$0xff]  }
 0x8c1   :  { %4868 = vmatpush3.bf16.xpose.msra.mxu1 %v1626_v0  ;;  %v1627_v6 = vpack.c.bf16 %v1507_v4, %v1507_v4 }
 0x8c2   :  { %4873 = vmatprep.subr.bf16.mxu1 %v6370_v2 }
 0x8c8   :  { %4870 = vmatmul.mubr.bf16.vlgmr.msra.gmra.mrb[28].mxu1 %v1624_v5  ;;  %v4266_v5 = vld [vmem:[#allocation11] ss:$0 sm:$0xff] }
 0x8c9   :  { %4874 = vmatpush3.bf16.xpose.msra.mxu1 %v1627_v6  ;;  %4875 = vmatprep.mubr.msk.bf16.mxu1 %vm6371_vm1, %v6370_v2  ;;  %v1280_v6 = vadd.f32 %v4266_v5, %v6980_v55  ;;  %v1281_v8 = vadd.f32 %v4266_v5, %v6982_v57 }
 0x8ca   :  { %4879 = vmatprep.subr.bf16.mxu1 %v6370_v2 }
 0x8d0   :  { %4876 = vmatmul.mubr.bf16.vlgmr.msra.gmra.mrb[32].mxu1 %v1625_v11 }
 0x8d1   :  { %4880 = vmatpush3.bf16.msra.mxu1 %v1742_v12  ;;  %4881 = vmatprep.mubr.msk.bf16.mxu1 %vm6371_vm1, %v6370_v2 }
 0x8d2   :  { %4885 = vmatprep.subr.bf16.mxu1 %v6370_v2 }
 0x99b   :  { %v1662_v13 = vpop.f32.mrb[28].mxu1 }
 0x99c   :  { %v1708_v14 = vmul.f32 0.25, %v1662_v13  ;;  %v4871_v15 = vpop.f32.mrb[29].mxu1 }
 0x99d   :  { %v1665_v16 = vpop.f32.mrb[30].mxu1 }
 0x99e   :  { %v4872_v17 = vpop.f32.mrb[31].mxu1  ;;  %v1710_v18 = vadd.f32 %v6898_v23, %v1708_v14 }
 0x99f   :  { %v5381_v17 = vld [vmem:[%s7333_s26] sm:$0xff]  }
 0x9a0   :  { %v1712_v19 = vsel %vm1048_vm3, %v1710_v18, -inf }
 0x9a1   :  { %1713 = vmax.xlane.f32.xlu0 %v1712_v19 }
 0x9a3   :  { %v1702_v20 = vpop.f32.mrb[32].mxu1 }
 0x9a4   :  { %v1709_v21 = vmul.f32 0.25, %v1702_v20  ;;  %v4877_v22 = vpop.f32.mrb[33].mxu1 }
 0x9a5   :  { %v1705_v24 = vpop.f32.mrb[34].mxu1 }
 0x9a6   :  { %v4878_v25 = vpop.f32.mrb[35].mxu1  ;;  %v1711_v26 = vadd.f32 %v6903_v31, %v1709_v21  ;;  %v5373_v31 = vld [vmem:[#allocation10 + $0x40] sm:$0xff]  }
 0x9a7   :  { %4892 = vmatpush3.bf16.msra.mxu0 %v5373_v31 }
 0x9a8   :  { %v1715_v27 = vsel %vm1048_vm3, %v1711_v26, -inf  ;;  %4893 = vmatprep.subr.bf16.mxu0 %v6370_v2 }
 0x9a9   :  { %1716 = vmax.xlane.f32.xlu1 %v1715_v27  ;;  %v5384_v27 = vld [vmem:[%s7333_s26 + $0x18] sm:$0xff]  }
 0x9ab   :  { %4894 = vmatpush3.bf16.msra.mxu0 %v5374_v38  ;;  %v4336_v38 = vld [vmem:[#allocation13] ss:$0 sm:$0xff] }
 0x9ac   :  { %4895 = vmatprep.subr.bf16.mxu0 %v6370_v2 }
 0x9af   :  { %4896 = vmatpush3.bf16.msra.mxu0 %v5375_v39 }
 0x9b0   :  { %4897 = vmatprep.subr.bf16.mxu0 %v6370_v2 }
 0x9b3   :  { %4898 = vmatpush3.bf16.msra.mxu0 %v5376_v40 }
 0x9b4   :  { %4899 = vmatprep.subr.bf16.mxu0 %v6370_v2 }
 0x9b7   :  { %4900 = vmatpush3.bf16.msra.mxu0 %v5377_v41 }
 0x9b8   :  { %4901 = vmatprep.subr.bf16.mxu0 %v6370_v2 }
 0x9bb   :  { %4902 = vmatpush3.bf16.msra.mxu0 %v5378_v53  ;;  %v5393_v53 = vld [vmem:[#allocation17 + $0x20] sm:$0xff]  }
 0x9bc   :  { %4903 = vmatprep.subr.bf16.mxu0 %v6370_v2 }
 0x9bf   :  { %4904 = vmatpush3.bf16.msra.mxu0 %v5379_v58  ;;  %v5394_v58 = vld [vmem:[#allocation17 + $0x28] sm:$0xff]  }
 0x9c0   :  { %4905 = vmatprep.subr.bf16.mxu0 %v6370_v2 }
 0x9c3   :  { %4906 = vmatpush3.bf16.msra.mxu0 %v5380_v59  ;;  %v5395_v59 = vld [vmem:[#allocation17 + $0x30] sm:$0xff]  }
 0x9c4   :  { %4931 = vmatprep.subr.bf16.mxu0 %v6370_v2 }
 0xa2e   :  { %v1714_v28 = vpop.xlane.xlu0 %1713 }
 0xa2f   :  { %v1718_v29 = vsub.f32 %v1710_v18, %v1714_v28  ;;  %v5382_v18 = vld [vmem:[%s7333_s26 + $0x8] sm:$0xff]   ;;  %v5385_v28 = vld [vmem:[%s7333_s26 + $0x20] sm:$0xff]  }
 0xa31   :  { %v1720_v30 = vmul.f32 1.442695, %v1718_v29  ;;  %v5386_v29 = vld [vmem:[%s7333_s26 + $0x28] sm:$0xff]  }
 0xa33   :  { %5505 = vpow2.f32 %v1720_v30  ;;  %v5387_v30 = vld [vmem:[%s7333_s26 + $0x30] sm:$0xff]  }
 0xa36   :  { %v1717_v32 = vpop.xlane.xlu1 %1716 }
 0xa37   :  { %v1719_v33 = vsub.f32 %v1711_v26, %v1717_v32  ;;  %v5383_v26 = vld [vmem:[%s7333_s26 + $0x10] sm:$0xff]   ;;  %v5388_v32 = vld [vmem:[%s7333_s26 + $0x38] sm:$0xff]  }
 0xa39   :  { %v1722_v23 = vmul.f32 1.442695, %v1719_v33 }
 0xa3b   :  { %5507 = vpow2.f32 %v1722_v23 }
 0xa3d   :  { %v5506_v34 = vpop.eup %5505 }
 0xa3e   :  { %v1724_v35 = vsel %vm1048_vm3, %v5506_v34, 0.0 }
 0xa3f   :  { %1725 = vadd.xlane.f32.xlu0 %v1724_v35 }
 0xa45   :  { %v5508_v36 = vpop.eup %5507 }
 0xa46   :  { %v1727_v37 = vsel %vm1048_vm3, %v5508_v36, 0.0 }
 0xa47   :  { %1728 = vadd.xlane.f32.xlu1 %v1727_v37 }
 0xacc   :  { %v1726_v42 = vpop.xlane.xlu0 %1725 }
 0xacd   :  { %5509 = vrcp.f32 %v1726_v42 }
 0xad4   :  { %v1729_v43 = vpop.xlane.xlu1 %1728 }
 0xad5   :  { %5511 = vrcp.f32 %v1729_v43  ;;  %v4337_v43 = vld [vmem:[#allocation14] ss:$0 sm:$0xff] }
 0xad7   :  { %v5510_v44 = vpop.eup %5509 }
 0xad8   :  { %v1732_v48 = vmul.f32 %v5510_v44, %v5506_v34 }
 0xada   :  { %v1734_v50 = vpack.c.bf16 %v1732_v48, %v1732_v48 }
 0xadc   :  { %4882 = vmatmul.mubr.msk.bf16.vlgmr.msra.gmra.mrb[36].mxu1 %vm1048_vm3, %v1734_v50 }
 0xadd   :  { %4886 = vmatpush3.bf16.msra.mxu1 %v1788_v51  ;;  %4887 = vmatprep.mubr.msk.bf16.mxu1 %vm6371_vm1, %v6370_v2  ;;  %v5389_v51 = vld [vmem:[#allocation17] sm:$0xff]  }
 0xade   :  { %4911 = vmatprep.subr.bf16.mxu1 %v6370_v2 }
 0xadf   :  { %v5512_v52 = vpop.eup %5511 }
 0xae0   :  { %v1733_v54 = vmul.f32 %v5512_v52, %v5508_v36  ;;  %v5390_v52 = vld [vmem:[#allocation17 + $0x8] sm:$0xff]  }
 0xae2   :  { %v1735_v56 = vpack.c.bf16 %v1733_v54, %v1733_v54  ;;  %v5391_v54 = vld [vmem:[#allocation17 + $0x10] sm:$0xff]  }
 0xae4   :  { %4888 = vmatmul.mubr.msk.bf16.vlgmr.msra.gmra.mrb[40].mxu1 %vm1048_vm3, %v1735_v56  ;;  %v5392_v56 = vld [vmem:[#allocation17 + $0x18] sm:$0xff]  }
 0xae5   :  { %4927 = vmatprep.mubr.msk.bf16.mxu1 %vm6371_vm1, %v6370_v2  ;;  %4912 = vmatpush3.bf16.msra.mxu1 %v5381_v17 }
 0xae6   :  { %4913 = vmatprep.subr.bf16.mxu1 %v6370_v2 }
 0xae9   :  { %4914 = vmatpush3.bf16.msra.mxu1 %v5382_v18 }
 0xaea   :  { %4915 = vmatprep.subr.bf16.mxu1 %v6370_v2 }
 0xaed   :  { %4916 = vmatpush3.bf16.msra.mxu1 %v5383_v26 }
 0xaee   :  { %4917 = vmatprep.subr.bf16.mxu1 %v6370_v2 }
 0xaf1   :  { %4918 = vmatpush3.bf16.msra.mxu1 %v5384_v27 }
 0xaf2   :  { %4919 = vmatprep.subr.bf16.mxu1 %v6370_v2 }
 0xaf5   :  { %4920 = vmatpush3.bf16.msra.mxu1 %v5385_v28 }
 0xaf6   :  { %4921 = vmatprep.subr.bf16.mxu1 %v6370_v2 }
 0xaf9   :  { %4922 = vmatpush3.bf16.msra.mxu1 %v5386_v29 }
 0xafa   :  { %4923 = vmatprep.subr.bf16.mxu1 %v6370_v2 }
 0xafd   :  { %4924 = vmatpush3.bf16.msra.mxu1 %v5387_v30  ;;  %v5397_v30 = vld [vmem:[#allocation23] sm:$0xff]  }
 0xafe   :  { %4925 = vmatprep.subr.bf16.mxu1 %v6370_v2 }
 0xb01   :  { %4926 = vmatpush3.bf16.msra.mxu1 %v5388_v32  ;;  %v5398_v32 = vld [vmem:[#allocation26] sm:$0xff]  }
 0xb02   :  { %4951 = vmatprep.subr.bf16.mxu1 %v6370_v2 }
 0xbaf   :  { %v1778_v60 = vpop.f32.mrb[36].mxu1 }
 0xbb0   :  { %v4883_v61 = vpop.f32.mrb[37].mxu1 }
 0xbb1   :  { %v1781_v49 = vpop.f32.mrb[38].mxu1  ;;  %v4338_v61 = vld [vmem:[#allocation16] ss:$0 sm:$0xff] }
 0xbb2   :  { %v4884_v62 = vpop.f32.mrb[39].mxu1 }
 0xbb7   :  { %v1824_v63 = vpop.f32.mrb[40].mxu1 }
 0xbb8   :  { %v1847_v0 = vpack.c.bf16 %v1824_v63, %v1778_v60  ;;  %v4889_v1 = vpop.f32.mrb[41].mxu1  ;;  %v5396_v60 = vld [vmem:[#allocation17 + $0x38] sm:$0xff]  }
 0xbb9   :  { %v1827_v3 = vpop.f32.mrb[42].mxu1 }
 0xbba   :  { %v4890_v4 = vpop.f32.mrb[43].mxu1  ;;  %4908 = vmatmul.mubr.bf16.vlgmr.msra.gmra.mrb[16].mxu0 %v1847_v0 }
 0xbbb   :  { %4947 = vmatprep.mubr.msk.bf16.mxu0 %vm6371_vm1, %v6370_v2  ;;  %4932 = vmatpush3.bf16.msra.mxu0 %v5389_v51  ;;  %v5406_v51 = vld [vmem:[#allocation26 + $0x20] sm:$0xff]  }
 0xbbc   :  { %4933 = vmatprep.subr.bf16.mxu0 %v6370_v2 }
 0xbbf   :  { %4934 = vmatpush3.bf16.msra.mxu0 %v5390_v52  ;;  %v5407_v52 = vld [vmem:[#allocation23 + $0x28] sm:$0xff]  }
 0xbc0   :  { %4935 = vmatprep.subr.bf16.mxu0 %v6370_v2 }
 0xbc3   :  { %4936 = vmatpush3.bf16.msra.mxu0 %v5391_v54  ;;  %v5408_v54 = vld [vmem:[#allocation26 + $0x28] sm:$0xff]  }
 0xbc4   :  { %4937 = vmatprep.subr.bf16.mxu0 %v6370_v2 }
 0xbc7   :  { %4938 = vmatpush3.bf16.msra.mxu0 %v5392_v56  ;;  %v5409_v56 = vld [vmem:[#allocation23 + $0x30] sm:$0xff]  }
 0xbc8   :  { %4939 = vmatprep.subr.bf16.mxu0 %v6370_v2 }
 0xbcb   :  { %4940 = vmatpush3.bf16.msra.mxu0 %v5393_v53  ;;  %v5410_v53 = vld [vmem:[#allocation26 + $0x30] sm:$0xff]  }
 0xbcc   :  { %4941 = vmatprep.subr.bf16.mxu0 %v6370_v2 }
 0xbcf   :  { %4942 = vmatpush3.bf16.msra.mxu0 %v5394_v58  ;;  %v5411_v58 = vld [vmem:[#allocation23 + $0x38] sm:$0xff]  }
 0xbd0   :  { %4943 = vmatprep.subr.bf16.mxu0 %v6370_v2 }
 0xbd3   :  { %4944 = vmatpush3.bf16.msra.mxu0 %v5395_v59  ;;  %v5412_v59 = vld [vmem:[#allocation26 + $0x38] sm:$0xff]  }
 0xbd4   :  { %4945 = vmatprep.subr.bf16.mxu0 %v6370_v2 }
 0xbd7   :  { %4946 = vmatpush3.bf16.msra.mxu0 %v5396_v60 }
 0xbd8   :  { %4971 = vmatprep.subr.bf16.mxu0 %v6370_v2 }
 0xc8d   :  { %v1930_v7 = vpop.f32.mrb[16].mxu0 }
 0xc8e   :  { %v1937_v9 = vadd.f32 %v1930_v7, %v1280_v6  ;;  %v4909_v11 = vpop.f32.mrb[17].mxu0 }
 0xc8f   :  { %v1933_v12 = vpop.f32.mrb[18].mxu0 }
 0xc90   :  { %v1938_v13 = vadd.f32 %v1933_v12, %v1281_v8  ;;  %v4910_v14 = vpop.f32.mrb[19].mxu0  ;;  %v1939_v15 = vadd.f32 %v1937_v9, %v6862_v46 }
 0xc92   :  { %1943 = vadd.xlane.f32.xlu0 %v1939_v15  ;;  %v1940_v16 = vadd.f32 %v1938_v13, %v6864_v47 }
 0xc94   :  { %1945 = vadd.xlane.f32.xlu1 %v1940_v16 }
 0xd1f   :  { %v1944_v55 = vpop.xlane.xlu0 %1943 }
 0xd20   :  { %v1947_v57 = vmul.f32 0.03125, %v1944_v55 }
 0xd21   :  { %v1946_v19 = vpop.xlane.xlu1 %1945 }
 0xd22   :  { %v1949_v20 = vsub.f32 %v1939_v15, %v1947_v57  ;;  %v1948_v46 = vmul.f32 0.03125, %v1946_v19 }
 0xd24   :  { %v1950_v21 = vsub.f32 %v1940_v16, %v1948_v46  ;;  %v1951_v47 = vmul.f32 %v6826_v10, %v1949_v20 }
 0xd26   :  { %v1953_v22 = vmul.f32 %v1951_v47, %v1951_v47  ;;  %v1952_v24 = vmul.f32 %v6826_v10, %v1950_v21  ;;  %v4347_v21 = vld [vmem:[#allocation19] ss:$0 sm:$0xff] }
 0xd28   :  { %1955 = vadd.xlane.f32.xlu0 %v1953_v22  ;;  %v1954_v25 = vmul.f32 %v1952_v24, %v1952_v24 }
 0xd2a   :  { %1957 = vadd.xlane.f32.xlu1 %v1954_v25 }
 0xdb5   :  { %v1956_v33 = vpop.xlane.xlu0 %1955 }
 0xdb6   :  { %v1959_v23 = vmul.f32 0.03125, %v1956_v33  ;;  %v5399_v33 = vld [vmem:[#allocation23 + $0x8] sm:$0xff]  }
 0xdb7   :  { %v1958_v34 = vpop.xlane.xlu1 %1957 }
 0xdb8   :  { %v1961_v35 = vadd.f32 1e-12, %v1959_v23  ;;  %v1960_v36 = vmul.f32 0.03125, %v1958_v34  ;;  %v5400_v23 = vld [vmem:[#allocation26 + $0x8] sm:$0xff]  }
 0xdba   :  { %5513 = vrsqrt.f32 %v1961_v35  ;;  %v1962_v37 = vadd.f32 1e-12, %v1960_v36 }
 0xdbc   :  { %5515 = vrsqrt.f32 %v1962_v37 }
 0xdc4   :  { %v5514_v31 = vpop.eup %5513 }
 0xdc5   :  { %v1965_v39 = vmul.f32 %v5514_v31, %v1951_v47 }
 0xdc6   :  { %v5516_v40 = vpop.eup %5515 }
 0xdc7   :  { %v1966_v41 = vmul.f32 %v5516_v40, %v1952_v24  ;;  %v1973_v42 = vmul.f32 %v4336_v38, %v1965_v39 }
 0xdc9   :  { %v1974_v44 = vmul.f32 %v4336_v38, %v1966_v41  ;;  %v7040_v45 = vadd.f32 %v4337_v43, %v1973_v42 }
 0xdcb   :  { %v7042_v48 = vadd.f32 %v4337_v43, %v1974_v44  ;;  %v5401_v43 = vld [vmem:[#allocation23 + $0x10] sm:$0xff]  }
 0xdcc   :  { %v5402_v44 = vld [vmem:[#allocation26 + $0x10] sm:$0xff]  }
 0xdcd   :  { %v1999_v50 = vpack.c.bf16 %v7042_v48, %v7040_v45 }
 0xdcf   :  { %4928 = vmatmul.mubr.bf16.vlgmr.msra.gmra.mrb[44].mxu1 %v1999_v50  ;;  %v5405_v50 = vld [vmem:[#allocation23 + $0x20] sm:$0xff]  }
 0xdd0   :  { %4967 = vmatprep.mubr.msk.bf16.mxu1 %vm6371_vm1, %v6370_v2  ;;  %4952 = vmatpush3.bf16.msra.mxu1 %v5397_v30 }
 0xdd1   :  { %4953 = vmatprep.subr.bf16.mxu1 %v6370_v2 }
 0xdd4   :  { %4954 = vmatpush3.bf16.msra.mxu1 %v5399_v33 }
 0xdd5   :  { %4955 = vmatprep.subr.bf16.mxu1 %v6370_v2 }
 0xdd8   :  { %4956 = vmatpush3.bf16.msra.mxu1 %v5401_v43 }
 0xdd9   :  { %4957 = vmatprep.subr.bf16.mxu1 %v6370_v2 }
 0xea2   :  { %v2089_v49 = vpop.f32.mrb[44].mxu1 }
 0xea3   :  { %v2090_v62 = vadd.f32 %v4338_v61, %v2089_v49  ;;  %v4929_v63 = vpop.f32.mrb[45].mxu1 }
 0xea4   :  { %v2092_v0 = vpop.f32.mrb[46].mxu1 }
 0xea5   :  { %v2096_v1 = vmul.f32 %v2090_v62, %v2090_v62  ;;  %v2093_v3 = vadd.f32 %v4338_v61, %v2092_v0  ;;  %v4930_v4 = vpop.f32.mrb[47].mxu1 }
 0xea7   :  { %v2098_v5 = vmul.f32 %v2096_v1, %v2090_v62  ;;  %v2097_v6 = vmul.f32 %v2093_v3, %v2093_v3 }
 0xea9   :  { %v2100_v7 = vmul.f32 0.044715, %v2098_v5  ;;  %v2099_v8 = vmul.f32 %v2097_v6, %v2093_v3 }
 0xeab   :  { %v2102_v9 = vadd.f32 %v2100_v7, %v2090_v62  ;;  %v2101_v11 = vmul.f32 0.044715, %v2099_v8  ;;  %v4357_v8 = vld [vmem:[#allocation22] ss:$0 sm:$0xff] }
 0xead   :  { %v2104_v12 = vmul.f32 0.7978846, %v2102_v9  ;;  %v2103_v13 = vadd.f32 %v2101_v11, %v2093_v3 }
 0xeaf   :  { %5517 = vtanh.f32 %v2104_v12  ;;  %v2105_v14 = vmul.f32 0.7978846, %v2103_v13  ;;  %v5413_v13 = vld [vmem:[#allocation29] sm:$0xff]  }
 0xeb1   :  { %5519 = vtanh.f32 %v2105_v14 }
 0xeb9   :  { %v5518_v15 = vpop.eup %5517 }
 0xeba   :  { %v2108_v16 = vadd.f32 1.0, %v5518_v15  ;;  %v5414_v15 = vld [vmem:[#allocation29 + $0x8] sm:$0xff]  }
 0xebb   :  { %v5520_v17 = vpop.eup %5519 }
 0xebc   :  { %v2110_v18 = vmul.f32 0.5, %v2108_v16  ;;  %v2109_v55 = vadd.f32 1.0, %v5520_v17  ;;  %v5415_v16 = vld [vmem:[#allocation29 + $0x10] sm:$0xff]   ;;  %v5416_v17 = vld [vmem:[#allocation29 + $0x18] sm:$0xff]  }
 0xebe   :  { %v2111_v57 = vmul.f32 0.5, %v2109_v55  ;;  %v2112_v19 = vmul.f32 %v2110_v18, %v2090_v62  ;;  %v5417_v18 = vld [vmem:[#allocation29 + $0x20] sm:$0xff]   ;;  %v5418_v55 = vld [vmem:[#allocation29 + $0x28] sm:$0xff]  }
 0xec0   :  { %v2113_v20 = vmul.f32 %v2111_v57, %v2093_v3  ;;  %v4356_v3 = vld [vmem:[#allocation20] ss:$0 sm:$0xff]  ;;  %v5419_v57 = vld [vmem:[#allocation29 + $0x30] sm:$0xff]  }
 0xec2   :  { %v2130_v46 = vpack.c.bf16 %v2113_v20, %v2112_v19  ;;  %v5420_v19 = vld [vmem:[#allocation29 + $0x38] sm:$0xff]  }
 0xec3   :  { %v4367_v20 = vld [vmem:[#allocation28] ss:$0 sm:$0xff] }
 0xec4   :  { %4948 = vmatmul.mubr.bf16.vlgmr.msra.gmra.mrb[20].mxu0 %v2130_v46 }
 0xec5   :  { %4987 = vmatprep.mubr.msk.bf16.mxu0 %vm6371_vm1, %v6370_v2  ;;  %4972 = vmatpush3.bf16.msra.mxu0 %v5398_v32 }
 0xec6   :  { %4973 = vmatprep.subr.bf16.mxu0 %v6370_v2 }
 0xec9   :  { %4974 = vmatpush3.bf16.msra.mxu0 %v5400_v23 }
 0xeca   :  { %4975 = vmatprep.subr.bf16.mxu0 %v6370_v2 }
 0xecd   :  { %4976 = vmatpush3.bf16.msra.mxu0 %v5402_v44 }
 0xece   :  { %4977 = vmatprep.subr.bf16.mxu0 %v6370_v2 }
 0xf97   :  { %v2220_v47 = vpop.f32.mrb[20].mxu0 }
 0xf98   :  { %v2221_v22 = vadd.f32 %v4347_v21, %v2220_v47  ;;  %v4949_v24 = vpop.f32.mrb[21].mxu0 }
 0xf99   :  { %v2223_v25 = vpop.f32.mrb[22].mxu0 }
 0xf9a   :  { %v2224_v26 = vadd.f32 %v4347_v21, %v2223_v25  ;;  %v4950_v27 = vpop.f32.mrb[23].mxu0  ;;  %v2227_v28 = vadd.f32 %v2221_v22, %v7040_v45  ;;  %v5403_v45 = vld [vmem:[#allocation23 + $0x18] sm:$0xff]  }
 0xf9b   :  { %4958 = vmatpush3.bf16.msra.mxu1 %v5403_v45  ;;  %v4358_v27 = vld [vmem:[#allocation25] ss:$0 sm:$0xff] }
 0xf9c   :  { %2231 = vadd.xlane.f32.xlu0 %v2227_v28  ;;  %v2228_v29 = vadd.f32 %v2224_v26, %v7042_v48  ;;  %v5404_v48 = vld [vmem:[#allocation26 + $0x18] sm:$0xff]   ;;  %4959 = vmatprep.subr.bf16.mxu1 %v6370_v2 }
 0xf9d   :  { %4978 = vmatpush3.bf16.msra.mxu0 %v5404_v48 }
 0xf9e   :  { %2233 = vadd.xlane.f32.xlu1 %v2228_v29  ;;  %4979 = vmatprep.subr.bf16.mxu0 %v6370_v2 }
 0xf9f   :  { %4960 = vmatpush3.bf16.msra.mxu1 %v5405_v50 }
 0xfa0   :  { %4961 = vmatprep.subr.bf16.mxu1 %v6370_v2 }
 0xfa1   :  { %4980 = vmatpush3.bf16.msra.mxu0 %v5406_v51 }
 0xfa2   :  { %4981 = vmatprep.subr.bf16.mxu0 %v6370_v2 }
 0xfa3   :  { %4962 = vmatpush3.bf16.msra.mxu1 %v5407_v52 }
 0xfa4   :  { %4963 = vmatprep.subr.bf16.mxu1 %v6370_v2 }
 0xfa5   :  { %4982 = vmatpush3.bf16.msra.mxu0 %v5408_v54 }
 0xfa6   :  { %4983 = vmatprep.subr.bf16.mxu0 %v6370_v2 }
 0xfa7   :  { %4964 = vmatpush3.bf16.msra.mxu1 %v5409_v56 }
 0xfa8   :  { %4965 = vmatprep.subr.bf16.mxu1 %v6370_v2 }
 0xfa9   :  { %4984 = vmatpush3.bf16.msra.mxu0 %v5410_v53 }
 0xfaa   :  { %4985 = vmatprep.subr.bf16.mxu0 %v6370_v2 }
 0xfab   :  { %4966 = vmatpush3.bf16.msra.mxu1 %v5411_v58 }
 0xfac   :  { %4991 = vmatprep.subr.bf16.mxu1 %v6370_v2 }
 0xfad   :  { %4986 = vmatpush3.bf16.msra.mxu0 %v5412_v59 }
 0xfae   :  { %5011 = vmatprep.subr.bf16.mxu0 %v6370_v2 }
0x1029   :  { %v2232_v34 = vpop.xlane.xlu0 %2231 }
0x102a   :  { %v2235_v35 = vmul.f32 0.03125, %v2232_v34 }
0x102b   :  { %v2234_v36 = vpop.xlane.xlu1 %2233 }
0x102c   :  { %v2237_v37 = vsub.f32 %v2227_v28, %v2235_v35  ;;  %v2236_v31 = vmul.f32 0.03125, %v2234_v36 }
0x102e   :  { %v2238_v38 = vsub.f32 %v2228_v29, %v2236_v31  ;;  %v2239_v39 = vmul.f32 %v6826_v10, %v2237_v37  ;;  %v4376_v37 = vld [vmem:[#allocation31] ss:$0 sm:$0xff] }
0x1030   :  { %v2241_v40 = vmul.f32 %v2239_v39, %v2239_v39  ;;  %v2240_v41 = vmul.f32 %v6826_v10, %v2238_v38 }
0x1032   :  { %2243 = vadd.xlane.f32.xlu0 %v2241_v40  ;;  %v2242_v42 = vmul.f32 %v2240_v41, %v2240_v41 }
0x1034   :  { %2245 = vadd.xlane.f32.xlu1 %v2242_v42 }
0x10bf   :  { %v2244_v60 = vpop.xlane.xlu0 %2243 }
0x10c0   :  { %v2247_v61 = vmul.f32 0.03125, %v2244_v60  ;;  %v7114_v60 = vld [vmem:[%s7332_s22] ss:$0 sm:$0xff] }
0x10c1   :  { %v2246_v49 = vpop.xlane.xlu1 %2245 }
0x10c2   :  { %v2249_v62 = vadd.f32 1e-12, %v2247_v61  ;;  %v2248_v63 = vmul.f32 0.03125, %v2246_v49 }
0x10c4   :  { %5521 = vrsqrt.f32 %v2249_v62  ;;  %v2250_v0 = vadd.f32 1e-12, %v2248_v63 }
0x10c6   :  { %5523 = vrsqrt.f32 %v2250_v0  ;;  %v7119_v0 = vld [vmem:[%s7332_s22 + $0x1] ss:$0 sm:$0xff] }
0x10ce   :  { %v5522_v1 = vpop.eup %5521 }
0x10cf   :  { %v2253_v4 = vmul.f32 %v5522_v1, %v2239_v39 }
0x10d0   :  { %v5524_v5 = vpop.eup %5523 }
0x10d1   :  { %v2261_v6 = vmul.f32 %v4356_v3, %v2253_v4  ;;  %v2254_v7 = vmul.f32 %v5524_v5, %v2240_v41 }
0x10d3   :  { %v2262_v9 = vmul.f32 %v4356_v3, %v2254_v7  ;;  %v7078_v11 = vadd.f32 %v4357_v8, %v2261_v6 }
0x10d5   :  { %v7080_v12 = vadd.f32 %v4357_v8, %v2262_v9 }
0x10d7   :  { %v7084_v14 = vpack.c.bf16 %v7080_v12, %v7078_v11 }
0x10d9   :  { %4968 = vmatmul.mubr.bf16.vlgmr.msra.gmra.mrb[48].mxu1 %v7084_v14  ;;  %4988 = vmatmul.mubr.bf16.vlgmr.msra.gmra.mrb[24].mxu0 %v7084_v14 }
0x10da   :  { %4992 = vmatpush3.bf16.msra.mxu1 %v5413_v13  ;;  %5007 = vmatprep.mubr.msk.bf16.mxu1 %vm6371_vm1, %v6370_v2 }
0x10db   :  { %4993 = vmatprep.subr.bf16.mxu1 %v6370_v2  ;;  %5013 = vmatprep.mubr.msk.bf16.mxu0 %vm6371_vm1, %v6370_v2 }
0x10de   :  { %4994 = vmatpush3.bf16.msra.mxu1 %v5414_v15 }
0x10df   :  { %4995 = vmatprep.subr.bf16.mxu1 %v6370_v2 }
0x10e2   :  { %4996 = vmatpush3.bf16.msra.mxu1 %v5415_v16 }
0x10e3   :  { %4997 = vmatprep.subr.bf16.mxu1 %v6370_v2 }
0x10e6   :  { %4998 = vmatpush3.bf16.msra.mxu1 %v5416_v17 }
0x10e7   :  { %4999 = vmatprep.subr.bf16.mxu1 %v6370_v2 }
0x10ea   :  { %5000 = vmatpush3.bf16.msra.mxu1 %v5417_v18 }
0x10eb   :  { %5001 = vmatprep.subr.bf16.mxu1 %v6370_v2 }
0x10ee   :  { %5002 = vmatpush3.bf16.msra.mxu1 %v5418_v55 }
0x10ef   :  { %5003 = vmatprep.subr.bf16.mxu1 %v6370_v2 }
0x10f2   :  { %5004 = vmatpush3.bf16.msra.mxu1 %v5419_v57 }
0x10f3   :  { %5005 = vmatprep.subr.bf16.mxu1 %v6370_v2 }
0x10f6   :  { %5006 = vmatpush3.bf16.msra.mxu1 %v5420_v19 }
0x10f7   :  { %5017 = vmatprep.subr.bf16.mxu1 %v6370_v2 }
0x10f9   :  { %5008 = vmatmul.mubr.bf16.vlgmr.msra.gmra.mrb[52].mxu1 %v7084_v14 }
0x10fa   :  { %5019 = vmatprep.mubr.msk.bf16.mxu1 %vm6371_vm1, %v6370_v2 }
0x11ac   :  { %v2378_v46 = vpop.f32.mrb[48].mxu1  ;;  %v2490_v21 = vpop.f32.mrb[24].mxu0 }
0x11ad   :  { %v2491_v47 = vadd.f32 %v4367_v20, %v2490_v21  ;;  %v4969_v22 = vpop.f32.mrb[49].mxu1  ;;  %v4989_v24 = vpop.f32.mrb[25].mxu0  ;;  %v2379_v23 = vadd.f32 %v4358_v27, %v2378_v46  ;;  %v5437_v46 = vld [vmem:[#allocation32] sm:$0xff]  }
0x11ae   :  { %v2381_v25 = vpop.f32.mrb[50].mxu1  ;;  %v2493_v26 = vpop.f32.mrb[26].mxu0  ;;  %v5421_v22 = vld [vmem:[#allocation23 + $0x40] sm:$0xff]  }
0x11af   :  { %v2611_v28 = vpack.c.bf16 %v2491_v47, %v2491_v47  ;;  %v2494_v29 = vadd.f32 %v4367_v20, %v2493_v26  ;;  %v4970_v30 = vpop.f32.mrb[51].mxu1  ;;  %v4990_v32 = vpop.f32.mrb[27].mxu0  ;;  %v2382_v34 = vadd.f32 %v4358_v27, %v2381_v25  ;;  %v2609_v35 = vpack.c.bf16 %v2379_v23, %v2379_v23  ;;  %v5438_v25 = vld [vmem:[#allocation32 + $0x8] sm:$0xff]   ;;  %v5439_v27 = vld [vmem:[#allocation32 + $0x10] sm:$0xff]  }
0x11b0   :  { %v5422_v26 = vld [vmem:[#allocation23 + $0x48] sm:$0xff]   ;;  %v5424_v30 = vld [vmem:[#allocation23 + $0x58] sm:$0xff]  }
0x11b1   :  { %v2612_v33 = vpack.c.bf16 %v2494_v29, %v2494_v29  ;;  %5012 = vmatpush3.bf16.xpose.msra.mxu0 %v2611_v28  ;;  %v2610_v36 = vpack.c.bf16 %v2382_v34, %v2382_v34  ;;  %v5423_v28 = vld [vmem:[#allocation23 + $0x50] sm:$0xff]   ;;  %v5440_v29 = vld [vmem:[#allocation32 + $0x18] sm:$0xff]   ;;  %v5441_v32 = vld [vmem:[#allocation32 + $0x20] sm:$0xff]  }
0x11b2   :  { %5023 = vmatprep.subr.bf16.mxu0 %v6370_v2  ;;  %v5442_v23 = vld [vmem:[#allocation32 + $0x28] sm:$0xff]  }
0x11b3   :  { %5018 = vmatpush3.bf16.xpose.msra.mxu1 %v2612_v33  ;;  %v5425_v33 = vld [vmem:[#allocation23 + $0x60] sm:$0xff]   ;;  %v5426_v34 = vld [vmem:[#allocation23 + $0x68] sm:$0xff]  }
0x11b4   :  { %5029 = vmatprep.subr.bf16.mxu1 %v6370_v2 }
0x11b8   :  { %5014 = vmatmul.mubr.bf16.vlgmr.msra.gmra.mrb[28].mxu0 %v2609_v35  ;;  %v5443_v35 = vld [vmem:[#allocation32 + $0x30] sm:$0xff]  }
0x11b9   :  { %5025 = vmatprep.mubr.msk.bf16.mxu0 %vm6371_vm1, %v6370_v2 }
0x11ba   :  { %5020 = vmatmul.mubr.bf16.vlgmr.msra.gmra.mrb[56].mxu1 %v2610_v36  ;;  %v5427_v36 = vld [vmem:[#allocation23 + $0x70] sm:$0xff]  }
0x11bb   :  { %5031 = vmatprep.mubr.msk.bf16.mxu1 %vm6371_vm1, %v6370_v2 }
0x11cc   :  { %v2602_v31 = vpop.f32.mrb[52].mxu1 }
0x11cd   :  { %v2603_v38 = vadd.f32 %v4376_v37, %v2602_v31  ;;  %v5009_v39 = vpop.f32.mrb[53].mxu1  ;;  %v5429_v31 = vld [vmem:[#allocation29 + $0x40] sm:$0xff]  }
0x11ce   :  { %v2605_v40 = vpop.f32.mrb[54].mxu1  ;;  %v5431_v39 = vld [vmem:[#allocation29 + $0x50] sm:$0xff]  }
0x11cf   :  { %v2721_v41 = vpack.c.bf16 %v2603_v38, %v2603_v38  ;;  %v2606_v42 = vadd.f32 %v4376_v37, %v2605_v40  ;;  %v5010_v43 = vpop.f32.mrb[55].mxu1  ;;  %v5428_v37 = vld [vmem:[#allocation23 + $0x78] sm:$0xff]   ;;  %v5430_v38 = vld [vmem:[#allocation29 + $0x48] sm:$0xff]  }
0x11d0   :  { %v5432_v40 = vld [vmem:[#allocation29 + $0x58] sm:$0xff]   ;;  %v5435_v43 = vld [vmem:[#allocation29 + $0x70] sm:$0xff]  }
0x11d1   :  { %v2727_v44 = vsel %vm1078_vm2, %v2721_v41, 0  ;;  %v2722_v45 = vpack.c.bf16 %v2606_v42, %v2606_v42  ;;  %v5433_v41 = vld [vmem:[#allocation29 + $0x60] sm:$0xff]   ;;  %v5434_v42 = vld [vmem:[#allocation29 + $0x68] sm:$0xff]  }
0x11d2   :  { %5024 = vmatpush3.bf16.msra.mxu0 %v2727_v44  ;;  %v5436_v44 = vld [vmem:[#allocation29 + $0x78] sm:$0xff]  }
0x11d3   :  { %v2773_v48 = vsel %vm1078_vm2, %v2722_v45, 0  ;;  %5035 = vmatprep.subr.bf16.mxu0 %v6370_v2  ;;  %v5444_v45 = vld [vmem:[#allocation32 + $0x38] sm:$0xff]  }
0x11d4   :  { %5030 = vmatpush3.bf16.msra.mxu1 %v2773_v48 }
0x11d5   :  { %5055 = vmatprep.subr.bf16.mxu1 %v6370_v2 }
0x128b   :  { %v2647_v50 = vpop.f32.mrb[28].mxu0 }
0x128c   :  { %v2693_v51 = vmul.f32 0.25, %v2647_v50  ;;  %v5015_v52 = vpop.f32.mrb[29].mxu0 }
0x128d   :  { %v2650_v54 = vpop.f32.mrb[30].mxu0  ;;  %v2687_v56 = vpop.f32.mrb[56].mxu1 }
0x128e   :  { %v2694_v53 = vmul.f32 0.25, %v2687_v56  ;;  %v5016_v58 = vpop.f32.mrb[31].mxu0  ;;  %v5021_v59 = vpop.f32.mrb[57].mxu1  ;;  %v2695_v61 = vadd.f32 %v7114_v60, %v2693_v51  ;;  %v5445_v54 = vld [vmem:[#allocation26 + $0x40] sm:$0xff]  }
0x128f   :  { %v2690_v49 = vpop.f32.mrb[58].mxu1 }
0x1290   :  { %v5022_v62 = vpop.f32.mrb[59].mxu1  ;;  %v2697_v63 = vsel %vm1048_vm3, %v2695_v61, -inf  ;;  %v2696_v1 = vadd.f32 %v7119_v0, %v2694_v53  ;;  %v5446_v49 = vld [vmem:[#allocation26 + $0x48] sm:$0xff]  }
0x1291   :  { %2698 = vmax.xlane.f32.xlu0 %v2697_v63  ;;  %v5447_v62 = vld [vmem:[#allocation26 + $0x50] sm:$0xff]   ;;  %v5448_v63 = vld [vmem:[#allocation26 + $0x58] sm:$0xff]  }
0x1292   :  { %v2700_v3 = vsel %vm1048_vm3, %v2696_v1, -inf }
0x1293   :  { %2701 = vmax.xlane.f32.xlu1 %v2700_v3  ;;  %v5450_v3 = vld [vmem:[#allocation26 + $0x68] sm:$0xff]  }
0x131e   :  { %v2699_v4 = vpop.xlane.xlu0 %2698 }
0x131f   :  { %v2703_v5 = vsub.f32 %v2695_v61, %v2699_v4  ;;  %v5451_v4 = vld [vmem:[#allocation26 + $0x70] sm:$0xff]  }
0x1320   :  { %v2702_v6 = vpop.xlane.xlu1 %2701 }
0x1321   :  { %v2705_v7 = vmul.f32 1.442695, %v2703_v5  ;;  %v2704_v8 = vsub.f32 %v2696_v1, %v2702_v6  ;;  %v5449_v1 = vld [vmem:[#allocation26 + $0x60] sm:$0xff]   ;;  %v5452_v5 = vld [vmem:[#allocation26 + $0x78] sm:$0xff]  }
0x1323   :  { %5525 = vpow2.f32 %v2705_v7  ;;  %v2707_v9 = vmul.f32 1.442695, %v2704_v8 }
0x1325   :  { %5527 = vpow2.f32 %v2707_v9 }
0x132d   :  { %v5526_v13 = vpop.eup %5525 }
0x132e   :  { %v2709_v15 = vsel %vm1048_vm3, %v5526_v13, 0.0 }
0x132f   :  { %v5528_v16 = vpop.eup %5527  ;;  %2710 = vadd.xlane.f32.xlu0 %v2709_v15 }
0x1330   :  { %v2712_v17 = vsel %vm1048_vm3, %v5528_v16, 0.0 }
0x1331   :  { %2713 = vadd.xlane.f32.xlu1 %v2712_v17 }
0x13bc   :  { %v2711_v18 = vpop.xlane.xlu0 %2710 }
0x13bd   :  { %5529 = vrcp.f32 %v2711_v18 }
0x13be   :  { %v2714_v55 = vpop.xlane.xlu1 %2713 }
0x13bf   :  { %5531 = vrcp.f32 %v2714_v55 }
0x13c7   :  { %v5530_v57 = vpop.eup %5529 }
0x13c8   :  { %v2717_v19 = vmul.f32 %v5530_v57, %v5526_v13 }
0x13c9   :  { %v5532_v20 = vpop.eup %5531 }
0x13ca   :  { %v2718_v21 = vmul.f32 %v5532_v20, %v5528_v16  ;;  %v2719_v47 = vpack.c.bf16 %v2717_v19, %v2717_v19  ;;  %v4405_v20 = vld [vmem:[#allocation28 + $0x1] ss:$0 sm:$0xff] }
0x13cc   :  { %5026 = vmatmul.mubr.msk.bf16.vlgmr.msra.gmra.mrb[32].mxu0 %vm1048_vm3, %v2719_v47  ;;  %v2720_v24 = vpack.c.bf16 %v2718_v21, %v2718_v21  ;;  %v4414_v21 = vld [vmem:[#allocation31 + $0x1] ss:$0 sm:$0xff] }
0x13cd   :  { %5036 = vmatpush3.bf16.msra.mxu0 %v5437_v46  ;;  %5051 = vmatprep.mubr.msk.bf16.mxu0 %vm6371_vm1, %v6370_v2 }
0x13ce   :  { %5032 = vmatmul.mubr.msk.bf16.vlgmr.msra.gmra.mrb[60].mxu1 %vm1048_vm3, %v2720_v24  ;;  %5037 = vmatprep.subr.bf16.mxu0 %v6370_v2 }
0x13cf   :  { %5056 = vmatpush3.bf16.msra.mxu1 %v5421_v22  ;;  %5071 = vmatprep.mubr.msk.bf16.mxu1 %vm6371_vm1, %v6370_v2 }
0x13d0   :  { %5057 = vmatprep.subr.bf16.mxu1 %v6370_v2 }
0x13d1   :  { %5038 = vmatpush3.bf16.msra.mxu0 %v5438_v25 }
0x13d2   :  { %5039 = vmatprep.subr.bf16.mxu0 %v6370_v2 }
0x13d3   :  { %5058 = vmatpush3.bf16.msra.mxu1 %v5422_v26 }
0x13d4   :  { %5059 = vmatprep.subr.bf16.mxu1 %v6370_v2 }
0x13d5   :  { %5040 = vmatpush3.bf16.msra.mxu0 %v5439_v27 }
0x13d6   :  { %5041 = vmatprep.subr.bf16.mxu0 %v6370_v2 }
0x13d7   :  { %5060 = vmatpush3.bf16.msra.mxu1 %v5423_v28 }
0x13d8   :  { %5061 = vmatprep.subr.bf16.mxu1 %v6370_v2 }
0x13d9   :  { %5042 = vmatpush3.bf16.msra.mxu0 %v5440_v29 }
0x13da   :  { %5043 = vmatprep.subr.bf16.mxu0 %v6370_v2 }
0x13db   :  { %5062 = vmatpush3.bf16.msra.mxu1 %v5424_v30 }
0x13dc   :  { %5063 = vmatprep.subr.bf16.mxu1 %v6370_v2 }
0x13dd   :  { %5044 = vmatpush3.bf16.msra.mxu0 %v5441_v32 }
0x13de   :  { %5045 = vmatprep.subr.bf16.mxu0 %v6370_v2 }
0x13df   :  { %5064 = vmatpush3.bf16.msra.mxu1 %v5425_v33 }
0x13e0   :  { %5065 = vmatprep.subr.bf16.mxu1 %v6370_v2 }
0x13e1   :  { %5046 = vmatpush3.bf16.msra.mxu0 %v5442_v23 }
0x13e2   :  { %5047 = vmatprep.subr.bf16.mxu0 %v6370_v2 }
0x13e3   :  { %5066 = vmatpush3.bf16.msra.mxu1 %v5426_v34 }
0x13e4   :  { %5067 = vmatprep.subr.bf16.mxu1 %v6370_v2 }
0x13e5   :  { %5048 = vmatpush3.bf16.msra.mxu0 %v5443_v35 }
0x13e6   :  { %5049 = vmatprep.subr.bf16.mxu0 %v6370_v2 }
0x13e7   :  { %5068 = vmatpush3.bf16.msra.mxu1 %v5427_v36 }
0x13e8   :  { %5069 = vmatprep.subr.bf16.mxu1 %v6370_v2 }
0x13e9   :  { %5050 = vmatpush3.bf16.msra.mxu0 %v5444_v45 }
0x13ea   :  { %5075 = vmatprep.subr.bf16.mxu0 %v6370_v2 }
0x13eb   :  { %5070 = vmatpush3.bf16.msra.mxu1 %v5428_v37 }
0x13ec   :  { %5095 = vmatprep.subr.bf16.mxu1 %v6370_v2 }
0x13ee   :  { %5072 = vmatmul.mubr.bf16.vlgmr.msra.gmra.mrb[64].mxu1 %v7084_v14 }
0x13ef   :  { %5096 = vmatpush3.bf16.msra.mxu1 %v5429_v31  ;;  %5111 = vmatprep.mubr.msk.bf16.mxu1 %vm6371_vm1, %v6370_v2 }
0x13f0   :  { %5097 = vmatprep.subr.bf16.mxu1 %v6370_v2 }
0x13f3   :  { %5098 = vmatpush3.bf16.msra.mxu1 %v5430_v38 }
0x13f4   :  { %5099 = vmatprep.subr.bf16.mxu1 %v6370_v2 }
0x13f7   :  { %5100 = vmatpush3.bf16.msra.mxu1 %v5431_v39 }
0x13f8   :  { %5101 = vmatprep.subr.bf16.mxu1 %v6370_v2 }
0x13fb   :  { %5102 = vmatpush3.bf16.msra.mxu1 %v5432_v40 }
0x13fc   :  { %5103 = vmatprep.subr.bf16.mxu1 %v6370_v2 }
0x13ff   :  { %5104 = vmatpush3.bf16.msra.mxu1 %v5433_v41 }
0x1400   :  { %5105 = vmatprep.subr.bf16.mxu1 %v6370_v2 }
0x1403   :  { %5106 = vmatpush3.bf16.msra.mxu1 %v5434_v42 }
0x1404   :  { %5107 = vmatprep.subr.bf16.mxu1 %v6370_v2 }
0x1407   :  { %5108 = vmatpush3.bf16.msra.mxu1 %v5435_v43 }
0x1408   :  { %5109 = vmatprep.subr.bf16.mxu1 %v6370_v2 }
0x140b   :  { %5110 = vmatpush3.bf16.msra.mxu1 %v5436_v44 }
0x140c   :  { %5121 = vmatprep.subr.bf16.mxu1 %v6370_v2 }
0x140e   :  { %5112 = vmatmul.mubr.bf16.vlgmr.msra.gmra.mrb[68].mxu1 %v7084_v14 }
0x140f   :  { %5123 = vmatprep.mubr.msk.bf16.mxu1 %vm6371_vm1, %v6370_v2 }
0x149f   :  { %v2763_v48 = vpop.f32.mrb[32].mxu0 }
0x14a0   :  { %v5027_v50 = vpop.f32.mrb[33].mxu0 }
0x14a1   :  { %v2766_v51 = vpop.f32.mrb[34].mxu0  ;;  %v2809_v52 = vpop.f32.mrb[60].mxu1 }
0x14a2   :  { %v2831_v56 = vpack.c.bf16 %v2809_v52, %v2763_v48  ;;  %v5028_v53 = vpop.f32.mrb[35].mxu0  ;;  %v5033_v58 = vpop.f32.mrb[61].mxu1 }
0x14a3   :  { %v2812_v59 = vpop.f32.mrb[62].mxu1 }
0x14a4   :  { %v5034_v61 = vpop.f32.mrb[63].mxu1  ;;  %5052 = vmatmul.mubr.bf16.vlgmr.msra.gmra.mrb[36].mxu0 %v2831_v56 }
0x14a5   :  { %5076 = vmatpush3.bf16.msra.mxu0 %v5445_v54  ;;  %5091 = vmatprep.mubr.msk.bf16.mxu0 %vm6371_vm1, %v6370_v2 }
0x14a6   :  { %5077 = vmatprep.subr.bf16.mxu0 %v6370_v2 }
0x14a9   :  { %5078 = vmatpush3.bf16.msra.mxu0 %v5446_v49 }
0x14aa   :  { %5079 = vmatprep.subr.bf16.mxu0 %v6370_v2 }
0x14ad   :  { %5080 = vmatpush3.bf16.msra.mxu0 %v5447_v62 }
0x14ae   :  { %5081 = vmatprep.subr.bf16.mxu0 %v6370_v2 }
0x14b1   :  { %5082 = vmatpush3.bf16.msra.mxu0 %v5448_v63 }
0x14b2   :  { %5083 = vmatprep.subr.bf16.mxu0 %v6370_v2 }
0x14b5   :  { %5084 = vmatpush3.bf16.msra.mxu0 %v5449_v1 }
0x14b6   :  { %5085 = vmatprep.subr.bf16.mxu0 %v6370_v2 }
0x14b9   :  { %5086 = vmatpush3.bf16.msra.mxu0 %v5450_v3 }
0x14ba   :  { %5087 = vmatprep.subr.bf16.mxu0 %v6370_v2 }
0x14bd   :  { %5088 = vmatpush3.bf16.msra.mxu0 %v5451_v4 }
0x14be   :  { %5089 = vmatprep.subr.bf16.mxu0 %v6370_v2 }
0x14c1   :  { %v3036_v6 = vpop.f32.mrb[64].mxu1  ;;  %5090 = vmatpush3.bf16.msra.mxu0 %v5452_v5 }
0x14c2   :  { %v5073_v7 = vpop.f32.mrb[65].mxu1  ;;  %5115 = vmatprep.subr.bf16.mxu0 %v6370_v2 }
0x14c3   :  { %v3039_v8 = vpop.f32.mrb[66].mxu1 }
0x14c4   :  { %v5074_v9 = vpop.f32.mrb[67].mxu1  ;;  %5092 = vmatmul.mubr.bf16.vlgmr.msra.gmra.mrb[40].mxu0 %v7084_v14  ;;  %v4396_v14 = vld [vmem:[#allocation25 + $0x1] ss:$0 sm:$0xff] }
0x14c5   :  { %5117 = vmatprep.mubr.msk.bf16.mxu0 %vm6371_vm1, %v6370_v2  ;;  %v3037_v30 = vadd.f32 %v4396_v14, %v3036_v6  ;;  %v3040_v33 = vadd.f32 %v4396_v14, %v3039_v8  ;;  %v5453_v8 = vld [vmem:[#allocation32 + $0x40] sm:$0xff]  }
0x14c7   :  { %v3271_v34 = vpack.c.bf16 %v3037_v30, %v3037_v30  ;;  %v3272_v36 = vpack.c.bf16 %v3040_v33, %v3040_v33  ;;  %v4395_v30 = vld [vmem:[#allocation34] ss:$0 sm:$0xff] }
0x14e1   :  { %v3264_v13 = vpop.f32.mrb[68].mxu1 }
0x14e2   :  { %v5113_v15 = vpop.f32.mrb[69].mxu1  ;;  %v3265_v28 = vadd.f32 %v4414_v21, %v3264_v13 }
0x14e3   :  { %v3267_v16 = vpop.f32.mrb[70].mxu1 }
0x14e4   :  { %v5114_v17 = vpop.f32.mrb[71].mxu1  ;;  %v3268_v32 = vadd.f32 %v4414_v21, %v3267_v16  ;;  %v3383_v23 = vpack.c.bf16 %v3265_v28, %v3265_v28  ;;  %v5454_v16 = vld [vmem:[#allocation32 + $0x48] sm:$0xff]   ;;  %v5460_v21 = vld [vmem:[#allocation32 + $0x78] sm:$0xff]  }
0x14e5   :  { %v5455_v17 = vld [vmem:[#allocation32 + $0x50] sm:$0xff]  }
0x14e6   :  { %v3384_v35 = vpack.c.bf16 %v3268_v32, %v3268_v32  ;;  %v3389_v37 = vsel %vm1078_vm2, %v3383_v23, 0 }
0x14e8   :  { %v3435_v31 = vsel %vm1078_vm2, %v3384_v35, 0 }
0x1577   :  { %v7174_v18 = vpop.f32.mrb[36].mxu0 }
0x1578   :  { %v5053_v55 = vpop.f32.mrb[37].mxu0  ;;  %v2927_v32 = vadd.f32 %v4395_v30, %v7174_v18 }
0x1579   :  { %v7176_v57 = vpop.f32.mrb[38].mxu0  ;;  %v5456_v55 = vld [vmem:[#allocation32 + $0x58] sm:$0xff]  }
0x157a   :  { %v5054_v19 = vpop.f32.mrb[39].mxu0  ;;  %v2928_v23 = vadd.f32 %v4395_v30, %v7176_v57 }
0x157b   :  { %v5457_v19 = vld [vmem:[#allocation32 + $0x60] sm:$0xff]  }
0x1597   :  { %v3150_v46 = vpop.f32.mrb[40].mxu0 }
0x1598   :  { %v3151_v47 = vadd.f32 %v4405_v20, %v3150_v46  ;;  %v5093_v22 = vpop.f32.mrb[41].mxu0  ;;  %v5459_v46 = vld [vmem:[#allocation32 + $0x70] sm:$0xff]  }
0x1599   :  { %v3153_v24 = vpop.f32.mrb[42].mxu0 }
0x159a   :  { %v3273_v25 = vpack.c.bf16 %v3151_v47, %v3151_v47  ;;  %v3154_v26 = vadd.f32 %v4405_v20, %v3153_v24  ;;  %v5094_v27 = vpop.f32.mrb[43].mxu0  ;;  %v5458_v20 = vld [vmem:[#allocation32 + $0x68] sm:$0xff]  }
0x159c   :  { %v3274_v29 = vpack.c.bf16 %v3154_v26, %v3154_v26  ;;  %5116 = vmatpush3.bf16.xpose.msra.mxu0 %v3273_v25 }
0x159d   :  { %5127 = vmatprep.subr.bf16.mxu0 %v6370_v2 }
0x159e   :  { %5122 = vmatpush3.bf16.xpose.msra.mxu1 %v3274_v29 }
0x159f   :  { %5133 = vmatprep.subr.bf16.mxu1 %v6370_v2 }
0x15a3   :  { %5118 = vmatmul.mubr.bf16.vlgmr.msra.gmra.mrb[44].mxu0 %v3271_v34 }
0x15a4   :  { %5128 = vmatpush3.bf16.msra.mxu0 %v3389_v37  ;;  %5129 = vmatprep.mubr.msk.bf16.mxu0 %vm6371_vm1, %v6370_v2 }
0x15a5   :  { %5124 = vmatmul.mubr.bf16.vlgmr.msra.gmra.mrb[72].mxu1 %v3272_v36  ;;  %5139 = vmatprep.subr.bf16.mxu0 %v6370_v2 }
0x15a6   :  { %5134 = vmatpush3.bf16.msra.mxu1 %v3435_v31  ;;  %5135 = vmatprep.mubr.msk.bf16.mxu1 %vm6371_vm1, %v6370_v2 }
0x15a7   :  { %5159 = vmatprep.subr.bf16.mxu1 %v6370_v2 }
0x1676   :  { %v3309_v38 = vpop.f32.mrb[44].mxu0 }
0x1677   :  { %v3355_v39 = vmul.f32 0.25, %v3309_v38  ;;  %v5119_v40 = vpop.f32.mrb[45].mxu0 }
0x1678   :  { %v3312_v41 = vpop.f32.mrb[46].mxu0  ;;  %v3349_v42 = vpop.f32.mrb[72].mxu1  ;;  %v5461_v40 = vld [vmem:[#allocation38] sm:$0xff]  }
0x1679   :  { %v3356_v43 = vmul.f32 0.25, %v3349_v42  ;;  %v5120_v44 = vpop.f32.mrb[47].mxu0  ;;  %v5125_v45 = vpop.f32.mrb[73].mxu1  ;;  %v3357_v48 = vadd.f32 %v7114_v60, %v3355_v39  ;;  %v5462_v41 = vld [vmem:[#allocation38 + $0x8] sm:$0xff]  }
0x167a   :  { %v3352_v50 = vpop.f32.mrb[74].mxu1 }
0x167b   :  { %v5126_v51 = vpop.f32.mrb[75].mxu1  ;;  %v3359_v52 = vsel %vm1048_vm3, %v3357_v48, -inf  ;;  %v3358_v54 = vadd.f32 %v7119_v0, %v3356_v43 }
0x167c   :  { %3360 = vmax.xlane.f32.xlu0 %v3359_v52  ;;  %v5463_v51 = vld [vmem:[#allocation38 + $0x10] sm:$0xff]   ;;  %v5464_v52 = vld [vmem:[#allocation38 + $0x18] sm:$0xff]  }
0x167d   :  { %v3362_v56 = vsel %vm1048_vm3, %v3358_v54, -inf }
0x167e   :  { %3363 = vmax.xlane.f32.xlu1 %v3362_v56  ;;  %v5466_v56 = vld [vmem:[#allocation38 + $0x28] sm:$0xff]  }
0x1709   :  { %v3361_v53 = vpop.xlane.xlu0 %3360 }
0x170a   :  { %v3365_v58 = vsub.f32 %v3357_v48, %v3361_v53  ;;  %v5467_v53 = vld [vmem:[#allocation38 + $0x30] sm:$0xff]  }
0x170b   :  { %v3364_v59 = vpop.xlane.xlu1 %3363 }
0x170c   :  { %v3367_v61 = vmul.f32 1.442695, %v3365_v58  ;;  %v3366_v49 = vsub.f32 %v3358_v54, %v3364_v59  ;;  %v5465_v54 = vld [vmem:[#allocation38 + $0x20] sm:$0xff]   ;;  %v5468_v58 = vld [vmem:[#allocation38 + $0x38] sm:$0xff]  }
0x170e   :  { %5533 = vpow2.f32 %v3367_v61  ;;  %v3369_v62 = vmul.f32 1.442695, %v3366_v49 }
0x1710   :  { %5535 = vpow2.f32 %v3369_v62 }
0x1718   :  { %v5534_v63 = vpop.eup %5533 }
0x1719   :  { %v3371_v60 = vsel %vm1048_vm3, %v5534_v63, 0.0 }
0x171a   :  { %v5536_v1 = vpop.eup %5535  ;;  %3372 = vadd.xlane.f32.xlu0 %v3371_v60 }
0x171b   :  { %v3374_v3 = vsel %vm1048_vm3, %v5536_v1, 0.0 }
0x171c   :  { %3375 = vadd.xlane.f32.xlu1 %v3374_v3  ;;  %v4433_v3 = vld [vmem:[#allocation35] ss:$0 sm:$0xff] }
0x17a7   :  { %v3373_v0 = vpop.xlane.xlu0 %3372 }
0x17a8   :  { %5537 = vrcp.f32 %v3373_v0 }
0x17a9   :  { %v3376_v4 = vpop.xlane.xlu1 %3375 }
0x17aa   :  { %5539 = vrcp.f32 %v3376_v4 }
0x17b2   :  { %v5538_v5 = vpop.eup %5537 }
0x17b3   :  { %v3379_v6 = vmul.f32 %v5538_v5, %v5534_v63 }
0x17b4   :  { %v5540_v7 = vpop.eup %5539 }
0x17b5   :  { %v3380_v9 = vmul.f32 %v5540_v7, %v5536_v1  ;;  %v3381_v13 = vpack.c.bf16 %v3379_v6, %v3379_v6  ;;  %v4434_v7 = vld [vmem:[#allocation37] ss:$0 sm:$0xff] }
0x17b7   :  { %5130 = vmatmul.mubr.msk.bf16.vlgmr.msra.gmra.mrb[48].mxu0 %vm1048_vm3, %v3381_v13  ;;  %v3382_v15 = vpack.c.bf16 %v3380_v9, %v3380_v9 }
0x17b8   :  { %5140 = vmatpush3.bf16.msra.mxu0 %v5453_v8  ;;  %5155 = vmatprep.mubr.msk.bf16.mxu0 %vm6371_vm1, %v6370_v2 }
0x17b9   :  { %5136 = vmatmul.mubr.msk.bf16.vlgmr.msra.gmra.mrb[76].mxu1 %vm1048_vm3, %v3382_v15  ;;  %5141 = vmatprep.subr.bf16.mxu0 %v6370_v2 }
0x17ba   :  { %5175 = vmatprep.mubr.msk.bf16.mxu1 %vm6371_vm1, %v6370_v2  ;;  %5160 = vmatpush3.bf16.msra.mxu1 %v5461_v40 }
0x17bb   :  { %5161 = vmatprep.subr.bf16.mxu1 %v6370_v2 }
0x17bc   :  { %5142 = vmatpush3.bf16.msra.mxu0 %v5454_v16  ;;  %v5469_v16 = vld [vmem:[#allocation41] sm:$0xff]  }
0x17bd   :  { %5143 = vmatprep.subr.bf16.mxu0 %v6370_v2 }
0x17be   :  { %5162 = vmatpush3.bf16.msra.mxu1 %v5462_v41 }
0x17bf   :  { %5163 = vmatprep.subr.bf16.mxu1 %v6370_v2 }
0x17c0   :  { %5144 = vmatpush3.bf16.msra.mxu0 %v5455_v17  ;;  %v5470_v17 = vld [vmem:[#allocation41 + $0x8] sm:$0xff]  }
0x17c1   :  { %5145 = vmatprep.subr.bf16.mxu0 %v6370_v2 }
0x17c2   :  { %5164 = vmatpush3.bf16.msra.mxu1 %v5463_v51 }
0x17c3   :  { %5165 = vmatprep.subr.bf16.mxu1 %v6370_v2 }
0x17c4   :  { %5146 = vmatpush3.bf16.msra.mxu0 %v5456_v55  ;;  %v5471_v55 = vld [vmem:[#allocation41 + $0x10] sm:$0xff]  }
0x17c5   :  { %5147 = vmatprep.subr.bf16.mxu0 %v6370_v2 }
0x17c6   :  { %5166 = vmatpush3.bf16.msra.mxu1 %v5464_v52 }
0x17c7   :  { %5167 = vmatprep.subr.bf16.mxu1 %v6370_v2 }
0x17c8   :  { %5148 = vmatpush3.bf16.msra.mxu0 %v5457_v19  ;;  %v5472_v19 = vld [vmem:[#allocation41 + $0x18] sm:$0xff]  }
0x17c9   :  { %5149 = vmatprep.subr.bf16.mxu0 %v6370_v2 }
0x17ca   :  { %5168 = vmatpush3.bf16.msra.mxu1 %v5465_v54 }
0x17cb   :  { %5169 = vmatprep.subr.bf16.mxu1 %v6370_v2 }
0x17cc   :  { %5150 = vmatpush3.bf16.msra.mxu0 %v5458_v20  ;;  %v5473_v20 = vld [vmem:[#allocation41 + $0x20] sm:$0xff]  }
0x17cd   :  { %5151 = vmatprep.subr.bf16.mxu0 %v6370_v2 }
0x17ce   :  { %5170 = vmatpush3.bf16.msra.mxu1 %v5466_v56 }
0x17cf   :  { %5171 = vmatprep.subr.bf16.mxu1 %v6370_v2 }
0x17d0   :  { %5152 = vmatpush3.bf16.msra.mxu0 %v5459_v46  ;;  %v5474_v46 = vld [vmem:[#allocation41 + $0x28] sm:$0xff]  }
0x17d1   :  { %5153 = vmatprep.subr.bf16.mxu0 %v6370_v2 }
0x17d2   :  { %5172 = vmatpush3.bf16.msra.mxu1 %v5467_v53 }
0x17d3   :  { %5173 = vmatprep.subr.bf16.mxu1 %v6370_v2 }
0x17d4   :  { %5154 = vmatpush3.bf16.msra.mxu0 %v5460_v21  ;;  %v5475_v21 = vld [vmem:[#allocation41 + $0x30] sm:$0xff]  }
0x17d5   :  { %5179 = vmatprep.subr.bf16.mxu0 %v6370_v2 }
0x17d6   :  { %5174 = vmatpush3.bf16.msra.mxu1 %v5468_v58 }
0x17d7   :  { %5199 = vmatprep.subr.bf16.mxu1 %v6370_v2 }
0x188a   :  { %v3425_v47 = vpop.f32.mrb[48].mxu0 }
0x188b   :  { %v5131_v22 = vpop.f32.mrb[49].mxu0 }
0x188c   :  { %v3428_v24 = vpop.f32.mrb[50].mxu0  ;;  %v3471_v14 = vpop.f32.mrb[76].mxu1  ;;  %v4435_v22 = vld [vmem:[#allocation40] ss:$0 sm:$0xff] }
0x188d   :  { %v3494_v25 = vpack.c.bf16 %v3471_v14, %v3425_v47  ;;  %v5132_v26 = vpop.f32.mrb[51].mxu0  ;;  %v5137_v27 = vpop.f32.mrb[77].mxu1  ;;  %v5476_v47 = vld [vmem:[#allocation41 + $0x38] sm:$0xff]  }
0x188e   :  { %v3474_v28 = vpop.f32.mrb[78].mxu1 }
0x188f   :  { %v5138_v29 = vpop.f32.mrb[79].mxu1  ;;  %5156 = vmatmul.mubr.bf16.vlgmr.msra.gmra.mrb[52].mxu0 %v3494_v25 }
0x1890   :  { %5195 = vmatprep.mubr.msk.bf16.mxu0 %vm6371_vm1, %v6370_v2  ;;  %5180 = vmatpush3.bf16.msra.mxu0 %v5469_v16  ;;  %v5487_v16 = vld [vmem:[#allocation49 + $0x10] sm:$0xff]  }
0x1891   :  { %5181 = vmatprep.subr.bf16.mxu0 %v6370_v2 }
0x1894   :  { %5182 = vmatpush3.bf16.msra.mxu0 %v5470_v17  ;;  %v5488_v17 = vld [vmem:[#allocation49 + $0x18] sm:$0xff]  }
0x1895   :  { %5183 = vmatprep.subr.bf16.mxu0 %v6370_v2 }
0x1898   :  { %5184 = vmatpush3.bf16.msra.mxu0 %v5471_v55 }
0x1899   :  { %5185 = vmatprep.subr.bf16.mxu0 %v6370_v2 }
0x189c   :  { %5186 = vmatpush3.bf16.msra.mxu0 %v5472_v19 }
0x189d   :  { %5187 = vmatprep.subr.bf16.mxu0 %v6370_v2 }
0x18a0   :  { %5188 = vmatpush3.bf16.msra.mxu0 %v5473_v20 }
0x18a1   :  { %5189 = vmatprep.subr.bf16.mxu0 %v6370_v2 }
0x18a4   :  { %5190 = vmatpush3.bf16.msra.mxu0 %v5474_v46 }
0x18a5   :  { %5191 = vmatprep.subr.bf16.mxu0 %v6370_v2 }
0x18a8   :  { %5192 = vmatpush3.bf16.msra.mxu0 %v5475_v21 }
0x18a9   :  { %5193 = vmatprep.subr.bf16.mxu0 %v6370_v2 }
0x18ac   :  { %5194 = vmatpush3.bf16.msra.mxu0 %v5476_v47 }
0x18ad   :  { %5219 = vmatprep.subr.bf16.mxu0 %v6370_v2 }
0x1962   :  { %v3577_v33 = vpop.f32.mrb[52].mxu0 }
0x1963   :  { %v3584_v34 = vadd.f32 %v3577_v33, %v2927_v32  ;;  %v5157_v35 = vpop.f32.mrb[53].mxu0 }
0x1964   :  { %v3580_v36 = vpop.f32.mrb[54].mxu0 }
0x1965   :  { %v3585_v37 = vadd.f32 %v3580_v36, %v2928_v23  ;;  %v5158_v31 = vpop.f32.mrb[55].mxu0  ;;  %v3586_v38 = vadd.f32 %v3584_v34, %v7078_v11 }
0x1967   :  { %3590 = vadd.xlane.f32.xlu0 %v3586_v38  ;;  %v3587_v39 = vadd.f32 %v3585_v37, %v7080_v12 }
0x1969   :  { %3592 = vadd.xlane.f32.xlu1 %v3587_v39 }
0x19f4   :  { %v3591_v18 = vpop.xlane.xlu0 %3590 }
0x19f5   :  { %v3594_v57 = vmul.f32 0.03125, %v3591_v18 }
0x19f6   :  { %v3593_v42 = vpop.xlane.xlu1 %3592 }
0x19f7   :  { %v3596_v43 = vsub.f32 %v3586_v38, %v3594_v57  ;;  %v3595_v44 = vmul.f32 0.03125, %v3593_v42 }
0x19f9   :  { %v3597_v45 = vsub.f32 %v3587_v39, %v3595_v44  ;;  %v3598_v11 = vmul.f32 %v6826_v10, %v3596_v43 }
0x19fb   :  { %v3600_v48 = vmul.f32 %v3598_v11, %v3598_v11  ;;  %v3599_v12 = vmul.f32 %v6826_v10, %v3597_v45  ;;  %v4444_v45 = vld [vmem:[#allocation43] ss:$0 sm:$0xff] }
0x19fd   :  { %3602 = vadd.xlane.f32.xlu0 %v3600_v48  ;;  %v3601_v50 = vmul.f32 %v3599_v12, %v3599_v12 }
0x19ff   :  { %3604 = vadd.xlane.f32.xlu1 %v3601_v50 }
0x1a8a   :  { %v3603_v59 = vpop.xlane.xlu0 %3602 }
0x1a8b   :  { %v3606_v61 = vmul.f32 0.03125, %v3603_v59 }
0x1a8c   :  { %v3605_v49 = vpop.xlane.xlu1 %3604 }
0x1a8d   :  { %v3608_v62 = vadd.f32 1e-12, %v3606_v61  ;;  %v3607_v63 = vmul.f32 0.03125, %v3605_v49 }
0x1a8f   :  { %5541 = vrsqrt.f32 %v3608_v62  ;;  %v3609_v60 = vadd.f32 1e-12, %v3607_v63 }
0x1a91   :  { %5543 = vrsqrt.f32 %v3609_v60 }
0x1a99   :  { %v5542_v1 = vpop.eup %5541 }
0x1a9a   :  { %v3612_v0 = vmul.f32 %v5542_v1, %v3598_v11 }
0x1a9b   :  { %v5544_v4 = vpop.eup %5543 }
0x1a9c   :  { %v3613_v5 = vmul.f32 %v5544_v4, %v3599_v12  ;;  %v3620_v6 = vmul.f32 %v4433_v3, %v3612_v0  ;;  %v5477_v0 = vld [vmem:[#allocation47] sm:$0xff]   ;;  %v5478_v4 = vld [vmem:[#allocation47 + $0x8] sm:$0xff]  }
0x1a9e   :  { %v3621_v8 = vmul.f32 %v4433_v3, %v3613_v5  ;;  %v7224_v9 = vadd.f32 %v4434_v7, %v3620_v6  ;;  %v5479_v5 = vld [vmem:[#allocation47 + $0x10] sm:$0xff]   ;;  %v5480_v6 = vld [vmem:[#allocation47 + $0x18] sm:$0xff]  }
0x1aa0   :  { %v7226_v13 = vadd.f32 %v4434_v7, %v3621_v8  ;;  %v5482_v7 = vld [vmem:[#allocation47 + $0x28] sm:$0xff]   ;;  %v5483_v8 = vld [vmem:[#allocation47 + $0x30] sm:$0xff]  }
0x1aa2   :  { %v3646_v15 = vpack.c.bf16 %v7226_v13, %v7224_v9 }
0x1aa4   :  { %5176 = vmatmul.mubr.bf16.vlgmr.msra.gmra.mrb[80].mxu1 %v3646_v15  ;;  %v5486_v15 = vld [vmem:[#allocation49 + $0x8] sm:$0xff]  }
0x1aa5   :  { %5215 = vmatprep.mubr.msk.bf16.mxu1 %vm6371_vm1, %v6370_v2  ;;  %5200 = vmatpush3.bf16.msra.mxu1 %v5477_v0 }
0x1aa6   :  { %5201 = vmatprep.subr.bf16.mxu1 %v6370_v2 }
0x1aa9   :  { %5202 = vmatpush3.bf16.msra.mxu1 %v5478_v4 }
0x1aaa   :  { %5203 = vmatprep.subr.bf16.mxu1 %v6370_v2 }
0x1aad   :  { %5204 = vmatpush3.bf16.msra.mxu1 %v5479_v5 }
0x1aae   :  { %5205 = vmatprep.subr.bf16.mxu1 %v6370_v2 }
0x1ab1   :  { %5206 = vmatpush3.bf16.msra.mxu1 %v5480_v6 }
0x1ab2   :  { %5207 = vmatprep.subr.bf16.mxu1 %v6370_v2 }
0x1b77   :  { %v3736_v24 = vpop.f32.mrb[80].mxu1 }
0x1b78   :  { %v3737_v14 = vadd.f32 %v4435_v22, %v3736_v24  ;;  %v5177_v25 = vpop.f32.mrb[81].mxu1  ;;  %v4453_v24 = vld [vmem:[#allocation44] ss:$0 sm:$0xff] }
0x1b79   :  { %v3739_v26 = vpop.f32.mrb[82].mxu1 }
0x1b7a   :  { %v3743_v27 = vmul.f32 %v3737_v14, %v3737_v14  ;;  %v3740_v28 = vadd.f32 %v4435_v22, %v3739_v26  ;;  %v5178_v29 = vpop.f32.mrb[83].mxu1  ;;  %v4454_v26 = vld [vmem:[#allocation46] ss:$0 sm:$0xff] }
0x1b7c   :  { %v3745_v30 = vmul.f32 %v3743_v27, %v3737_v14  ;;  %v3744_v32 = vmul.f32 %v3740_v28, %v3740_v28 }
0x1b7e   :  { %v3747_v33 = vmul.f32 0.044715, %v3745_v30  ;;  %v3746_v23 = vmul.f32 %v3744_v32, %v3740_v28 }
0x1b80   :  { %v3749_v34 = vadd.f32 %v3747_v33, %v3737_v14  ;;  %v3748_v35 = vmul.f32 0.044715, %v3746_v23 }
0x1b82   :  { %v3751_v36 = vmul.f32 0.7978846, %v3749_v34  ;;  %v3750_v37 = vadd.f32 %v3748_v35, %v3740_v28 }
0x1b84   :  { %5545 = vtanh.f32 %v3751_v36  ;;  %v3752_v31 = vmul.f32 0.7978846, %v3750_v37 }
0x1b86   :  { %5547 = vtanh.f32 %v3752_v31 }
0x1b8e   :  { %v5546_v38 = vpop.eup %5545 }
0x1b8f   :  { %v3755_v39 = vadd.f32 1.0, %v5546_v38  ;;  %v5489_v38 = vld [vmem:[#allocation49 + $0x20] sm:$0xff]  }
0x1b90   :  { %v5548_v40 = vpop.eup %5547 }
0x1b91   :  { %v3757_v41 = vmul.f32 0.5, %v3755_v39  ;;  %v3756_v18 = vadd.f32 1.0, %v5548_v40  ;;  %v5490_v39 = vld [vmem:[#allocation49 + $0x28] sm:$0xff]   ;;  %v5491_v40 = vld [vmem:[#allocation49 + $0x30] sm:$0xff]  }
0x1b93   :  { %v3758_v57 = vmul.f32 0.5, %v3756_v18  ;;  %v3759_v42 = vmul.f32 %v3757_v41, %v3737_v14  ;;  %v5492_v41 = vld [vmem:[#allocation49 + $0x38] sm:$0xff]  }
0x1b94   :  { %v4455_v18 = vld [vmem:[%s6566_s13] ss:$0 sm:$0xff]  ;;  %s6239_s13 = scalar_lea.vmem %s4161_s30, 32 }
0x1b95   :  { %v3760_v43 = vmul.f32 %v3758_v57, %v3740_v28  ;;  %p6240_p10 = scmp.ne.s32.totalorder %s4161_s30, %s6239_s13  ;;  %p6245_p12 = scmp.lt.s32.totalorder %s6239_s13, %s6239_s13 }
0x1b97   :  { %v3777_v44 = vpack.c.bf16 %v3760_v43, %v3759_v42  ;;  %p6246_p13 = por %p6245_p12, %p6244_p11 }
0x1b99   :  { %5196 = vmatmul.mubr.bf16.vlgmr.msra.gmra.mrb[56].mxu0 %v3777_v44  ;;  %p6247_p0 = pnand %p6246_p13, %p6240_p10 }
0x1b9a   :  { %5235 = vmatprep.mubr.msk.bf16.mxu0 %vm6371_vm1, %v6370_v2 }
0x1c6c   :  { %v3867_v11 = vpop.f32.mrb[56].mxu0 }
0x1c6d   :  { %v3868_v48 = vadd.f32 %v4444_v45, %v3867_v11  ;;  %v5197_v12 = vpop.f32.mrb[57].mxu0 }
0x1c6e   :  { %v3870_v50 = vpop.f32.mrb[58].mxu0  ;;  %v4464_v12 = vld [vmem:[%s6576_s21] ss:$0 sm:$0xff] }
0x1c6f   :  { %v3871_v51 = vadd.f32 %v4444_v45, %v3870_v50  ;;  %v5198_v52 = vpop.f32.mrb[59].mxu0  ;;  %v3874_v54 = vadd.f32 %v3868_v48, %v7224_v9  ;;  %v5484_v9 = vld [vmem:[#allocation47 + $0x38] sm:$0xff]  }
0x1c71   :  { %3878 = vadd.xlane.f32.xlu1 %v3874_v54  ;;  %v3875_v56 = vadd.f32 %v3871_v51, %v7226_v13  ;;  %v5485_v13 = vld [vmem:[#allocation49] sm:$0xff]  }
0x1c72   :  { %5220 = vmatpush3.bf16.msra.mxu0 %v5485_v13 }
0x1c73   :  { %3880 = vadd.xlane.f32.xlu0 %v3875_v56  ;;  %5221 = vmatprep.subr.bf16.mxu0 %v6370_v2 }
0x1c76   :  { %5222 = vmatpush3.bf16.msra.mxu0 %v5486_v15 }
0x1c77   :  { %5223 = vmatprep.subr.bf16.mxu0 %v6370_v2 }
0x1c7a   :  { %5224 = vmatpush3.bf16.msra.mxu0 %v5487_v16 }
0x1c7b   :  { %5225 = vmatprep.subr.bf16.mxu0 %v6370_v2 }
0x1c7e   :  { %5226 = vmatpush3.bf16.msra.mxu0 %v5488_v17 }
0x1c7f   :  { %5227 = vmatprep.subr.bf16.mxu0 %v6370_v2 }
0x1c82   :  { %5228 = vmatpush3.bf16.msra.mxu0 %v5489_v38 }
0x1c83   :  { %5229 = vmatprep.subr.bf16.mxu0 %v6370_v2 }
0x1c86   :  { %5230 = vmatpush3.bf16.msra.mxu0 %v5490_v39 }
0x1c87   :  { %5231 = vmatprep.subr.bf16.mxu0 %v6370_v2 }
0x1c8a   :  { %5232 = vmatpush3.bf16.msra.mxu0 %v5491_v40 }
0x1c8b   :  { %5233 = vmatprep.subr.bf16.mxu0 %v6370_v2 }
0x1c8e   :  { %5234 = vmatpush3.bf16.msra.mxu0 %v5492_v41 }
0x1cfe   :  { %v3879_v53 = vpop.xlane.xlu1 %3878 }
0x1cff   :  { %v3882_v58 = vmul.f32 0.03125, %v3879_v53 }
0x1d00   :  { %v3881_v59 = vpop.xlane.xlu0 %3880 }
0x1d01   :  { %v3884_v61 = vsub.f32 %v3874_v54, %v3882_v58  ;;  %v3883_v49 = vmul.f32 0.03125, %v3881_v59 }
0x1d03   :  { %v3885_v62 = vsub.f32 %v3875_v56, %v3883_v49  ;;  %v3886_v63 = vmul.f32 %v6826_v10, %v3884_v61 }
0x1d05   :  { %v3888_v60 = vmul.f32 %v3886_v63, %v3886_v63  ;;  %v3887_v1 = vmul.f32 %v6826_v10, %v3885_v62  ;;  %v5481_v10 = vld [vmem:[#allocation47 + $0x20] sm:$0xff]  }
0x1d06   :  { %5208 = vmatpush3.bf16.msra.mxu1 %v5481_v10 }
0x1d07   :  { %3890 = vadd.xlane.f32.xlu1 %v3888_v60  ;;  %v3889_v3 = vmul.f32 %v3887_v1, %v3887_v1  ;;  %5209 = vmatprep.subr.bf16.mxu1 %v6370_v2 }
0x1d09   :  { %3892 = vadd.xlane.f32.xlu0 %v3889_v3 }
0x1d0a   :  { %5210 = vmatpush3.bf16.msra.mxu1 %v5482_v7 }
0x1d0b   :  { %5211 = vmatprep.subr.bf16.mxu1 %v6370_v2 }
0x1d0e   :  { %5212 = vmatpush3.bf16.msra.mxu1 %v5483_v8 }
0x1d0f   :  { %5213 = vmatprep.subr.bf16.mxu1 %v6370_v2 }
0x1d12   :  { %5214 = vmatpush3.bf16.msra.mxu1 %v5484_v9 }
0x1d94   :  { %v3891_v55 = vpop.xlane.xlu1 %3890 }
0x1d95   :  { %v3894_v19 = vmul.f32 0.03125, %v3891_v55 }
0x1d96   :  { %v3893_v20 = vpop.xlane.xlu0 %3892 }
0x1d97   :  { %v3896_v46 = vadd.f32 1e-12, %v3894_v19  ;;  %v3895_v21 = vmul.f32 0.03125, %v3893_v20 }
0x1d99   :  { %5549 = vrsqrt.f32 %v3896_v46  ;;  %v3897_v47 = vadd.f32 1e-12, %v3895_v21 }
0x1d9b   :  { %5551 = vrsqrt.f32 %v3897_v47 }
0x1da3   :  { %v5550_v22 = vpop.eup %5549 }
0x1da4   :  { %v3900_v14 = vmul.f32 %v5550_v22, %v3886_v63 }
0x1da5   :  { %v5552_v25 = vpop.eup %5551 }
0x1da6   :  { %v3908_v27 = vmul.f32 %v4453_v24, %v3900_v14  ;;  %v3901_v28 = vmul.f32 %v5552_v25, %v3887_v1 }
0x1da8   :  { %v3909_v29 = vmul.f32 %v4453_v24, %v3901_v28  ;;  %v3916_v30 = vadd.f32 %v4454_v26, %v3908_v27 }
0x1daa   :  { %v3917_v32 = vadd.f32 %v4454_v26, %v3909_v29  ;;  %v3934_v33 = vpack.c.bf16 %v3916_v30, %v3916_v30 }
0x1dac   :  { %v3935_v23 = vpack.c.bf16 %v3917_v32, %v3917_v32  ;;  %v3945_v35 = vunpack.c.l.b16 %v3934_v33 }
0x1dae   :  { %v3946_v34 = vunpack.c.l.b16 %v3935_v23 }
0x1db0   :  { %v3947_v36 = vrot.slane %v3946_v34, 7 }
0x1db2   :  { %v3949_v37 = vsel %vm3948_vm4, %v3947_v36, %v3945_v35 }
0x1db3   :  { %v3950_v31 = vpack.c.b16 %v3949_v37, %v3949_v37 }
0x1db5   :  { %5216 = vmatmul.mubr.bf16.vlgmr.msra.gmra.mrb[84].mxu1 %v3950_v31 }
0x1e88   :  { %v4034_v57 = vpop.f32.mrb[84].mxu1 }
0x1e89   :  { %v4035_v42 = vadd.f32 %v4455_v18, %v4034_v57  ;;  %v5217_v43 = vpop.f32.mrb[85].mxu1 }
0x1e8a   :  { %v4037_v44 = vpop.f32.mrb[86].mxu1 }
0x1e8b   :  { %5553 = vtanh.f32 %v4035_v42  ;;  %v5218_v45 = vpop.f32.mrb[87].mxu1 }
0x1e95   :  { %v5554_v11 = vpop.eup %5553 }
0x1e96   :  { %v4057_v48 = vpack.c.bf16 %v5554_v11, %v5554_v11 }
0x1e98   :  { %5236 = vmatmul.mubr.bf16.vlgmr.msra.gmra.mrb[60].mxu0 %v4057_v48 }
0x1f6b   :  { %v4147_v50 = vpop.f32.mrb[60].mxu0 }
0x1f6c   :  { %v4148_v51 = vadd.f32 %v4464_v12, %v4147_v50  ;;  %v5237_v52 = vpop.f32.mrb[61].mxu0 }
0x1f6d   :  { %v4150_v2 = vpop.f32.mrb[62].mxu0 }
0x1f6e   :  { %4153 = vst [vmem:[#allocation50] sm:$0x3] %v4148_v51  ;;  %v5238_v54 = vpop.f32.mrb[63].mxu0 }
0x1f6f   :  { %6250 = shalt.err (!%p6247_p0)
}
0x1f70   :  { %s6251_s21 = scalar_lea.hbm %s6581_s8, 32 }
0x1f71   :  { %p6252_p1 = scmp.ne.s32.totalorder %s6581_s8, %s6251_s21  ;;  %p6255_p2 = scmp.lt.u32.totalorder %s6251_s21, %s6581_s8 }
0x1f73   :  { %p6257_p3 = pnand %p6255_p2, %p6252_p1 }
0x1f75   :  { %6260 = shalt.err (!%p6257_p3)
}
0x1f76   :  { %4163 = dma.vmem_to_hbm [thread:$0]  %s4161_s30, 32, %s6581_s8, [#allocation4]  }
0x1f77   :  { %6293 = dma.done.wait [#allocation4], 32  }
0x1f78   :  { %6294 = vsyncadd [#allocation4], 4294967264 }
0x1f79   :  { %4167 = vsyncpa [#allocation3], 1 }
0x1f7a   :  { %4168 = vsyncpa [#allocation6], 1 }
0x1f7b   :  { %4169 = vsyncpa [#allocation9], 1 }
0x1f7c   :  { %4170 = vsyncpa [#allocation12], 1 }
0x1f7d   :  { %4171 = vsyncpa [#allocation15], 1 }
0x1f7e   :  { %4172 = vsyncpa [#allocation18], 1 }
0x1f7f   :  { %4173 = vsyncpa [#allocation21], 1 }
0x1f80   :  { %4174 = vsyncpa [#allocation24], 1 }
0x1f81   :  { %4175 = vsyncpa [#allocation27], 1 }
0x1f82   :  { %4176 = vsyncpa [#allocation30], 1 }
0x1f83   :  { %4177 = vsyncpa [#allocation33], 1 }
0x1f84   :  { %4178 = vsyncpa [#allocation36], 1 }
0x1f85   :  { %4179 = vsyncpa [#allocation39], 1 }
0x1f86   :  { %4180 = vsyncpa [#allocation42], 1 }
0x1f87   :  { %4181 = vsyncpa [#allocation45], 1 }
0x1f88   :  { %4182 = vsyncpa [#allocation48], 1 }
0x1f89   :  { %4183 = vsyncpa [#allocation4], 1 }

</bundles_post_ra>
